<compile_context>
chip_gen: v6e
topology: v6e:2x2x1
jax: 0.10.0
libtpu: 0.0.40
codegen_flags: <defaults>
</compile_context>

<pallas_src>
import jax
import jax.numpy as jnp
from jax.experimental import pallas as pl
from jax.experimental.pallas import tpu as pltpu

_BN_EPS = 1e-5


# --------------------------------------------------------------------------
# Row-tile selection: block must divide M (or equal it) and be sublane-legal.
# --------------------------------------------------------------------------
def _pick_tm(M, cap=512):
    if M <= cap:
        return M                       # full extent -> always legal
    for t in range(cap, 7, -1):        # prefer multiples of 8 that divide M
        if M % t == 0 and t % 8 == 0:
            return t
    return M                           # fallback: single full block


# --------------------------------------------------------------------------
# Pallas kernels
# --------------------------------------------------------------------------
def _matmul_kernel(x_ref, w_ref, o_ref):
    # x, w: bf16 tiles; accumulate in f32 on the MXU.
    o_ref[...] = jnp.dot(x_ref[...], w_ref[...],
                         preferred_element_type=jnp.float32)


def _bn_relu_matmul_kernel(x_ref, scale_ref, shift_ref, w_ref, o_ref):
    # Fused prologue: training-mode BN (as per-channel scale/shift) + ReLU in
    # f32, then bf16 MXU matmul with f32 accumulation.
    x = jnp.maximum(x_ref[...] * scale_ref[...] + shift_ref[...], 0.0)
    o_ref[...] = jnp.dot(x.astype(jnp.bfloat16), w_ref[...],
                         preferred_element_type=jnp.float32)


def _stats_kernel(x_ref, sum_ref, sq_ref):
    # Tiled per-channel sum / sum-of-squares reduction (accumulator outputs).
    @pl.when(pl.program_id(0) == 0)
    def _():
        sum_ref[...] = jnp.zeros_like(sum_ref)
        sq_ref[...] = jnp.zeros_like(sq_ref)

    x = x_ref[...]
    sum_ref[...] += jnp.sum(x, axis=0, keepdims=True)
    sq_ref[...] += jnp.sum(x * x, axis=0, keepdims=True)


def _tanh_kernel(x_ref, o_ref):
    o_ref[...] = jnp.tanh(x_ref[...])


# --------------------------------------------------------------------------
# Pallas wrappers
# --------------------------------------------------------------------------
def pallas_matmul(x_bf16, w_bf16):
    M, K = x_bf16.shape
    _, N = w_bf16.shape
    tm = _pick_tm(M)
    return pl.pallas_call(
        _matmul_kernel,
        out_shape=jax.ShapeDtypeStruct((M, N), jnp.float32),
        grid=(M // tm,),
        in_specs=[pl.BlockSpec((tm, K), lambda i: (i, 0)),
                  pl.BlockSpec((K, N), lambda i: (0, 0))],
        out_specs=pl.BlockSpec((tm, N), lambda i: (i, 0)),
        compiler_params=pltpu.CompilerParams(
            dimension_semantics=("parallel",)),
    )(x_bf16, w_bf16)


def pallas_bn_relu_matmul(y_f32, scale, shift, w_bf16):
    """relu(y * scale + shift) @ w, tiled over rows of y."""
    M, K = y_f32.shape
    _, N = w_bf16.shape
    tm = _pick_tm(M)
    return pl.pallas_call(
        _bn_relu_matmul_kernel,
        out_shape=jax.ShapeDtypeStruct((M, N), jnp.float32),
        grid=(M // tm,),
        in_specs=[pl.BlockSpec((tm, K), lambda i: (i, 0)),
                  pl.BlockSpec((1, K), lambda i: (0, 0)),
                  pl.BlockSpec((1, K), lambda i: (0, 0)),
                  pl.BlockSpec((K, N), lambda i: (0, 0))],
        out_specs=pl.BlockSpec((tm, N), lambda i: (i, 0)),
        compiler_params=pltpu.CompilerParams(
            dimension_semantics=("parallel",)),
    )(y_f32, scale.reshape(1, K), shift.reshape(1, K), w_bf16)


def pallas_channel_stats(y2d):
    """Per-channel sum and sum-of-squares over all rows (tiled reduction)."""
    M, C = y2d.shape
    tm = _pick_tm(M)
    return pl.pallas_call(
        _stats_kernel,
        out_shape=(jax.ShapeDtypeStruct((1, C), jnp.float32),
                   jax.ShapeDtypeStruct((1, C), jnp.float32)),
        grid=(M // tm,),
        in_specs=[pl.BlockSpec((tm, C), lambda i: (i, 0))],
        out_specs=(pl.BlockSpec((1, C), lambda i: (0, 0)),
                   pl.BlockSpec((1, C), lambda i: (0, 0))),
        compiler_params=pltpu.CompilerParams(
            dimension_semantics=("arbitrary",)),
    )(y2d)


def pallas_tanh(x2d):
    M, N = x2d.shape
    tm = _pick_tm(M)
    return pl.pallas_call(
        _tanh_kernel,
        out_shape=jax.ShapeDtypeStruct((M, N), jnp.float32),
        grid=(M // tm,),
        in_specs=[pl.BlockSpec((tm, N), lambda i: (i, 0))],
        out_specs=pl.BlockSpec((tm, N), lambda i: (i, 0)),
        compiler_params=pltpu.CompilerParams(
            dimension_semantics=("parallel",)),
    )(x2d)


# --------------------------------------------------------------------------
# col2im overlap-add for ConvTranspose2d(k=4, s=2, p=1).
# C[b, iy, ix, ky, kx, c] contributes to Y[b, 2*iy+ky-1, 2*ix+kx-1, c].
# Per output phase only 2 taps per spatial dim survive:
#   even rows  (2m)  : (iy=m,  ky=1) + (iy=m-1, ky=3)
#   odd  rows  (2m+1): (iy=m,  ky=2) + (iy=m+1, ky=0)
# TODO(synk): the overlap-add (scatter-add) runs as XLA shifted-slice adds,
# not as a Pallas kernel (halo handling across row tiles is not worth it here).
# --------------------------------------------------------------------------
def _col2im_k4s2p1(c_flat, B, H, W, Cout):
    C = c_flat.reshape(B, H, W, 4, 4, Cout)

    def shift_y(t, s):
        if s == 0:
            return t
        if s == 1:                              # phase[m] = t[m+1]
            return jnp.pad(t[:, 1:], ((0, 0), (0, 1), (0, 0), (0, 0)))
        return jnp.pad(t[:, :-1], ((0, 0), (1, 0), (0, 0), (0, 0)))

    def shift_x(t, s):
        if s == 0:
            return t
        if s == 1:
            return jnp.pad(t[:, :, 1:], ((0, 0), (0, 0), (0, 1), (0, 0)))
        return jnp.pad(t[:, :, :-1], ((0, 0), (0, 0), (1, 0), (0, 0)))

    taps = {0: ((1, 0), (3, -1)), 1: ((2, 0), (0, 1))}   # (kernel_tap, shift)

    phase_rows = []
    for py in (0, 1):
        row = []
        for px in (0, 1):
            acc = jnp.zeros((B, H, W, Cout), jnp.float32)
            for ky, sy in taps[py]:
                for kx, sx in taps[px]:
                    acc = acc + shift_x(shift_y(C[:, :, :, ky, kx, :], sy), sx)
            row.append(acc)
        phase_rows.append(jnp.stack(row, axis=3))        # (B, H, W, 2, Cout)
    y6 = jnp.stack(phase_rows, axis=2)                   # (B, H, 2, W, 2, Cout)
    return y6.reshape(B, 2 * H, 2 * W, Cout)


def _bn_scale_shift(y2d, gamma, beta):
    """Training-mode BatchNorm folded to per-channel scale/shift (f32)."""
    M = y2d.shape[0]
    s, ss = pallas_channel_stats(y2d)
    mean = s[0] / M
    var = jnp.maximum(ss[0] / M - mean * mean, 0.0)      # biased variance
    scale = gamma * jax.lax.rsqrt(var + _BN_EPS)
    shift = beta - mean * scale
    return scale, shift


# --------------------------------------------------------------------------
# Generator forward
# --------------------------------------------------------------------------
def generator_forward(wp, z, labels):
    # TODO(synk): embedding lookup is an XLA gather, not a Pallas kernel.
    emb = wp["emb"][labels]                               # (B, n_classes)
    h = jnp.concatenate([emb, z], axis=1)                 # (B, 138)
    B = h.shape[0]

    # up1: ConvTranspose2d(138,128,k=4,s=1,p=0) on a 1x1 input == matmul.
    y = pallas_matmul(h.astype(jnp.bfloat16), wp["w1"]).reshape(B, 4, 4, 128)
    H, W, Cin = 4, 4, 128

    # (conv weight, BN params of the *input* activation, Cout)
    layers = [("w2", "g1", "b1", 64),
              ("w3", "g2", "b2", 32),
              ("w4", "g3", "b3", 16),
              ("w5", "g4", "b4", 3)]

    for wk, gk, bk, cout in layers:
        M = B * H * W
        y2d = y.reshape(M, Cin)
        scale, shift = _bn_scale_shift(y2d, wp[gk], wp[bk])
        # Fused BN+ReLU prologue + bf16 matmul; output is lane-dense (16*Cout).
        c = pallas_bn_relu_matmul(y2d, scale, shift, wp[wk])   # (M, 16*Cout)
        y = _col2im_k4s2p1(c, B, H, W, cout)
        H, W, Cin = 2 * H, 2 * W, cout

    # Final Tanh on a lane-dense (rows, 128) view of the (B,64,64,3) output.
    flat = y.reshape(-1, 128)                              # B*64*64*3 % 128 == 0
    y = pallas_tanh(flat).reshape(B, 64, 64, 3)
    return jnp.transpose(y, (0, 3, 1, 2))                  # NCHW (B, 3, 64, 64)


# --------------------------------------------------------------------------
# Parameter init (matches __init__ + weights_init) and one-time weight prep.
# --------------------------------------------------------------------------
def init_params(key, n_classes):
    ks = jax.random.split(key, 10)
    p = {}
    p["emb"] = jax.random.normal(ks[0], (n_classes, n_classes), jnp.float32)
    p["w1"] = 0.02 * jax.random.normal(ks[1], (138, 128, 4, 4), jnp.float32)
    p["w2"] = 0.02 * jax.random.normal(ks[2], (128, 64, 4, 4), jnp.float32)
    p["w3"] = 0.02 * jax.random.normal(ks[3], (64, 32, 4, 4), jnp.float32)
    p["w4"] = 0.02 * jax.random.normal(ks[4], (32, 16, 4, 4), jnp.float32)
    p["w5"] = 0.02 * jax.random.normal(ks[5], (16, 3, 4, 4), jnp.float32)
    for i, c in zip((1, 2, 3, 4), (128, 64, 32, 16)):
        p[f"g{i}"] = 1.0 + 0.02 * jax.random.normal(ks[5 + i], (c,), jnp.float32)
        p[f"b{i}"] = jnp.zeros((c,), jnp.float32)
    return p


def prepare_params(raw):
    """Precompute matmul-layout bf16 weights once (outside the forward)."""
    wp = {"emb": raw["emb"]}
    for name in ("w1", "w2", "w3", "w4", "w5"):
        w = raw[name]                                      # (Cin, Cout, 4, 4)
        cin, cout = w.shape[0], w.shape[1]
        # scatter layout: W[ci, (ky*4+kx)*Cout + co] = w[ci, co, ky, kx]
        wm = jnp.transpose(w, (0, 2, 3, 1)).reshape(cin, 16 * cout)
        wp[name] = wm.astype(jnp.bfloat16)
    for i in (1, 2, 3, 4):
        wp[f"g{i}"] = raw[f"g{i}"]
        wp[f"b{i}"] = raw[f"b{i}"]
    return wp


if __name__ == "__main__":
    n_classes = 10          # z dim = 138 - n_classes = 128 (architecture-implied)
    batch = 2
    key = jax.random.PRNGKey(0)
    kp, kz, kl = jax.random.split(key, 3)

    raw_params = init_params(kp, n_classes)
    wparams = prepare_params(raw_params)
    z = jax.random.normal(kz, (batch, 138 - n_classes), jnp.float32)
    labels = jax.random.randint(kl, (batch,), 0, n_classes, jnp.int32)

    fwd = jax.jit(generator_forward)
    out = jax.block_until_ready(fwd(wparams, z, labels))

    assert out.shape == (batch, 3, 64, 64), out.shape
    assert out.dtype == jnp.float32
    assert bool(jnp.all(jnp.isfinite(out)))
    assert bool(jnp.max(jnp.abs(out)) <= 1.0 + 1e-6)   # tanh range
    print("KERNEL_OK")
</pallas_src>

<mosaic_0001>
module attributes {stable_mosaic.version = 11 : i64} {
  func.func @_matmul_kernel(%arg0: i32, %arg1: memref<2x138xbf16, #tpu.memory_space<vmem>>, %arg2: memref<138x2048xbf16, #tpu.memory_space<vmem>>, %arg3: memref<2x2048xf32, #tpu.memory_space<vmem>>) attributes {dimension_semantics = [#tpu.dimension_semantics<parallel>], iteration_bounds = array<i64: 1>, scalar_prefetch = 0 : i64, scratch_operands = 0 : i64, tpu.core_type = #tpu.core_type<tc>, window_params = [{transform_indices = @transform_0, window_bounds = array<i64: 2, 138>}, {pipeline_mode = #tpu.pipeline_mode<synchronous>, transform_indices = @transform_1, window_bounds = array<i64: 138, 2048>}, {transform_indices = @transform_2, window_bounds = array<i64: 2, 2048>}]} {
    %c0 = arith.constant 0 : index
    %c0_0 = arith.constant 0 : index
    %0 = vector.load %arg1[%c0, %c0_0] : memref<2x138xbf16, #tpu.memory_space<vmem>>, vector<2x138xbf16>
    %c0_1 = arith.constant 0 : index
    %c0_2 = arith.constant 0 : index
    %1 = vector.load %arg2[%c0_1, %c0_2] : memref<138x2048xbf16, #tpu.memory_space<vmem>>, vector<138x2048xbf16>
    %cst = arith.constant dense<0.000000e+00> : vector<2x2048xf32>
    %2 = tpu.matmul %0, %1, %cst {dimension_numbers = #tpu.dot_dimension_numbers<[1], [0], [0], [1], [0, 0, 1, 1], [], []>} : vector<2x138xbf16>, vector<138x2048xbf16>, vector<2x2048xf32> -> vector<2x2048xf32>
    %c0_3 = arith.constant 0 : index
    %c0_4 = arith.constant 0 : index
    %3 = vector.load %arg3[%c0_3, %c0_4] : memref<2x2048xf32, #tpu.memory_space<vmem>>, vector<2x2048xf32>
    tpu.vector_store %arg3[%c0_3, %c0_4], %2 {strides = array<i32>} : memref<2x2048xf32, #tpu.memory_space<vmem>>, vector<2x2048xf32>,
    return
  }
  func.func @transform_0(%arg0: i32) -> (i32, i32) {
    %c0_i32 = arith.constant 0 : i32
    %c0_i32_0 = arith.constant 0 : i32
    return %arg0, %c0_i32 : i32, i32
  }
  func.func @transform_1(%arg0: i32) -> (i32, i32) {
    %c0_i32 = arith.constant 0 : i32
    %c0_i32_0 = arith.constant 0 : i32
    %c0_i32_1 = arith.constant 0 : i32
    return %c0_i32, %c0_i32_0 : i32, i32
  }
  func.func @transform_2(%arg0: i32) -> (i32, i32) {
    %c0_i32 = arith.constant 0 : i32
    %c0_i32_0 = arith.constant 0 : i32
    return %arg0, %c0_i32 : i32, i32
  }
}

module attributes {stable_mosaic.version = 11 : i64} {
  func.func @_stats_kernel(%arg0: i32, %arg1: memref<32x128xf32, #tpu.memory_space<vmem>>, %arg2: memref<1x128xf32, #tpu.memory_space<vmem>>, %arg3: memref<1x128xf32, #tpu.memory_space<vmem>>) attributes {dimension_semantics = [#tpu.dimension_semantics<arbitrary>], iteration_bounds = array<i64: 1>, scalar_prefetch = 0 : i64, scratch_operands = 0 : i64, tpu.core_type = #tpu.core_type<tc>, window_params = [{transform_indices = @transform_0, window_bounds = array<i64: 32, 128>}, {pipeline_mode = #tpu.pipeline_mode<synchronous>, transform_indices = @transform_1, window_bounds = array<i64: 1, 128>}, {pipeline_mode = #tpu.pipeline_mode<synchronous>, transform_indices = @transform_2, window_bounds = array<i64: 1, 128>}]} {
    %c0_i32 = arith.constant 0 : i32
    %0 = arith.cmpi eq, %arg0, %c0_i32 : i32
    %1 = arith.extui %0 : i1 to i32
    %c0_i32_0 = arith.constant 0 : i32
    %2 = arith.cmpi ne, %1, %c0_i32_0 : i32
    scf.if %2 {
      %cst_11 = arith.constant 0.000000e+00 : f32
      %15 = vector.broadcast %cst_11 : f32 to vector<1x128xf32>
      %c0_12 = arith.constant 0 : index
      %c0_13 = arith.constant 0 : index
      %16 = vector.load %arg2[%c0_12, %c0_13] : memref<1x128xf32, #tpu.memory_space<vmem>>, vector<1x128xf32>
      tpu.vector_store %arg2[%c0_12, %c0_13], %15 {strides = array<i32>} : memref<1x128xf32, #tpu.memory_space<vmem>>, vector<1x128xf32>,
      %cst_14 = arith.constant 0.000000e+00 : f32
      %17 = vector.broadcast %cst_14 : f32 to vector<1x128xf32>
      %c0_15 = arith.constant 0 : index
      %c0_16 = arith.constant 0 : index
      %18 = vector.load %arg3[%c0_15, %c0_16] : memref<1x128xf32, #tpu.memory_space<vmem>>, vector<1x128xf32>
      tpu.vector_store %arg3[%c0_15, %c0_16], %17 {strides = array<i32>} : memref<1x128xf32, #tpu.memory_space<vmem>>, vector<1x128xf32>,
    } else {
    }
    %c0 = arith.constant 0 : index
    %c0_1 = arith.constant 0 : index
    %3 = vector.load %arg1[%c0, %c0_1] : memref<32x128xf32, #tpu.memory_space<vmem>>, vector<32x128xf32>
    %c0_2 = arith.constant 0 : index
    %c0_3 = arith.constant 0 : index
    %4 = vector.load %arg2[%c0_2, %c0_3] : memref<1x128xf32, #tpu.memory_space<vmem>>, vector<1x128xf32>
    %cst = arith.constant dense<0.000000e+00> : vector<128xf32>
    %5 = vector.multi_reduction <add>, %3, %cst [0] : vector<32x128xf32> to vector<128xf32>
    %6 = vector.shape_cast %5 : vector<128xf32> to vector<1x128xf32>
    %7 = arith.addf %4, %6 : vector<1x128xf32>
    %c0_4 = arith.constant 0 : index
    %c0_5 = arith.constant 0 : index
    %8 = vector.load %arg2[%c0_4, %c0_5] : memref<1x128xf32, #tpu.memory_space<vmem>>, vector<1x128xf32>
    tpu.vector_store %arg2[%c0_4, %c0_5], %7 {strides = array<i32>} : memref<1x128xf32, #tpu.memory_space<vmem>>, vector<1x128xf32>,
    %c0_6 = arith.constant 0 : index
    %c0_7 = arith.constant 0 : index
    %9 = vector.load %arg3[%c0_6, %c0_7] : memref<1x128xf32, #tpu.memory_space<vmem>>, vector<1x128xf32>
    %10 = arith.mulf %3, %3 : vector<32x128xf32>
    %cst_8 = arith.constant dense<0.000000e+00> : vector<128xf32>
    %11 = vector.multi_reduction <add>, %10, %cst_8 [0] : vector<32x128xf32> to vector<128xf32>
    %12 = vector.shape_cast %11 : vector<128xf32> to vector<1x128xf32>
    %13 = arith.addf %9, %12 : vector<1x128xf32>
    %c0_9 = arith.constant 0 : index
    %c0_10 = arith.constant 0 : index
    %14 = vector.load %arg3[%c0_9, %c0_10] : memref<1x128xf32, #tpu.memory_space<vmem>>, vector<1x128xf32>
    tpu.vector_store %arg3[%c0_9, %c0_10], %13 {strides = array<i32>} : memref<1x128xf32, #tpu.memory_space<vmem>>, vector<1x128xf32>,
    return
  }
  func.func @transform_0(%arg0: i32) -> (i32, i32) {
    %c0_i32 = arith.constant 0 : i32
    %c0_i32_0 = arith.constant 0 : i32
    return %arg0, %c0_i32 : i32, i32
  }
  func.func @transform_1(%arg0: i32) -> (i32, i32) {
    %c0_i32 = arith.constant 0 : i32
    %c0_i32_0 = arith.constant 0 : i32
    %c0_i32_1 = arith.constant 0 : i32
    return %c0_i32, %c0_i32_0 : i32, i32
  }
  func.func @transform_2(%arg0: i32) -> (i32, i32) {
    %c0_i32 = arith.constant 0 : i32
    %c0_i32_0 = arith.constant 0 : i32
    %c0_i32_1 = arith.constant 0 : i32
    return %c0_i32, %c0_i32_0 : i32, i32
  }
}

module attributes {stable_mosaic.version = 11 : i64} {
  func.func @_bn_relu_matmul_kernel(%arg0: i32, %arg1: memref<32x128xf32, #tpu.memory_space<vmem>>, %arg2: memref<1x128xf32, #tpu.memory_space<vmem>>, %arg3: memref<1x128xf32, #tpu.memory_space<vmem>>, %arg4: memref<128x1024xbf16, #tpu.memory_space<vmem>>, %arg5: memref<32x1024xf32, #tpu.memory_space<vmem>>) attributes {dimension_semantics = [#tpu.dimension_semantics<parallel>], iteration_bounds = array<i64: 1>, scalar_prefetch = 0 : i64, scratch_operands = 0 : i64, tpu.core_type = #tpu.core_type<tc>, window_params = [{transform_indices = @transform_0, window_bounds = array<i64: 32, 128>}, {pipeline_mode = #tpu.pipeline_mode<synchronous>, transform_indices = @transform_1, window_bounds = array<i64: 1, 128>}, {pipeline_mode = #tpu.pipeline_mode<synchronous>, transform_indices = @transform_2, window_bounds = array<i64: 1, 128>}, {pipeline_mode = #tpu.pipeline_mode<synchronous>, transform_indices = @transform_3, window_bounds = array<i64: 128, 1024>}, {transform_indices = @transform_4, window_bounds = array<i64: 32, 1024>}]} {
    %c0 = arith.constant 0 : index
    %c0_0 = arith.constant 0 : index
    %0 = vector.load %arg1[%c0, %c0_0] : memref<32x128xf32, #tpu.memory_space<vmem>>, vector<32x128xf32>
    %c0_1 = arith.constant 0 : index
    %c0_2 = arith.constant 0 : index
    %1 = vector.load %arg2[%c0_1, %c0_2] : memref<1x128xf32, #tpu.memory_space<vmem>>, vector<1x128xf32>
    %2 = vector.broadcast %1 : vector<1x128xf32> to vector<32x128xf32>
    %3 = arith.mulf %0, %2 : vector<32x128xf32>
    %c0_3 = arith.constant 0 : index
    %c0_4 = arith.constant 0 : index
    %4 = vector.load %arg3[%c0_3, %c0_4] : memref<1x128xf32, #tpu.memory_space<vmem>>, vector<1x128xf32>
    %5 = vector.broadcast %4 : vector<1x128xf32> to vector<32x128xf32>
    %6 = arith.addf %3, %5 : vector<32x128xf32>
    %cst = arith.constant 0.000000e+00 : f32
    %7 = vector.broadcast %cst : f32 to vector<32x128xf32>
    %8 = arith.maximumf %6, %7 : vector<32x128xf32>
    %9 = arith.truncf %8 : vector<32x128xf32> to vector<32x128xbf16>
    %c0_5 = arith.constant 0 : index
    %c0_6 = arith.constant 0 : index
    %10 = vector.load %arg4[%c0_5, %c0_6] : memref<128x1024xbf16, #tpu.memory_space<vmem>>, vector<128x1024xbf16>
    %cst_7 = arith.constant dense<0.000000e+00> : vector<32x1024xf32>
    %11 = tpu.matmul %9, %10, %cst_7 {dimension_numbers = #tpu.dot_dimension_numbers<[1], [0], [0], [1], [0, 0, 1, 1], [], []>} : vector<32x128xbf16>, vector<128x1024xbf16>, vector<32x1024xf32> -> vector<32x1024xf32>
    %c0_8 = arith.constant 0 : index
    %c0_9 = arith.constant 0 : index
    %12 = vector.load %arg5[%c0_8, %c0_9] : memref<32x1024xf32, #tpu.memory_space<vmem>>, vector<32x1024xf32>
    tpu.vector_store %arg5[%c0_8, %c0_9], %11 {strides = array<i32>} : memref<32x1024xf32, #tpu.memory_space<vmem>>, vector<32x1024xf32>,
    return
  }
  func.func @transform_0(%arg0: i32) -> (i32, i32) {
    %c0_i32 = arith.constant 0 : i32
    %c0_i32_0 = arith.constant 0 : i32
    return %arg0, %c0_i32 : i32, i32
  }
  func.func @transform_1(%arg0: i32) -> (i32, i32) {
    %c0_i32 = arith.constant 0 : i32
    %c0_i32_0 = arith.constant 0 : i32
    %c0_i32_1 = arith.constant 0 : i32
    return %c0_i32, %c0_i32_0 : i32, i32
  }
  func.func @transform_2(%arg0: i32) -> (i32, i32) {
    %c0_i32 = arith.constant 0 : i32
    %c0_i32_0 = arith.constant 0 : i32
    %c0_i32_1 = arith.constant 0 : i32
    return %c0_i32, %c0_i32_0 : i32, i32
  }
  func.func @transform_3(%arg0: i32) -> (i32, i32) {
    %c0_i32 = arith.constant 0 : i32
    %c0_i32_0 = arith.constant 0 : i32
    %c0_i32_1 = arith.constant 0 : i32
    return %c0_i32, %c0_i32_0 : i32, i32
  }
  func.func @transform_4(%arg0: i32) -> (i32, i32) {
    %c0_i32 = arith.constant 0 : i32
    %c0_i32_0 = arith.constant 0 : i32
    return %arg0, %c0_i32 : i32, i32
  }
}

module attributes {stable_mosaic.version = 11 : i64} {
  func.func @_stats_kernel(%arg0: i32, %arg1: memref<128x64xf32, #tpu.memory_space<vmem>>, %arg2: memref<1x64xf32, #tpu.memory_space<vmem>>, %arg3: memref<1x64xf32, #tpu.memory_space<vmem>>) attributes {dimension_semantics = [#tpu.dimension_semantics<arbitrary>], iteration_bounds = array<i64: 1>, scalar_prefetch = 0 : i64, scratch_operands = 0 : i64, tpu.core_type = #tpu.core_type<tc>, window_params = [{transform_indices = @transform_0, window_bounds = array<i64: 128, 64>}, {pipeline_mode = #tpu.pipeline_mode<synchronous>, transform_indices = @transform_1, window_bounds = array<i64: 1, 64>}, {pipeline_mode = #tpu.pipeline_mode<synchronous>, transform_indices = @transform_2, window_bounds = array<i64: 1, 64>}]} {
    %c0_i32 = arith.constant 0 : i32
    %0 = arith.cmpi eq, %arg0, %c0_i32 : i32
    %1 = arith.extui %0 : i1 to i32
    %c0_i32_0 = arith.constant 0 : i32
    %2 = arith.cmpi ne, %1, %c0_i32_0 : i32
    scf.if %2 {
      %cst_11 = arith.constant 0.000000e+00 : f32
      %15 = vector.broadcast %cst_11 : f32 to vector<1x64xf32>
      %c0_12 = arith.constant 0 : index
      %c0_13 = arith.constant 0 : index
      %16 = vector.load %arg2[%c0_12, %c0_13] : memref<1x64xf32, #tpu.memory_space<vmem>>, vector<1x64xf32>
      tpu.vector_store %arg2[%c0_12, %c0_13], %15 {strides = array<i32>} : memref<1x64xf32, #tpu.memory_space<vmem>>, vector<1x64xf32>,
      %cst_14 = arith.constant 0.000000e+00 : f32
      %17 = vector.broadcast %cst_14 : f32 to vector<1x64xf32>
      %c0_15 = arith.constant 0 : index
      %c0_16 = arith.constant 0 : index
      %18 = vector.load %arg3[%c0_15, %c0_16] : memref<1x64xf32, #tpu.memory_space<vmem>>, vector<1x64xf32>
      tpu.vector_store %arg3[%c0_15, %c0_16], %17 {strides = array<i32>} : memref<1x64xf32, #tpu.memory_space<vmem>>, vector<1x64xf32>,
    } else {
    }
    %c0 = arith.constant 0 : index
    %c0_1 = arith.constant 0 : index
    %3 = vector.load %arg1[%c0, %c0_1] : memref<128x64xf32, #tpu.memory_space<vmem>>, vector<128x64xf32>
    %c0_2 = arith.constant 0 : index
    %c0_3 = arith.constant 0 : index
    %4 = vector.load %arg2[%c0_2, %c0_3] : memref<1x64xf32, #tpu.memory_space<vmem>>, vector<1x64xf32>
    %cst = arith.constant dense<0.000000e+00> : vector<64xf32>
    %5 = vector.multi_reduction <add>, %3, %cst [0] : vector<128x64xf32> to vector<64xf32>
    %6 = vector.shape_cast %5 : vector<64xf32> to vector<1x64xf32>
    %7 = arith.addf %4, %6 : vector<1x64xf32>
    %c0_4 = arith.constant 0 : index
    %c0_5 = arith.constant 0 : index
    %8 = vector.load %arg2[%c0_4, %c0_5] : memref<1x64xf32, #tpu.memory_space<vmem>>, vector<1x64xf32>
    tpu.vector_store %arg2[%c0_4, %c0_5], %7 {strides = array<i32>} : memref<1x64xf32, #tpu.memory_space<vmem>>, vector<1x64xf32>,
    %c0_6 = arith.constant 0 : index
    %c0_7 = arith.constant 0 : index
    %9 = vector.load %arg3[%c0_6, %c0_7] : memref<1x64xf32, #tpu.memory_space<vmem>>, vector<1x64xf32>
    %10 = arith.mulf %3, %3 : vector<128x64xf32>
    %cst_8 = arith.constant dense<0.000000e+00> : vector<64xf32>
    %11 = vector.multi_reduction <add>, %10, %cst_8 [0] : vector<128x64xf32> to vector<64xf32>
    %12 = vector.shape_cast %11 : vector<64xf32> to vector<1x64xf32>
    %13 = arith.addf %9, %12 : vector<1x64xf32>
    %c0_9 = arith.constant 0 : index
    %c0_10 = arith.constant 0 : index
    %14 = vector.load %arg3[%c0_9, %c0_10] : memref<1x64xf32, #tpu.memory_space<vmem>>, vector<1x64xf32>
    tpu.vector_store %arg3[%c0_9, %c0_10], %13 {strides = array<i32>} : memref<1x64xf32, #tpu.memory_space<vmem>>, vector<1x64xf32>,
    return
  }
  func.func @transform_0(%arg0: i32) -> (i32, i32) {
    %c0_i32 = arith.constant 0 : i32
    %c0_i32_0 = arith.constant 0 : i32
    return %arg0, %c0_i32 : i32, i32
  }
  func.func @transform_1(%arg0: i32) -> (i32, i32) {
    %c0_i32 = arith.constant 0 : i32
    %c0_i32_0 = arith.constant 0 : i32
    %c0_i32_1 = arith.constant 0 : i32
    return %c0_i32, %c0_i32_0 : i32, i32
  }
  func.func @transform_2(%arg0: i32) -> (i32, i32) {
    %c0_i32 = arith.constant 0 : i32
    %c0_i32_0 = arith.constant 0 : i32
    %c0_i32_1 = arith.constant 0 : i32
    return %c0_i32, %c0_i32_0 : i32, i32
  }
}

module attributes {stable_mosaic.version = 11 : i64} {
  func.func @_bn_relu_matmul_kernel(%arg0: i32, %arg1: memref<128x64xf32, #tpu.memory_space<vmem>>, %arg2: memref<1x64xf32, #tpu.memory_space<vmem>>, %arg3: memref<1x64xf32, #tpu.memory_space<vmem>>, %arg4: memref<64x512xbf16, #tpu.memory_space<vmem>>, %arg5: memref<128x512xf32, #tpu.memory_space<vmem>>) attributes {dimension_semantics = [#tpu.dimension_semantics<parallel>], iteration_bounds = array<i64: 1>, scalar_prefetch = 0 : i64, scratch_operands = 0 : i64, tpu.core_type = #tpu.core_type<tc>, window_params = [{transform_indices = @transform_0, window_bounds = array<i64: 128, 64>}, {pipeline_mode = #tpu.pipeline_mode<synchronous>, transform_indices = @transform_1, window_bounds = array<i64: 1, 64>}, {pipeline_mode = #tpu.pipeline_mode<synchronous>, transform_indices = @transform_2, window_bounds = array<i64: 1, 64>}, {pipeline_mode = #tpu.pipeline_mode<synchronous>, transform_indices = @transform_3, window_bounds = array<i64: 64, 512>}, {transform_indices = @transform_4, window_bounds = array<i64: 128, 512>}]} {
    %c0 = arith.constant 0 : index
    %c0_0 = arith.constant 0 : index
    %0 = vector.load %arg1[%c0, %c0_0] : memref<128x64xf32, #tpu.memory_space<vmem>>, vector<128x64xf32>
    %c0_1 = arith.constant 0 : index
    %c0_2 = arith.constant 0 : index
    %1 = vector.load %arg2[%c0_1, %c0_2] : memref<1x64xf32, #tpu.memory_space<vmem>>, vector<1x64xf32>
    %2 = vector.broadcast %1 : vector<1x64xf32> to vector<128x64xf32>
    %3 = arith.mulf %0, %2 : vector<128x64xf32>
    %c0_3 = arith.constant 0 : index
    %c0_4 = arith.constant 0 : index
    %4 = vector.load %arg3[%c0_3, %c0_4] : memref<1x64xf32, #tpu.memory_space<vmem>>, vector<1x64xf32>
    %5 = vector.broadcast %4 : vector<1x64xf32> to vector<128x64xf32>
    %6 = arith.addf %3, %5 : vector<128x64xf32>
    %cst = arith.constant 0.000000e+00 : f32
    %7 = vector.broadcast %cst : f32 to vector<128x64xf32>
    %8 = arith.maximumf %6, %7 : vector<128x64xf32>
    %9 = arith.truncf %8 : vector<128x64xf32> to vector<128x64xbf16>
    %c0_5 = arith.constant 0 : index
    %c0_6 = arith.constant 0 : index
    %10 = vector.load %arg4[%c0_5, %c0_6] : memref<64x512xbf16, #tpu.memory_space<vmem>>, vector<64x512xbf16>
    %cst_7 = arith.constant dense<0.000000e+00> : vector<128x512xf32>
    %11 = tpu.matmul %9, %10, %cst_7 {dimension_numbers = #tpu.dot_dimension_numbers<[1], [0], [0], [1], [0, 0, 1, 1], [], []>} : vector<128x64xbf16>, vector<64x512xbf16>, vector<128x512xf32> -> vector<128x512xf32>
    %c0_8 = arith.constant 0 : index
    %c0_9 = arith.constant 0 : index
    %12 = vector.load %arg5[%c0_8, %c0_9] : memref<128x512xf32, #tpu.memory_space<vmem>>, vector<128x512xf32>
    tpu.vector_store %arg5[%c0_8, %c0_9], %11 {strides = array<i32>} : memref<128x512xf32, #tpu.memory_space<vmem>>, vector<128x512xf32>,
    return
  }
  func.func @transform_0(%arg0: i32) -> (i32, i32) {
    %c0_i32 = arith.constant 0 : i32
    %c0_i32_0 = arith.constant 0 : i32
    return %arg0, %c0_i32 : i32, i32
  }
  func.func @transform_1(%arg0: i32) -> (i32, i32) {
    %c0_i32 = arith.constant 0 : i32
    %c0_i32_0 = arith.constant 0 : i32
    %c0_i32_1 = arith.constant 0 : i32
    return %c0_i32, %c0_i32_0 : i32, i32
  }
  func.func @transform_2(%arg0: i32) -> (i32, i32) {
    %c0_i32 = arith.constant 0 : i32
    %c0_i32_0 = arith.constant 0 : i32
    %c0_i32_1 = arith.constant 0 : i32
    return %c0_i32, %c0_i32_0 : i32, i32
  }
  func.func @transform_3(%arg0: i32) -> (i32, i32) {
    %c0_i32 = arith.constant 0 : i32
    %c0_i32_0 = arith.constant 0 : i32
    %c0_i32_1 = arith.constant 0 : i32
    return %c0_i32, %c0_i32_0 : i32, i32
  }
  func.func @transform_4(%arg0: i32) -> (i32, i32) {
    %c0_i32 = arith.constant 0 : i32
    %c0_i32_0 = arith.constant 0 : i32
    return %arg0, %c0_i32 : i32, i32
  }
}

module attributes {stable_mosaic.version = 11 : i64} {
  func.func @_stats_kernel(%arg0: i32, %arg1: memref<512x32xf32, #tpu.memory_space<vmem>>, %arg2: memref<1x32xf32, #tpu.memory_space<vmem>>, %arg3: memref<1x32xf32, #tpu.memory_space<vmem>>) attributes {dimension_semantics = [#tpu.dimension_semantics<arbitrary>], iteration_bounds = array<i64: 1>, scalar_prefetch = 0 : i64, scratch_operands = 0 : i64, tpu.core_type = #tpu.core_type<tc>, window_params = [{transform_indices = @transform_0, window_bounds = array<i64: 512, 32>}, {pipeline_mode = #tpu.pipeline_mode<synchronous>, transform_indices = @transform_1, window_bounds = array<i64: 1, 32>}, {pipeline_mode = #tpu.pipeline_mode<synchronous>, transform_indices = @transform_2, window_bounds = array<i64: 1, 32>}]} {
    %c0_i32 = arith.constant 0 : i32
    %0 = arith.cmpi eq, %arg0, %c0_i32 : i32
    %1 = arith.extui %0 : i1 to i32
    %c0_i32_0 = arith.constant 0 : i32
    %2 = arith.cmpi ne, %1, %c0_i32_0 : i32
    scf.if %2 {
      %cst_11 = arith.constant 0.000000e+00 : f32
      %15 = vector.broadcast %cst_11 : f32 to vector<1x32xf32>
      %c0_12 = arith.constant 0 : index
      %c0_13 = arith.constant 0 : index
      %16 = vector.load %arg2[%c0_12, %c0_13] : memref<1x32xf32, #tpu.memory_space<vmem>>, vector<1x32xf32>
      tpu.vector_store %arg2[%c0_12, %c0_13], %15 {strides = array<i32>} : memref<1x32xf32, #tpu.memory_space<vmem>>, vector<1x32xf32>,
      %cst_14 = arith.constant 0.000000e+00 : f32
      %17 = vector.broadcast %cst_14 : f32 to vector<1x32xf32>
      %c0_15 = arith.constant 0 : index
      %c0_16 = arith.constant 0 : index
      %18 = vector.load %arg3[%c0_15, %c0_16] : memref<1x32xf32, #tpu.memory_space<vmem>>, vector<1x32xf32>
      tpu.vector_store %arg3[%c0_15, %c0_16], %17 {strides = array<i32>} : memref<1x32xf32, #tpu.memory_space<vmem>>, vector<1x32xf32>,
    } else {
    }
    %c0 = arith.constant 0 : index
    %c0_1 = arith.constant 0 : index
    %3 = vector.load %arg1[%c0, %c0_1] : memref<512x32xf32, #tpu.memory_space<vmem>>, vector<512x32xf32>
    %c0_2 = arith.constant 0 : index
    %c0_3 = arith.constant 0 : index
    %4 = vector.load %arg2[%c0_2, %c0_3] : memref<1x32xf32, #tpu.memory_space<vmem>>, vector<1x32xf32>
    %cst = arith.constant dense<0.000000e+00> : vector<32xf32>
    %5 = vector.multi_reduction <add>, %3, %cst [0] : vector<512x32xf32> to vector<32xf32>
    %6 = vector.shape_cast %5 : vector<32xf32> to vector<1x32xf32>
    %7 = arith.addf %4, %6 : vector<1x32xf32>
    %c0_4 = arith.constant 0 : index
    %c0_5 = arith.constant 0 : index
    %8 = vector.load %arg2[%c0_4, %c0_5] : memref<1x32xf32, #tpu.memory_space<vmem>>, vector<1x32xf32>
    tpu.vector_store %arg2[%c0_4, %c0_5], %7 {strides = array<i32>} : memref<1x32xf32, #tpu.memory_space<vmem>>, vector<1x32xf32>,
    %c0_6 = arith.constant 0 : index
    %c0_7 = arith.constant 0 : index
    %9 = vector.load %arg3[%c0_6, %c0_7] : memref<1x32xf32, #tpu.memory_space<vmem>>, vector<1x32xf32>
    %10 = arith.mulf %3, %3 : vector<512x32xf32>
    %cst_8 = arith.constant dense<0.000000e+00> : vector<32xf32>
    %11 = vector.multi_reduction <add>, %10, %cst_8 [0] : vector<512x32xf32> to vector<32xf32>
    %12 = vector.shape_cast %11 : vector<32xf32> to vector<1x32xf32>
    %13 = arith.addf %9, %12 : vector<1x32xf32>
    %c0_9 = arith.constant 0 : index
    %c0_10 = arith.constant 0 : index
    %14 = vector.load %arg3[%c0_9, %c0_10] : memref<1x32xf32, #tpu.memory_space<vmem>>, vector<1x32xf32>
    tpu.vector_store %arg3[%c0_9, %c0_10], %13 {strides = array<i32>} : memref<1x32xf32, #tpu.memory_space<vmem>>, vector<1x32xf32>,
    return
  }
  func.func @transform_0(%arg0: i32) -> (i32, i32) {
    %c0_i32 = arith.constant 0 : i32
    %c0_i32_0 = arith.constant 0 : i32
    return %arg0, %c0_i32 : i32, i32
  }
  func.func @transform_1(%arg0: i32) -> (i32, i32) {
    %c0_i32 = arith.constant 0 : i32
    %c0_i32_0 = arith.constant 0 : i32
    %c0_i32_1 = arith.constant 0 : i32
    return %c0_i32, %c0_i32_0 : i32, i32
  }
  func.func @transform_2(%arg0: i32) -> (i32, i32) {
    %c0_i32 = arith.constant 0 : i32
    %c0_i32_0 = arith.constant 0 : i32
    %c0_i32_1 = arith.constant 0 : i32
    return %c0_i32, %c0_i32_0 : i32, i32
  }
}

module attributes {stable_mosaic.version = 11 : i64} {
  func.func @_bn_relu_matmul_kernel(%arg0: i32, %arg1: memref<512x32xf32, #tpu.memory_space<vmem>>, %arg2: memref<1x32xf32, #tpu.memory_space<vmem>>, %arg3: memref<1x32xf32, #tpu.memory_space<vmem>>, %arg4: memref<32x256xbf16, #tpu.memory_space<vmem>>, %arg5: memref<512x256xf32, #tpu.memory_space<vmem>>) attributes {dimension_semantics = [#tpu.dimension_semantics<parallel>], iteration_bounds = array<i64: 1>, scalar_prefetch = 0 : i64, scratch_operands = 0 : i64, tpu.core_type = #tpu.core_type<tc>, window_params = [{transform_indices = @transform_0, window_bounds = array<i64: 512, 32>}, {pipeline_mode = #tpu.pipeline_mode<synchronous>, transform_indices = @transform_1, window_bounds = array<i64: 1, 32>}, {pipeline_mode = #tpu.pipeline_mode<synchronous>, transform_indices = @transform_2, window_bounds = array<i64: 1, 32>}, {pipeline_mode = #tpu.pipeline_mode<synchronous>, transform_indices = @transform_3, window_bounds = array<i64: 32, 256>}, {transform_indices = @transform_4, window_bounds = array<i64: 512, 256>}]} {
    %c0 = arith.constant 0 : index
    %c0_0 = arith.constant 0 : index
    %0 = vector.load %arg1[%c0, %c0_0] : memref<512x32xf32, #tpu.memory_space<vmem>>, vector<512x32xf32>
    %c0_1 = arith.constant 0 : index
    %c0_2 = arith.constant 0 : index
    %1 = vector.load %arg2[%c0_1, %c0_2] : memref<1x32xf32, #tpu.memory_space<vmem>>, vector<1x32xf32>
    %2 = vector.broadcast %1 : vector<1x32xf32> to vector<512x32xf32>
    %3 = arith.mulf %0, %2 : vector<512x32xf32>
    %c0_3 = arith.constant 0 : index
    %c0_4 = arith.constant 0 : index
    %4 = vector.load %arg3[%c0_3, %c0_4] : memref<1x32xf32, #tpu.memory_space<vmem>>, vector<1x32xf32>
    %5 = vector.broadcast %4 : vector<1x32xf32> to vector<512x32xf32>
    %6 = arith.addf %3, %5 : vector<512x32xf32>
    %cst = arith.constant 0.000000e+00 : f32
    %7 = vector.broadcast %cst : f32 to vector<512x32xf32>
    %8 = arith.maximumf %6, %7 : vector<512x32xf32>
    %9 = arith.truncf %8 : vector<512x32xf32> to vector<512x32xbf16>
    %c0_5 = arith.constant 0 : index
    %c0_6 = arith.constant 0 : index
    %10 = vector.load %arg4[%c0_5, %c0_6] : memref<32x256xbf16, #tpu.memory_space<vmem>>, vector<32x256xbf16>
    %cst_7 = arith.constant dense<0.000000e+00> : vector<512x256xf32>
    %11 = tpu.matmul %9, %10, %cst_7 {dimension_numbers = #tpu.dot_dimension_numbers<[1], [0], [0], [1], [0, 0, 1, 1], [], []>} : vector<512x32xbf16>, vector<32x256xbf16>, vector<512x256xf32> -> vector<512x256xf32>
    %c0_8 = arith.constant 0 : index
    %c0_9 = arith.constant 0 : index
    %12 = vector.load %arg5[%c0_8, %c0_9] : memref<512x256xf32, #tpu.memory_space<vmem>>, vector<512x256xf32>
    tpu.vector_store %arg5[%c0_8, %c0_9], %11 {strides = array<i32>} : memref<512x256xf32, #tpu.memory_space<vmem>>, vector<512x256xf32>,
    return
  }
  func.func @transform_0(%arg0: i32) -> (i32, i32) {
    %c0_i32 = arith.constant 0 : i32
    %c0_i32_0 = arith.constant 0 : i32
    return %arg0, %c0_i32 : i32, i32
  }
  func.func @transform_1(%arg0: i32) -> (i32, i32) {
    %c0_i32 = arith.constant 0 : i32
    %c0_i32_0 = arith.constant 0 : i32
    %c0_i32_1 = arith.constant 0 : i32
    return %c0_i32, %c0_i32_0 : i32, i32
  }
  func.func @transform_2(%arg0: i32) -> (i32, i32) {
    %c0_i32 = arith.constant 0 : i32
    %c0_i32_0 = arith.constant 0 : i32
    %c0_i32_1 = arith.constant 0 : i32
    return %c0_i32, %c0_i32_0 : i32, i32
  }
  func.func @transform_3(%arg0: i32) -> (i32, i32) {
    %c0_i32 = arith.constant 0 : i32
    %c0_i32_0 = arith.constant 0 : i32
    %c0_i32_1 = arith.constant 0 : i32
    return %c0_i32, %c0_i32_0 : i32, i32
  }
  func.func @transform_4(%arg0: i32) -> (i32, i32) {
    %c0_i32 = arith.constant 0 : i32
    %c0_i32_0 = arith.constant 0 : i32
    return %arg0, %c0_i32 : i32, i32
  }
}

module attributes {stable_mosaic.version = 11 : i64} {
  func.func @_stats_kernel(%arg0: i32, %arg1: memref<512x16xf32, #tpu.memory_space<vmem>>, %arg2: memref<1x16xf32, #tpu.memory_space<vmem>>, %arg3: memref<1x16xf32, #tpu.memory_space<vmem>>) attributes {dimension_semantics = [#tpu.dimension_semantics<arbitrary>], iteration_bounds = array<i64: 4>, scalar_prefetch = 0 : i64, scratch_operands = 0 : i64, tpu.core_type = #tpu.core_type<tc>, window_params = [{transform_indices = @transform_0, window_bounds = array<i64: 512, 16>}, {pipeline_mode = #tpu.pipeline_mode<synchronous>, transform_indices = @transform_1, window_bounds = array<i64: 1, 16>}, {pipeline_mode = #tpu.pipeline_mode<synchronous>, transform_indices = @transform_2, window_bounds = array<i64: 1, 16>}]} {
    %c0_i32 = arith.constant 0 : i32
    %0 = arith.cmpi eq, %arg0, %c0_i32 : i32
    %1 = arith.extui %0 : i1 to i32
    %c0_i32_0 = arith.constant 0 : i32
    %2 = arith.cmpi ne, %1, %c0_i32_0 : i32
    scf.if %2 {
      %cst_11 = arith.constant 0.000000e+00 : f32
      %15 = vector.broadcast %cst_11 : f32 to vector<1x16xf32>
      %c0_12 = arith.constant 0 : index
      %c0_13 = arith.constant 0 : index
      %16 = vector.load %arg2[%c0_12, %c0_13] : memref<1x16xf32, #tpu.memory_space<vmem>>, vector<1x16xf32>
      tpu.vector_store %arg2[%c0_12, %c0_13], %15 {strides = array<i32>} : memref<1x16xf32, #tpu.memory_space<vmem>>, vector<1x16xf32>,
      %cst_14 = arith.constant 0.000000e+00 : f32
      %17 = vector.broadcast %cst_14 : f32 to vector<1x16xf32>
      %c0_15 = arith.constant 0 : index
      %c0_16 = arith.constant 0 : index
      %18 = vector.load %arg3[%c0_15, %c0_16] : memref<1x16xf32, #tpu.memory_space<vmem>>, vector<1x16xf32>
      tpu.vector_store %arg3[%c0_15, %c0_16], %17 {strides = array<i32>} : memref<1x16xf32, #tpu.memory_space<vmem>>, vector<1x16xf32>,
    } else {
    }
    %c0 = arith.constant 0 : index
    %c0_1 = arith.constant 0 : index
    %3 = vector.load %arg1[%c0, %c0_1] : memref<512x16xf32, #tpu.memory_space<vmem>>, vector<512x16xf32>
    %c0_2 = arith.constant 0 : index
    %c0_3 = arith.constant 0 : index
    %4 = vector.load %arg2[%c0_2, %c0_3] : memref<1x16xf32, #tpu.memory_space<vmem>>, vector<1x16xf32>
    %cst = arith.constant dense<0.000000e+00> : vector<16xf32>
    %5 = vector.multi_reduction <add>, %3, %cst [0] : vector<512x16xf32> to vector<16xf32>
    %6 = vector.shape_cast %5 : vector<16xf32> to vector<1x16xf32>
    %7 = arith.addf %4, %6 : vector<1x16xf32>
    %c0_4 = arith.constant 0 : index
    %c0_5 = arith.constant 0 : index
    %8 = vector.load %arg2[%c0_4, %c0_5] : memref<1x16xf32, #tpu.memory_space<vmem>>, vector<1x16xf32>
    tpu.vector_store %arg2[%c0_4, %c0_5], %7 {strides = array<i32>} : memref<1x16xf32, #tpu.memory_space<vmem>>, vector<1x16xf32>,
    %c0_6 = arith.constant 0 : index
    %c0_7 = arith.constant 0 : index
    %9 = vector.load %arg3[%c0_6, %c0_7] : memref<1x16xf32, #tpu.memory_space<vmem>>, vector<1x16xf32>
    %10 = arith.mulf %3, %3 : vector<512x16xf32>
    %cst_8 = arith.constant dense<0.000000e+00> : vector<16xf32>
    %11 = vector.multi_reduction <add>, %10, %cst_8 [0] : vector<512x16xf32> to vector<16xf32>
    %12 = vector.shape_cast %11 : vector<16xf32> to vector<1x16xf32>
    %13 = arith.addf %9, %12 : vector<1x16xf32>
    %c0_9 = arith.constant 0 : index
    %c0_10 = arith.constant 0 : index
    %14 = vector.load %arg3[%c0_9, %c0_10] : memref<1x16xf32, #tpu.memory_space<vmem>>, vector<1x16xf32>
    tpu.vector_store %arg3[%c0_9, %c0_10], %13 {strides = array<i32>} : memref<1x16xf32, #tpu.memory_space<vmem>>, vector<1x16xf32>,
    return
  }
  func.func @transform_0(%arg0: i32) -> (i32, i32) {
    %c0_i32 = arith.constant 0 : i32
    %c0_i32_0 = arith.constant 0 : i32
    return %arg0, %c0_i32 : i32, i32
  }
  func.func @transform_1(%arg0: i32) -> (i32, i32) {
    %c0_i32 = arith.constant 0 : i32
    %c0_i32_0 = arith.constant 0 : i32
    %c0_i32_1 = arith.constant 0 : i32
    return %c0_i32, %c0_i32_0 : i32, i32
  }
  func.func @transform_2(%arg0: i32) -> (i32, i32) {
    %c0_i32 = arith.constant 0 : i32
    %c0_i32_0 = arith.constant 0 : i32
    %c0_i32_1 = arith.constant 0 : i32
    return %c0_i32, %c0_i32_0 : i32, i32
  }
}

module attributes {stable_mosaic.version = 11 : i64} {
  func.func @_bn_relu_matmul_kernel(%arg0: i32, %arg1: memref<512x16xf32, #tpu.memory_space<vmem>>, %arg2: memref<1x16xf32, #tpu.memory_space<vmem>>, %arg3: memref<1x16xf32, #tpu.memory_space<vmem>>, %arg4: memref<16x48xbf16, #tpu.memory_space<vmem>>, %arg5: memref<512x48xf32, #tpu.memory_space<vmem>>) attributes {dimension_semantics = [#tpu.dimension_semantics<parallel>], iteration_bounds = array<i64: 4>, scalar_prefetch = 0 : i64, scratch_operands = 0 : i64, tpu.core_type = #tpu.core_type<tc>, window_params = [{transform_indices = @transform_0, window_bounds = array<i64: 512, 16>}, {pipeline_mode = #tpu.pipeline_mode<synchronous>, transform_indices = @transform_1, window_bounds = array<i64: 1, 16>}, {pipeline_mode = #tpu.pipeline_mode<synchronous>, transform_indices = @transform_2, window_bounds = array<i64: 1, 16>}, {pipeline_mode = #tpu.pipeline_mode<synchronous>, transform_indices = @transform_3, window_bounds = array<i64: 16, 48>}, {transform_indices = @transform_4, window_bounds = array<i64: 512, 48>}]} {
    %c0 = arith.constant 0 : index
    %c0_0 = arith.constant 0 : index
    %0 = vector.load %arg1[%c0, %c0_0] : memref<512x16xf32, #tpu.memory_space<vmem>>, vector<512x16xf32>
    %c0_1 = arith.constant 0 : index
    %c0_2 = arith.constant 0 : index
    %1 = vector.load %arg2[%c0_1, %c0_2] : memref<1x16xf32, #tpu.memory_space<vmem>>, vector<1x16xf32>
    %2 = vector.broadcast %1 : vector<1x16xf32> to vector<512x16xf32>
    %3 = arith.mulf %0, %2 : vector<512x16xf32>
    %c0_3 = arith.constant 0 : index
    %c0_4 = arith.constant 0 : index
    %4 = vector.load %arg3[%c0_3, %c0_4] : memref<1x16xf32, #tpu.memory_space<vmem>>, vector<1x16xf32>
    %5 = vector.broadcast %4 : vector<1x16xf32> to vector<512x16xf32>
    %6 = arith.addf %3, %5 : vector<512x16xf32>
    %cst = arith.constant 0.000000e+00 : f32
    %7 = vector.broadcast %cst : f32 to vector<512x16xf32>
    %8 = arith.maximumf %6, %7 : vector<512x16xf32>
    %9 = arith.truncf %8 : vector<512x16xf32> to vector<512x16xbf16>
    %c0_5 = arith.constant 0 : index
    %c0_6 = arith.constant 0 : index
    %10 = vector.load %arg4[%c0_5, %c0_6] : memref<16x48xbf16, #tpu.memory_space<vmem>>, vector<16x48xbf16>
    %cst_7 = arith.constant dense<0.000000e+00> : vector<512x48xf32>
    %11 = tpu.matmul %9, %10, %cst_7 {dimension_numbers = #tpu.dot_dimension_numbers<[1], [0], [0], [1], [0, 0, 1, 1], [], []>} : vector<512x16xbf16>, vector<16x48xbf16>, vector<512x48xf32> -> vector<512x48xf32>
    %c0_8 = arith.constant 0 : index
    %c0_9 = arith.constant 0 : index
    %12 = vector.load %arg5[%c0_8, %c0_9] : memref<512x48xf32, #tpu.memory_space<vmem>>, vector<512x48xf32>
    tpu.vector_store %arg5[%c0_8, %c0_9], %11 {strides = array<i32>} : memref<512x48xf32, #tpu.memory_space<vmem>>, vector<512x48xf32>,
    return
  }
  func.func @transform_0(%arg0: i32) -> (i32, i32) {
    %c0_i32 = arith.constant 0 : i32
    %c0_i32_0 = arith.constant 0 : i32
    return %arg0, %c0_i32 : i32, i32
  }
  func.func @transform_1(%arg0: i32) -> (i32, i32) {
    %c0_i32 = arith.constant 0 : i32
    %c0_i32_0 = arith.constant 0 : i32
    %c0_i32_1 = arith.constant 0 : i32
    return %c0_i32, %c0_i32_0 : i32, i32
  }
  func.func @transform_2(%arg0: i32) -> (i32, i32) {
    %c0_i32 = arith.constant 0 : i32
    %c0_i32_0 = arith.constant 0 : i32
    %c0_i32_1 = arith.constant 0 : i32
    return %c0_i32, %c0_i32_0 : i32, i32
  }
  func.func @transform_3(%arg0: i32) -> (i32, i32) {
    %c0_i32 = arith.constant 0 : i32
    %c0_i32_0 = arith.constant 0 : i32
    %c0_i32_1 = arith.constant 0 : i32
    return %c0_i32, %c0_i32_0 : i32, i32
  }
  func.func @transform_4(%arg0: i32) -> (i32, i32) {
    %c0_i32 = arith.constant 0 : i32
    %c0_i32_0 = arith.constant 0 : i32
    return %arg0, %c0_i32 : i32, i32
  }
}

module attributes {stable_mosaic.version = 11 : i64} {
  func.func @_tanh_kernel(%arg0: i32, %arg1: memref<192x128xf32, #tpu.memory_space<vmem>>, %arg2: memref<192x128xf32, #tpu.memory_space<vmem>>) attributes {dimension_semantics = [#tpu.dimension_semantics<parallel>], iteration_bounds = array<i64: 1>, scalar_prefetch = 0 : i64, scratch_operands = 0 : i64, tpu.core_type = #tpu.core_type<tc>, window_params = [{transform_indices = @transform_0, window_bounds = array<i64: 192, 128>}, {transform_indices = @transform_1, window_bounds = array<i64: 192, 128>}]} {
    %c0 = arith.constant 0 : index
    %c0_0 = arith.constant 0 : index
    %0 = vector.load %arg1[%c0, %c0_0] : memref<192x128xf32, #tpu.memory_space<vmem>>, vector<192x128xf32>
    %1 = math.tanh %0 : vector<192x128xf32>
    %c0_1 = arith.constant 0 : index
    %c0_2 = arith.constant 0 : index
    %2 = vector.load %arg2[%c0_1, %c0_2] : memref<192x128xf32, #tpu.memory_space<vmem>>, vector<192x128xf32>
    tpu.vector_store %arg2[%c0_1, %c0_2], %1 {strides = array<i32>} : memref<192x128xf32, #tpu.memory_space<vmem>>, vector<192x128xf32>,
    return
  }
  func.func @transform_0(%arg0: i32) -> (i32, i32) {
    %c0_i32 = arith.constant 0 : i32
    %c0_i32_0 = arith.constant 0 : i32
    return %arg0, %c0_i32 : i32, i32
  }
  func.func @transform_1(%arg0: i32) -> (i32, i32) {
    %c0_i32 = arith.constant 0 : i32
    %c0_i32_0 = arith.constant 0 : i32
    return %arg0, %c0_i32 : i32, i32
  }
}

</mosaic_0001>

<bundles_post_ra>
// kernel: generator_forward.11
= control target key start
LH: loop header
LB: loop body
LE: loop exit
PB: predicated region body
PF: predicated region fallthrough
CT: control target
= control target key end

     0   :  { %v57_v0 = vmov 0.0   ;;  %s103_s1 = inlined_call_operand.vmem [shape: f32[1,128], index: 1, kind: output, shape index: {0}]   ;;  %s104_s2 = inlined_call_operand.vmem [shape: f32[1,128], index: 2, kind: output, shape index: {1}]   ;;  %s105_s0 = inlined_call_operand.vmem [shape: f32[32,128], index: 0, kind: input, shape index: {}]  }
   0x1   :  { %14 = vst [vmem:[%s103_s1] sm:$0x1] %v57_v0  ;;  %15 = vst [vmem:[%s104_s2] sm:$0x1] %v57_v0  ;;  %v16_v1 = vld [vmem:[%s105_s0] sm:$0xff]  ;;  %v17_v2 = vld [vmem:[%s105_s0 + $0x8] sm:$0xff] }
   0x2   :  { %v18_v3 = vld [vmem:[%s105_s0 + $0x10] sm:$0xff]  ;;  %v19_v4 = vld [vmem:[%s105_s0 + $0x18] sm:$0xff]  ;;  %v21_v5 = vadd.f32 %v17_v2, %v16_v1  ;;  %v33_v6 = vmul.f32 %v16_v1, %v16_v1  ;;  %v34_v7 = vmul.f32 %v17_v2, %v17_v2 }
   0x3   :  { %v35_v8 = vmul.f32 %v18_v3, %v18_v3  ;;  %v36_v10 = vmul.f32 %v19_v4, %v19_v4 }
   0x4   :  { %v22_v9 = vadd.f32 %v21_v5, %v18_v3  ;;  %v37_v11 = vadd.f32 %v34_v7, %v33_v6 }
   0x6   :  { %v23_v12 = vadd.f32 %v22_v9, %v19_v4  ;;  %v38_v13 = vadd.f32 %v37_v11, %v35_v8 }
   0x8   :  { %v24_v14 = vrot.slane %v23_v12, 4  ;;  %v39_v15 = vadd.f32 %v38_v13, %v36_v10  ;;  %v20_v24 = vld [vmem:[%s103_s1] sm:$0x1] }
   0x9   :  { %v32_v27 = vld [vmem:[%s104_s2] sm:$0x1] }
   0xa   :  { %v25_v16 = vadd.f32 %v24_v14, %v23_v12  ;;  %v40_v17 = vrot.slane %v39_v15, 4 }
   0xc   :  { %v26_v18 = vrot.slane %v25_v16, 2  ;;  %v41_v19 = vadd.f32 %v40_v17, %v39_v15 }
   0xe   :  { %v27_v20 = vadd.f32 %v26_v18, %v25_v16  ;;  %v42_v21 = vrot.slane %v41_v19, 2 }
  0x10   :  { %v28_v22 = vrot.slane %v27_v20, 1  ;;  %v43_v23 = vadd.f32 %v42_v21, %v41_v19 }
  0x12   :  { %v29_v25 = vadd.f32 %v28_v22, %v27_v20  ;;  %v44_v26 = vrot.slane %v43_v23, 1 }
  0x14   :  { %v30_v28 = vadd.f32 %v29_v25, %v20_v24  ;;  %v45_v29 = vadd.f32 %v44_v26, %v43_v23 }
  0x16   :  { %31 = vst [vmem:[%s103_s1] sm:$0x1] %v30_v28  ;;  %v46_v30 = vadd.f32 %v45_v29, %v32_v27 }
  0x18   :  { %47 = vst [vmem:[%s104_s2] sm:$0x1] %v46_v30 }

// kernel: generator_forward.12
= control target key start
LH: loop header
LB: loop body
LE: loop exit
PB: predicated region body
PF: predicated region fallthrough
CT: control target
= control target key end

     0   :  { %9 = vsyncpa [#allocation3], 0  ;;  %s789_s15 = smov [#allocation2]   ;;  %s955_s0 = inlined_call_operand.vmem [shape: f32[32,128], index: 0, kind: input, shape index: {}]   ;;  %s956_s1 = inlined_call_operand.vmem [shape: f32[1,128], index: 1, kind: input, shape index: {}]   ;;  %s957_s2 = inlined_call_operand.vmem [shape: f32[1,128], index: 2, kind: input, shape index: {}]   ;;  %s958_s3 = inlined_call_operand.hbm [shape: bf16[128,1024], index: 3, kind: input, shape index: {}]   ;;  %s959_s4 = inlined_call_operand.vmem [shape: f32[32,1024], index: 4, kind: output, shape index: {}]  }
   0x1   :  { %s21_s16 = sshll.u32 %s789_s15, 4  ;;  %s22_s16 = int_to_ptr.vmem [resolvable:$true] %s21_s16 }
   0x2   :  { %s775_s17 = scalar_lea.vmem %s22_s16, 8192  ;;  %p780_p1 = scmp.lt.s32.totalorder %s22_s16, %s22_s16 }
   0x3   :  { %p776_p0 = scmp.ne.s32.totalorder %s22_s16, %s775_s17  ;;  %p781_p2 = scmp.lt.s32.totalorder %s775_s17, %s775_s17 }
   0x5   :  { %p782_p3 = por %p781_p2, %p780_p1 }
   0x7   :  { %p783_p4 = pnand %p782_p3, %p776_p0 }
   0x9   :  { %786 = shalt.err (!%p783_p4)
}
   0xa   :  { %s790_s18 = smov 512   ;;  %s791_s19 = smov 32  }
   0xb   :  { %27 = dma.hbm_to_vmem [thread:$0]  %s958_s3, 8192, %s22_s16, [#allocation3], %s790_s18, %s790_s18, %s791_s19  }
   0xc   :  { %787 = dma.done.wait [#allocation3], 8192  }
   0xd   :  { %788 = vsyncadd [#allocation3], 4294959104  ;;  %v792_v0 = vmov 0   ;;  %v120_v1 = vld [vmem:[#allocation2 + $0x1c0] sm:$0xff]  ;;  %v121_v3 = vld [vmem:[#allocation2 + $0x1c8] sm:$0xff] }
   0xe   :  { %480 = vmatprep.mubr.bf16.mxu0 %v792_v0  ;;  %533 = vmatprep.mubr.bf16.mxu1 %v792_v0  ;;  %v124_v2 = vld [vmem:[#allocation2 + $0x1e0] sm:$0xff]  ;;  %v125_v5 = vld [vmem:[#allocation2 + $0x1e8] sm:$0xff] }
   0xf   :  { %v756_v4 = vcombine.high %v120_v1, %v124_v2  ;;  %v755_v6 = vcombine.low %v120_v1, %v124_v2  ;;  %v112_v7 = vld [vmem:[#allocation2 + $0x180] sm:$0xff]  ;;  %v758_v9 = vcombine.high %v121_v3, %v125_v5  ;;  %v757_v10 = vcombine.low %v121_v3, %v125_v5  ;;  %v113_v12 = vld [vmem:[#allocation2 + $0x188] sm:$0xff]  ;;  %v34_v5 = vld [vmem:[%s955_s0 + $0x10] sm:$0xff] }
  0x10   :  { %v116_v8 = vld [vmem:[#allocation2 + $0x1a0] sm:$0xff]  ;;  %v117_v13 = vld [vmem:[#allocation2 + $0x1a8] sm:$0xff] }
  0x11   :  { %v748_v11 = vcombine.high %v112_v7, %v116_v8  ;;  %v104_v14 = vld [vmem:[#allocation2 + $0x140] sm:$0xff]  ;;  %448 = vmatprep.subr.bf16.mxu0 %v756_v4  ;;  %v750_v15 = vcombine.high %v113_v12, %v117_v13  ;;  %v105_v17 = vld [vmem:[#allocation2 + $0x148] sm:$0xff]  ;;  %501 = vmatprep.subr.bf16.mxu1 %v758_v9  ;;  %v747_v19 = vcombine.low %v112_v7, %v116_v8 }
  0x12   :  { %v108_v16 = vld [vmem:[#allocation2 + $0x160] sm:$0xff]  ;;  %v109_v18 = vld [vmem:[#allocation2 + $0x168] sm:$0xff]  ;;  %449 = vmatpush1.bf16.msra.mxu0 %v755_v6  ;;  %502 = vmatpush1.bf16.msra.mxu1 %v757_v10  ;;  %v749_v20 = vcombine.low %v113_v12, %v117_v13  ;;  %v35_v6 = vld [vmem:[%s955_s0 + $0x18] sm:$0xff] }
  0x13   :  { %450 = vmatprep.subr.bf16.mxu0 %v748_v11  ;;  %v740_v21 = vcombine.high %v104_v14, %v108_v16  ;;  %503 = vmatprep.subr.bf16.mxu1 %v750_v15  ;;  %v742_v22 = vcombine.high %v105_v17, %v109_v18  ;;  %v96_v23 = vld [vmem:[#allocation2 + $0x100] sm:$0xff]  ;;  %v97_v25 = vld [vmem:[#allocation2 + $0x108] sm:$0xff]  ;;  %v739_v27 = vcombine.low %v104_v14, %v108_v16  ;;  %v122_v10 = vld [vmem:[#allocation2 + $0x1d0] sm:$0xff] }
  0x14   :  { %v100_v24 = vld [vmem:[#allocation2 + $0x120] sm:$0xff]  ;;  %v101_v26 = vld [vmem:[#allocation2 + $0x128] sm:$0xff]  ;;  %v741_v28 = vcombine.low %v105_v17, %v109_v18  ;;  %v126_v11 = vld [vmem:[#allocation2 + $0x1f0] sm:$0xff] }
  0x15   :  { %v732_v29 = vcombine.high %v96_v23, %v100_v24  ;;  %v734_v30 = vcombine.high %v97_v25, %v101_v26  ;;  %v88_v31 = vld [vmem:[#allocation2 + $0xc0] sm:$0xff]  ;;  %v89_v33 = vld [vmem:[#allocation2 + $0xc8] sm:$0xff]  ;;  %v731_v35 = vcombine.low %v96_v23, %v100_v24  ;;  %v733_v36 = vcombine.low %v97_v25, %v101_v26  ;;  %v123_v14 = vld [vmem:[#allocation2 + $0x1d8] sm:$0xff] }
  0x16   :  { %451 = vmatpush1.bf16.msra.mxu0 %v747_v19  ;;  %504 = vmatpush1.bf16.msra.mxu1 %v749_v20  ;;  %v92_v32 = vld [vmem:[#allocation2 + $0xe0] sm:$0xff]  ;;  %v93_v34 = vld [vmem:[#allocation2 + $0xe8] sm:$0xff]  ;;  %v127_v15 = vld [vmem:[#allocation2 + $0x1f8] sm:$0xff]  ;;  %v760_v20 = vcombine.high %v122_v10, %v126_v11 }
  0x17   :  { %452 = vmatprep.subr.bf16.mxu0 %v740_v21  ;;  %505 = vmatprep.subr.bf16.mxu1 %v742_v22  ;;  %v724_v37 = vcombine.high %v88_v31, %v92_v32  ;;  %v726_v38 = vcombine.high %v89_v33, %v93_v34  ;;  %v80_v39 = vld [vmem:[#allocation2 + $0x80] sm:$0xff]  ;;  %v81_v41 = vld [vmem:[#allocation2 + $0x88] sm:$0xff]  ;;  %v723_v43 = vcombine.low %v88_v31, %v92_v32  ;;  %v114_v22 = vld [vmem:[#allocation2 + $0x190] sm:$0xff] }
  0x18   :  { %v84_v40 = vld [vmem:[#allocation2 + $0xa0] sm:$0xff]  ;;  %v85_v42 = vld [vmem:[#allocation2 + $0xa8] sm:$0xff]  ;;  %v725_v47 = vcombine.low %v89_v33, %v93_v34  ;;  %v762_v21 = vcombine.high %v123_v14, %v127_v15  ;;  %v118_v23 = vld [vmem:[#allocation2 + $0x1b0] sm:$0xff] }
  0x19   :  { %v32_v44 = vld [vmem:[%s955_s0] sm:$0xff]  ;;  %v33_v45 = vld [vmem:[%s955_s0 + $0x8] sm:$0xff]  ;;  %v716_v48 = vcombine.high %v80_v39, %v84_v40  ;;  %v718_v49 = vcombine.high %v81_v41, %v85_v42  ;;  %v715_v56 = vcombine.low %v80_v39, %v84_v40  ;;  %v717_v58 = vcombine.low %v81_v41, %v85_v42  ;;  %v115_v25 = vld [vmem:[#allocation2 + $0x198] sm:$0xff] }
  0x1a   :  { %453 = vmatpush1.bf16.msra.mxu0 %v739_v27  ;;  %506 = vmatpush1.bf16.msra.mxu1 %v741_v28  ;;  %v697_v46 = vld [vmem:[%s956_s1] ss:$0 sm:$0xff]  ;;  %v73_v52 = vld [vmem:[#allocation2 + $0x48] sm:$0xff]  ;;  %v119_v26 = vld [vmem:[#allocation2 + $0x1b8] sm:$0xff]  ;;  %v752_v31 = vcombine.high %v114_v22, %v118_v23  ;;  %v751_v39 = vcombine.low %v114_v22, %v118_v23 }
  0x1b   :  { %454 = vmatprep.subr.bf16.mxu0 %v732_v29  ;;  %507 = vmatprep.subr.bf16.mxu1 %v734_v30  ;;  %v72_v50 = vld [vmem:[#allocation2 + $0x40] sm:$0xff]  ;;  %v77_v53 = vld [vmem:[#allocation2 + $0x68] sm:$0xff]  ;;  %v43_v54 = vmul.f32 %v697_v46, %v32_v44  ;;  %v44_v55 = vmul.f32 %v697_v46, %v33_v45  ;;  %v45_v16 = vmul.f32 %v697_v46, %v34_v5  ;;  %v106_v33 = vld [vmem:[#allocation2 + $0x150] sm:$0xff] }
  0x1c   :  { %v76_v51 = vld [vmem:[#allocation2 + $0x60] sm:$0xff]  ;;  %v710_v60 = vcombine.high %v73_v52, %v77_v53  ;;  %v65_v63 = vld [vmem:[#allocation2 + $0x8] sm:$0xff]  ;;  %v709_v7 = vcombine.low %v73_v52, %v77_v53  ;;  %v46_v17 = vmul.f32 %v697_v46, %v35_v6  ;;  %v759_v29 = vcombine.low %v122_v10, %v126_v11  ;;  %v110_v34 = vld [vmem:[#allocation2 + $0x170] sm:$0xff] }
  0x1d   :  { %v698_v57 = vld [vmem:[%s957_s2] ss:$0 sm:$0xff]  ;;  %v708_v59 = vcombine.high %v72_v50, %v76_v51  ;;  %v69_v1 = vld [vmem:[#allocation2 + $0x28] sm:$0xff]  ;;  %v707_v4 = vcombine.low %v72_v50, %v76_v51  ;;  %v761_v30 = vcombine.low %v123_v14, %v127_v15  ;;  %v754_v32 = vcombine.high %v115_v25, %v119_v26  ;;  %v102_v44 = vld [vmem:[#allocation2 + $0x130] sm:$0xff] }
  0x1e   :  { %455 = vmatpush1.bf16.msra.mxu0 %v731_v35  ;;  %508 = vmatpush1.bf16.msra.mxu1 %v733_v36  ;;  %v64_v61 = vld [vmem:[#allocation2] sm:$0xff]  ;;  %v54_v2 = vadd.f32 %v698_v57, %v43_v54  ;;  %v55_v3 = vadd.f32 %v698_v57, %v44_v55  ;;  %v702_v9 = vcombine.high %v65_v63, %v69_v1  ;;  %v107_v35 = vld [vmem:[#allocation2 + $0x158] sm:$0xff]  ;;  %v90_v52 = vld [vmem:[#allocation2 + $0xd0] sm:$0xff] }
  0x1f   :  { %456 = vmatprep.subr.bf16.mxu0 %v724_v37  ;;  %509 = vmatprep.subr.bf16.mxu1 %v726_v38  ;;  %v68_v62 = vld [vmem:[#allocation2 + $0x20] sm:$0xff]  ;;  %v701_v19 = vcombine.low %v65_v63, %v69_v1  ;;  %v56_v27 = vadd.f32 %v698_v57, %v45_v16  ;;  %v57_v28 = vadd.f32 %v698_v57, %v46_v17  ;;  %v111_v36 = vld [vmem:[#allocation2 + $0x178] sm:$0xff]  ;;  %v94_v53 = vld [vmem:[#allocation2 + $0xf0] sm:$0xff] }
  0x20   :  { %v700_v8 = vcombine.high %v64_v61, %v68_v62  ;;  %v58_v12 = vmax.f32 %v54_v2, 0.0  ;;  %v59_v13 = vmax.f32 %v55_v3, 0.0  ;;  %v699_v18 = vcombine.low %v64_v61, %v68_v62  ;;  %v99_v45 = vld [vmem:[#allocation2 + $0x118] sm:$0xff]  ;;  %v86_v61 = vld [vmem:[#allocation2 + $0xb0] sm:$0xff] }
  0x21   :  { %v60_v37 = vmax.f32 %v56_v27, 0.0  ;;  %v61_v38 = vmax.f32 %v57_v28, 0.0  ;;  %v753_v40 = vcombine.low %v115_v25, %v119_v26  ;;  %v744_v41 = vcombine.high %v106_v33, %v110_v34  ;;  %v103_v46 = vld [vmem:[#allocation2 + $0x138] sm:$0xff]  ;;  %v74_v5 = vld [vmem:[#allocation2 + $0x50] sm:$0xff] }
  0x22   :  { %457 = vmatpush1.bf16.msra.mxu0 %v723_v43  ;;  %510 = vmatpush1.bf16.msra.mxu1 %v725_v47  ;;  %v841_v24 = vpack.c.bf16 %v59_v13, %v58_v12  ;;  %v746_v42 = vcombine.high %v107_v35, %v111_v36  ;;  %v98_v43 = vld [vmem:[#allocation2 + $0x110] sm:$0xff]  ;;  %v738_v51 = vcombine.high %v99_v45, %v103_v46  ;;  %v91_v54 = vld [vmem:[#allocation2 + $0xd8] sm:$0xff] }
  0x23   :  { %458 = vmatprep.subr.bf16.mxu0 %v716_v48  ;;  %511 = vmatprep.subr.bf16.mxu1 %v718_v49  ;;  %v847_v47 = vpack.c.bf16 %v61_v38, %v60_v37  ;;  %v743_v48 = vcombine.low %v106_v33, %v110_v34  ;;  %v745_v49 = vcombine.low %v107_v35, %v111_v36  ;;  %v95_v55 = vld [vmem:[#allocation2 + $0xf8] sm:$0xff]  ;;  %v78_v6 = vld [vmem:[#allocation2 + $0x70] sm:$0xff] }
  0x24   :  { %v736_v50 = vcombine.high %v98_v43, %v102_v44  ;;  %v737_v57 = vcombine.low %v99_v45, %v103_v46  ;;  %v83_v62 = vld [vmem:[#allocation2 + $0x98] sm:$0xff]  ;;  %v727_v1 = vcombine.low %v90_v52, %v94_v53  ;;  %v729_v2 = vcombine.low %v91_v54, %v95_v55  ;;  %v66_v13 = vld [vmem:[#allocation2 + $0x10] sm:$0xff] }
  0x25   :  { %v87_v63 = vld [vmem:[#allocation2 + $0xb8] sm:$0xff]  ;;  %v712_v11 = vcombine.high %v74_v5, %v78_v6  ;;  %v70_v14 = vld [vmem:[#allocation2 + $0x30] sm:$0xff]  ;;  %v711_v17 = vcombine.low %v74_v5, %v78_v6 }
  0x26   :  { %459 = vmatpush1.bf16.msra.mxu0 %v715_v56  ;;  %512 = vmatpush1.bf16.msra.mxu1 %v717_v58  ;;  %v735_v56 = vcombine.low %v98_v43, %v102_v44  ;;  %v728_v58 = vcombine.high %v90_v52, %v94_v53  ;;  %v721_v10 = vcombine.low %v83_v62, %v87_v63  ;;  %v67_v15 = vld [vmem:[#allocation2 + $0x18] sm:$0xff] }
  0x27   :  { %460 = vmatprep.subr.bf16.mxu0 %v708_v59  ;;  %513 = vmatprep.subr.bf16.mxu1 %v710_v60  ;;  %v730_v59 = vcombine.high %v91_v54, %v95_v55  ;;  %v82_v60 = vld [vmem:[#allocation2 + $0x90] sm:$0xff]  ;;  %v71_v16 = vld [vmem:[#allocation2 + $0x38] sm:$0xff] }
  0x28   :  { %v720_v3 = vcombine.high %v82_v60, %v86_v61  ;;  %v705_v22 = vcombine.low %v67_v15, %v71_v16 }
  0x2a   :  { %461 = vmatpush1.bf16.msra.mxu0 %v707_v4  ;;  %514 = vmatpush1.bf16.msra.mxu1 %v709_v7  ;;  %v722_v4 = vcombine.high %v83_v62, %v87_v63  ;;  %v75_v7 = vld [vmem:[#allocation2 + $0x58] sm:$0xff] }
  0x2b   :  { %462 = vmatprep.subr.bf16.mxu0 %v700_v8  ;;  %515 = vmatprep.subr.bf16.mxu1 %v702_v9  ;;  %v79_v8 = vld [vmem:[#allocation2 + $0x78] sm:$0xff]  ;;  %v719_v9 = vcombine.low %v82_v60, %v86_v61 }
  0x2c   :  { %v714_v12 = vcombine.high %v75_v7, %v79_v8 }
  0x2e   :  { %463 = vmatpush1.bf16.msra.mxu0 %v699_v18  ;;  %516 = vmatpush1.bf16.msra.mxu1 %v701_v19  ;;  %v713_v18 = vcombine.low %v75_v7, %v79_v8  ;;  %v704_v19 = vcombine.high %v66_v13, %v70_v14 }
  0x2f   :  { %554 = vmatprep.subr.bf16.mxu0 %v760_v20  ;;  %607 = vmatprep.subr.bf16.mxu1 %v762_v21  ;;  %v706_v20 = vcombine.high %v67_v15, %v71_v16  ;;  %v703_v21 = vcombine.low %v66_v13, %v70_v14 }
  0x31   :  { %481 = vmatmul.mubr.bf16.vlgmr.msra.gmra.mxu0 %v841_v24  ;;  %534 = vmatmul.mubr.bf16.vlgmr.msra.gmra.mxu1 %v841_v24 }
  0x32   :  { %555 = vmatpush1.bf16.msra.mxu0 %v759_v29  ;;  %608 = vmatpush1.bf16.msra.mxu1 %v761_v30 }
  0x33   :  { %556 = vmatprep.subr.bf16.mxu0 %v752_v31  ;;  %609 = vmatprep.subr.bf16.mxu1 %v754_v32 }
  0x34   :  { %490 = vmatprep.mubr.bf16.mxu0 %v792_v0  ;;  %543 = vmatprep.mubr.bf16.mxu1 %v792_v0 }
  0x36   :  { %557 = vmatpush1.bf16.msra.mxu0 %v751_v39  ;;  %610 = vmatpush1.bf16.msra.mxu1 %v753_v40 }
  0x37   :  { %558 = vmatprep.subr.bf16.mxu0 %v744_v41  ;;  %611 = vmatprep.subr.bf16.mxu1 %v746_v42 }
  0x39   :  { %491 = vmatmul.mubr.bf16.gmra.mxu0 %v847_v47  ;;  %544 = vmatmul.mubr.bf16.gmra.mxu1 %v847_v47 }
  0x3a   :  { %559 = vmatpush1.bf16.msra.mxu0 %v743_v48  ;;  %612 = vmatpush1.bf16.msra.mxu1 %v745_v49 }
  0x3b   :  { %560 = vmatprep.subr.bf16.mxu0 %v736_v50  ;;  %613 = vmatprep.subr.bf16.mxu1 %v738_v51 }
  0x3c   :  { %586 = vmatprep.mubr.bf16.mxu0 %v792_v0  ;;  %639 = vmatprep.mubr.bf16.mxu1 %v792_v0 }
  0x3e   :  { %561 = vmatpush1.bf16.msra.mxu0 %v735_v56  ;;  %614 = vmatpush1.bf16.msra.mxu1 %v737_v57 }
  0x3f   :  { %562 = vmatprep.subr.bf16.mxu0 %v728_v58  ;;  %615 = vmatprep.subr.bf16.mxu1 %v730_v59 }
  0x42   :  { %563 = vmatpush1.bf16.msra.mxu0 %v727_v1  ;;  %616 = vmatpush1.bf16.msra.mxu1 %v729_v2 }
  0x43   :  { %564 = vmatprep.subr.bf16.mxu0 %v720_v3  ;;  %617 = vmatprep.subr.bf16.mxu1 %v722_v4 }
  0x46   :  { %565 = vmatpush1.bf16.msra.mxu0 %v719_v9  ;;  %618 = vmatpush1.bf16.msra.mxu1 %v721_v10 }
  0x47   :  { %566 = vmatprep.subr.bf16.mxu0 %v712_v11  ;;  %619 = vmatprep.subr.bf16.mxu1 %v714_v12 }
  0x4a   :  { %567 = vmatpush1.bf16.msra.mxu0 %v711_v17  ;;  %620 = vmatpush1.bf16.msra.mxu1 %v713_v18 }
  0x4b   :  { %568 = vmatprep.subr.bf16.mxu0 %v704_v19  ;;  %621 = vmatprep.subr.bf16.mxu1 %v706_v20 }
  0x4e   :  { %569 = vmatpush1.bf16.msra.mxu0 %v703_v21  ;;  %622 = vmatpush1.bf16.msra.mxu1 %v705_v22 }
  0x51   :  { %587 = vmatmul.mubr.bf16.vlgmr.msra.gmra.mxu0 %v841_v24  ;;  %640 = vmatmul.mubr.bf16.vlgmr.msra.gmra.mxu1 %v841_v24 }
  0x52   :  { %596 = vmatprep.mubr.bf16.mxu0 %v792_v0  ;;  %649 = vmatprep.mubr.bf16.mxu1 %v792_v0 }
  0x59   :  { %597 = vmatmul.mubr.bf16.gmra.mxu0 %v847_v47  ;;  %650 = vmatmul.mubr.bf16.gmra.mxu1 %v847_v47 }
  0xf1   :  { %v482_v23 = vpop.f32.mrf.mxu0  ;;  %v535_v25 = vpop.f32.mrf.mxu1 }
  0xf2   :  { %660 = vst [vmem:[%s959_s4] sm:$0xff] %v482_v23  ;;  %662 = vst [vmem:[%s959_s4 + $0x10] sm:$0xff] %v535_v25 }
  0xf3   :  { %v484_v26 = vpop.f32.mrf.mxu0  ;;  %v537_v0 = vpop.f32.mrf.mxu1 }
  0xf4   :  { %661 = vst [vmem:[%s959_s4 + $0x8] sm:$0xff] %v484_v26  ;;  %663 = vst [vmem:[%s959_s4 + $0x18] sm:$0xff] %v537_v0 }
  0xf5   :  { %v486_v24 = vpop.f32.mrf.mxu0  ;;  %v539_v27 = vpop.f32.mrf.mxu1 }
  0xf6   :  { %668 = vst [vmem:[%s959_s4 + $0x40] sm:$0xff] %v486_v24  ;;  %670 = vst [vmem:[%s959_s4 + $0x50] sm:$0xff] %v539_v27 }
  0xf7   :  { %v488_v28 = vpop.f32.mrf.mxu0  ;;  %v541_v29 = vpop.f32.mrf.mxu1 }
  0xf8   :  { %669 = vst [vmem:[%s959_s4 + $0x48] sm:$0xff] %v488_v28  ;;  %671 = vst [vmem:[%s959_s4 + $0x58] sm:$0xff] %v541_v29 }
  0xf9   :  { %v492_v30 = vpop.f32.mrf.mxu0  ;;  %v545_v31 = vpop.f32.mrf.mxu1 }
  0xfa   :  { %676 = vst [vmem:[%s959_s4 + $0x80] sm:$0xff] %v492_v30  ;;  %678 = vst [vmem:[%s959_s4 + $0x90] sm:$0xff] %v545_v31 }
  0xfb   :  { %v494_v32 = vpop.f32.mrf.mxu0  ;;  %v547_v33 = vpop.f32.mrf.mxu1 }
  0xfc   :  { %677 = vst [vmem:[%s959_s4 + $0x88] sm:$0xff] %v494_v32  ;;  %679 = vst [vmem:[%s959_s4 + $0x98] sm:$0xff] %v547_v33 }
  0xfd   :  { %v496_v34 = vpop.f32.mrf.mxu0  ;;  %v549_v35 = vpop.f32.mrf.mxu1 }
  0xfe   :  { %684 = vst [vmem:[%s959_s4 + $0xc0] sm:$0xff] %v496_v34  ;;  %686 = vst [vmem:[%s959_s4 + $0xd0] sm:$0xff] %v549_v35 }
  0xff   :  { %v498_v36 = vpop.f32.mrf.mxu0  ;;  %v551_v37 = vpop.f32.mrf.mxu1 }
 0x100   :  { %685 = vst [vmem:[%s959_s4 + $0xc8] sm:$0xff] %v498_v36  ;;  %687 = vst [vmem:[%s959_s4 + $0xd8] sm:$0xff] %v551_v37 }
 0x111   :  { %v588_v38 = vpop.f32.mrf.mxu0  ;;  %v641_v39 = vpop.f32.mrf.mxu1 }
 0x112   :  { %664 = vst [vmem:[%s959_s4 + $0x20] sm:$0xff] %v588_v38  ;;  %666 = vst [vmem:[%s959_s4 + $0x30] sm:$0xff] %v641_v39 }
 0x113   :  { %v590_v40 = vpop.f32.mrf.mxu0  ;;  %v643_v41 = vpop.f32.mrf.mxu1 }
 0x114   :  { %665 = vst [vmem:[%s959_s4 + $0x28] sm:$0xff] %v590_v40  ;;  %667 = vst [vmem:[%s959_s4 + $0x38] sm:$0xff] %v643_v41 }
 0x115   :  { %v592_v42 = vpop.f32.mrf.mxu0  ;;  %v645_v43 = vpop.f32.mrf.mxu1 }
 0x116   :  { %672 = vst [vmem:[%s959_s4 + $0x60] sm:$0xff] %v592_v42  ;;  %674 = vst [vmem:[%s959_s4 + $0x70] sm:$0xff] %v645_v43 }
 0x117   :  { %v594_v44 = vpop.f32.mrf.mxu0  ;;  %v647_v45 = vpop.f32.mrf.mxu1 }
 0x118   :  { %673 = vst [vmem:[%s959_s4 + $0x68] sm:$0xff] %v594_v44  ;;  %675 = vst [vmem:[%s959_s4 + $0x78] sm:$0xff] %v647_v45 }
 0x119   :  { %v598_v46 = vpop.f32.mrf.mxu0  ;;  %v651_v47 = vpop.f32.mrf.mxu1 }
 0x11a   :  { %680 = vst [vmem:[%s959_s4 + $0xa0] sm:$0xff] %v598_v46  ;;  %682 = vst [vmem:[%s959_s4 + $0xb0] sm:$0xff] %v651_v47 }
 0x11b   :  { %v600_v48 = vpop.f32.mrf.mxu0  ;;  %v653_v49 = vpop.f32.mrf.mxu1 }
 0x11c   :  { %681 = vst [vmem:[%s959_s4 + $0xa8] sm:$0xff] %v600_v48  ;;  %683 = vst [vmem:[%s959_s4 + $0xb8] sm:$0xff] %v653_v49 }
 0x11d   :  { %v602_v50 = vpop.f32.mrf.mxu0  ;;  %v655_v51 = vpop.f32.mrf.mxu1 }
 0x11e   :  { %688 = vst [vmem:[%s959_s4 + $0xe0] sm:$0xff] %v602_v50  ;;  %690 = vst [vmem:[%s959_s4 + $0xf0] sm:$0xff] %v655_v51 }
 0x11f   :  { %v604_v52 = vpop.f32.mrf.mxu0  ;;  %v657_v53 = vpop.f32.mrf.mxu1 }
 0x120   :  { %689 = vst [vmem:[%s959_s4 + $0xe8] sm:$0xff] %v604_v52  ;;  %691 = vst [vmem:[%s959_s4 + $0xf8] sm:$0xff] %v657_v53 }
 0x121   :  { %696 = vsyncpa [#allocation3], 1 }

// kernel: generator_forward.10
= control target key start
LH: loop header
LB: loop body
LE: loop exit
PB: predicated region body
PF: predicated region fallthrough
CT: control target
= control target key end

     0   :  { %7 = vsyncpa [#allocation3], 0  ;;  %s1565_s9 = smov [#allocation2]   ;;  %s1660_s0 = inlined_call_operand.vmem [shape: bf16[2,138], index: 0, kind: input, shape index: {}]   ;;  %s1661_s1 = inlined_call_operand.hbm [shape: bf16[138,2048], index: 1, kind: input, shape index: {}]   ;;  %s1662_s2 = inlined_call_operand.vmem [shape: f32[2,2048], index: 2, kind: output, shape index: {}]  }
   0x1   :  { %s15_s10 = sshll.u32 %s1565_s9, 4  ;;  %s16_s10 = int_to_ptr.vmem [resolvable:$true] %s15_s10 }
   0x2   :  { %s1551_s11 = scalar_lea.vmem %s16_s10, 18432  ;;  %p1556_p1 = scmp.lt.s32.totalorder %s16_s10, %s16_s10 }
   0x3   :  { %p1552_p0 = scmp.ne.s32.totalorder %s16_s10, %s1551_s11  ;;  %p1557_p2 = scmp.lt.s32.totalorder %s1551_s11, %s1551_s11 }
   0x5   :  { %p1558_p3 = por %p1557_p2, %p1556_p1 }
   0x7   :  { %p1559_p4 = pnand %p1558_p3, %p1552_p0 }
   0x9   :  { %1562 = shalt.err (!%p1559_p4)
}
   0xa   :  { %s1566_s12 = smov 1024   ;;  %s1567_s13 = smov 64  }
   0xb   :  { %21 = dma.hbm_to_vmem [thread:$0]  %s1661_s1, 18432, %s16_s10, [#allocation3], %s1566_s12, %s1566_s12, %s1567_s13  }
   0xc   :  { %1563 = dma.done.wait [#allocation3], 18432  }
   0xd   :  { %1564 = vsyncadd [#allocation3], 4294948864  ;;  %v139_v0 = vld [vmem:[#allocation2 + $0x380] sm:$0xff]  ;;  %v140_v2 = vld [vmem:[#allocation2 + $0x388] sm:$0xff]  ;;  %v1568_v18 = vmov 1966171168   ;;  %v183_v20 = vlaneseq }
   0xe   :  { %v147_v1 = vld [vmem:[#allocation2 + $0x3c0] sm:$0xff]  ;;  %v148_v4 = vld [vmem:[#allocation2 + $0x3c8] sm:$0xff]  ;;  %v181_v19 = vunpack.c.l.s4 %v1568_v18  ;;  %vm899_vm0 = vcmask 80896   ;;  %vm903_vm1 = vcmask 1044480   ;;  %v149_v18 = vld [vmem:[#allocation2 + $0x3d0] sm:$0xff] }
   0xf   :  { %v1491_v3 = vcombine.high %v139_v0, %v147_v1  ;;  %v1490_v5 = vcombine.low %v139_v0, %v147_v1  ;;  %v123_v6 = vld [vmem:[#allocation2 + $0x300] sm:$0xff]  ;;  %v1493_v8 = vcombine.high %v140_v2, %v148_v4  ;;  %v1492_v9 = vcombine.low %v140_v2, %v148_v4  ;;  %v124_v11 = vld [vmem:[#allocation2 + $0x308] sm:$0xff] }
  0x10   :  { %v131_v7 = vld [vmem:[#allocation2 + $0x340] sm:$0xff]  ;;  %v132_v12 = vld [vmem:[#allocation2 + $0x348] sm:$0xff]  ;;  %v182_v29 = vunpack.c.0.s8 %v181_v19  ;;  %v1588_v30 = vshrl.u32 %v183_v20, 7  ;;  %v142_v19 = vld [vmem:[#allocation2 + $0x398] sm:$0xff] }
  0x11   :  { %v1475_v10 = vcombine.high %v123_v6, %v131_v7  ;;  %v107_v13 = vld [vmem:[#allocation2 + $0x280] sm:$0xff]  ;;  %952 = vmatprep.subr.bf16.mxu0 %v1491_v3  ;;  %v1477_v14 = vcombine.high %v124_v11, %v132_v12  ;;  %v108_v16 = vld [vmem:[#allocation2 + $0x288] sm:$0xff]  ;;  %993 = vmatprep.subr.bf16.mxu1 %v1493_v8  ;;  %v1474_v21 = vcombine.low %v123_v6, %v131_v7  ;;  %v150_v20 = vld [vmem:[#allocation2 + $0x3d8] sm:$0xff] }
  0x12   :  { %v115_v15 = vld [vmem:[#allocation2 + $0x2c0] sm:$0xff]  ;;  %v116_v17 = vld [vmem:[#allocation2 + $0x2c8] sm:$0xff]  ;;  %953 = vmatpush1.bf16.msra.mxu0 %v1490_v5  ;;  %994 = vmatpush1.bf16.msra.mxu1 %v1492_v9  ;;  %v1476_v22 = vcombine.low %v124_v11, %v132_v12  ;;  %v1591_v39 = vsub.s32 %v182_v29, %v1588_v30  ;;  %v134_v29 = vld [vmem:[#allocation2 + $0x358] sm:$0xff] }
  0x13   :  { %954 = vmatprep.subr.bf16.mxu0 %v1475_v10  ;;  %v1459_v23 = vcombine.high %v107_v13, %v115_v15  ;;  %995 = vmatprep.subr.bf16.mxu1 %v1477_v14  ;;  %v1461_v24 = vcombine.high %v108_v16, %v116_v17  ;;  %v91_v25 = vld [vmem:[#allocation2 + $0x200] sm:$0xff]  ;;  %v92_v27 = vld [vmem:[#allocation2 + $0x208] sm:$0xff]  ;;  %v1458_v31 = vcombine.low %v107_v13, %v115_v15 }
  0x14   :  { %v99_v26 = vld [vmem:[#allocation2 + $0x240] sm:$0xff]  ;;  %v100_v28 = vld [vmem:[#allocation2 + $0x248] sm:$0xff]  ;;  %v1460_v32 = vcombine.low %v108_v16, %v116_v17  ;;  %v141_v17 = vld [vmem:[#allocation2 + $0x390] sm:$0xff] }
  0x15   :  { %v1443_v33 = vcombine.high %v91_v25, %v99_v26  ;;  %v1445_v34 = vcombine.high %v92_v27, %v100_v28  ;;  %v75_v35 = vld [vmem:[#allocation2 + $0x180] sm:$0xff]  ;;  %v76_v37 = vld [vmem:[#allocation2 + $0x188] sm:$0xff]  ;;  %v1442_v40 = vcombine.low %v91_v25, %v99_v26  ;;  %v1444_v42 = vcombine.low %v92_v27, %v100_v28  ;;  %v125_v25 = vld [vmem:[#allocation2 + $0x310] sm:$0xff] }
  0x16   :  { %955 = vmatpush1.bf16.msra.mxu0 %v1474_v21  ;;  %996 = vmatpush1.bf16.msra.mxu1 %v1476_v22  ;;  %v83_v36 = vld [vmem:[#allocation2 + $0x1c0] sm:$0xff]  ;;  %v84_v38 = vld [vmem:[#allocation2 + $0x1c8] sm:$0xff]  ;;  %v1495_v22 = vcombine.high %v141_v17, %v149_v18  ;;  %v133_v26 = vld [vmem:[#allocation2 + $0x350] sm:$0xff] }
  0x17   :  { %956 = vmatprep.subr.bf16.mxu0 %v1459_v23  ;;  %997 = vmatprep.subr.bf16.mxu1 %v1461_v24  ;;  %v1596_v41 = vld.sshfl [vmem:[%s1660_s0] sm:$0x11 pattern:$0x75316420]  ;;  %v1427_v43 = vcombine.high %v75_v35, %v83_v36  ;;  %v1429_v45 = vcombine.high %v76_v37, %v84_v38  ;;  %v60_v48 = vld [vmem:[#allocation2 + $0x108] sm:$0xff]  ;;  %v1426_v51 = vcombine.low %v75_v35, %v83_v36  ;;  %v126_v28 = vld [vmem:[#allocation2 + $0x318] sm:$0xff] }
  0x18   :  { %v179_v44 = vcombine.high %v1596_v41, %v1596_v41  ;;  %v59_v46 = vld [vmem:[#allocation2 + $0x100] sm:$0xff]  ;;  %v68_v49 = vld [vmem:[#allocation2 + $0x148] sm:$0xff]  ;;  %v1428_v52 = vcombine.low %v76_v37, %v84_v38  ;;  %v1497_v24 = vcombine.high %v142_v19, %v150_v20  ;;  %v1613_v27 = vrot.slane %v1596_v41, %v1591_v39  ;;  %v109_v35 = vld [vmem:[#allocation2 + $0x290] sm:$0xff] }
  0x19   :  { %v67_v47 = vld [vmem:[#allocation2 + $0x140] sm:$0xff]  ;;  %v1413_v54 = vcombine.high %v60_v48, %v68_v49  ;;  %v44_v57 = vld [vmem:[#allocation2 + $0x88] sm:$0xff]  ;;  %v1412_v60 = vcombine.low %v60_v48, %v68_v49  ;;  %v117_v36 = vld [vmem:[#allocation2 + $0x2d0] sm:$0xff] }
  0x1a   :  { %957 = vmatpush1.bf16.msra.mxu0 %v1458_v31  ;;  %998 = vmatpush1.bf16.msra.mxu1 %v1460_v32  ;;  %v1601_v50 = vrot.slane %v179_v44, %v1591_v39  ;;  %v1411_v53 = vcombine.high %v59_v46, %v67_v47  ;;  %v43_v55 = vld [vmem:[#allocation2 + $0x80] sm:$0xff]  ;;  %v52_v58 = vld [vmem:[#allocation2 + $0xc8] sm:$0xff]  ;;  %v1410_v59 = vcombine.low %v59_v46, %v67_v47  ;;  %v110_v37 = vld [vmem:[#allocation2 + $0x298] sm:$0xff] }
  0x1b   :  { %958 = vmatprep.subr.bf16.mxu0 %v1443_v33  ;;  %999 = vmatprep.subr.bf16.mxu1 %v1445_v34  ;;  %v51_v56 = vld [vmem:[#allocation2 + $0xc0] sm:$0xff]  ;;  %v1397_v62 = vcombine.high %v44_v57, %v52_v58  ;;  %v28_v1 = vld [vmem:[#allocation2 + $0x8] sm:$0xff]  ;;  %v1396_v4 = vcombine.low %v44_v57, %v52_v58  ;;  %v1494_v31 = vcombine.low %v141_v17, %v149_v18  ;;  %v118_v38 = vld [vmem:[#allocation2 + $0x2d8] sm:$0xff] }
  0x1c   :  { %1523 = vmatprep.mubr.msk.bf16.mxu0 %vm899_vm0, %v1601_v50  ;;  %1525 = vmatprep.mubr.msk.bf16.mxu1 %vm899_vm0, %v1601_v50  ;;  %v1395_v61 = vcombine.high %v43_v55, %v51_v56  ;;  %v27_v63 = vld [vmem:[#allocation2] sm:$0xff]  ;;  %v36_v2 = vld [vmem:[#allocation2 + $0x48] sm:$0xff]  ;;  %v1394_v3 = vcombine.low %v43_v55, %v51_v56  ;;  %v1496_v32 = vcombine.low %v142_v19, %v150_v20  ;;  %v101_v44 = vld [vmem:[#allocation2 + $0x250] sm:$0xff] }
  0x1d   :  { %v35_v0 = vld [vmem:[#allocation2 + $0x40] sm:$0xff]  ;;  %v1381_v6 = vcombine.high %v28_v1, %v36_v2  ;;  %v156_v9 = vld [vmem:[#allocation2 + $0x408] sm:$0xff]  ;;  %v1380_v12 = vcombine.low %v28_v1, %v36_v2  ;;  %v1479_v33 = vcombine.high %v125_v25, %v133_v26  ;;  %v1481_v34 = vcombine.high %v126_v28, %v134_v29  ;;  %v102_v46 = vld [vmem:[#allocation2 + $0x258] sm:$0xff] }
  0x1e   :  { %959 = vmatpush1.bf16.msra.mxu0 %v1442_v40  ;;  %1000 = vmatpush1.bf16.msra.mxu1 %v1444_v42  ;;  %v1379_v5 = vcombine.high %v27_v63, %v35_v0  ;;  %v155_v7 = vld [vmem:[#allocation2 + $0x400] sm:$0xff]  ;;  %v164_v10 = vld [vmem:[#allocation2 + $0x448] sm:$0x11]  ;;  %v1378_v11 = vcombine.low %v27_v63, %v35_v0  ;;  %v1478_v39 = vcombine.low %v125_v25, %v133_v26  ;;  %v86_v55 = vld [vmem:[#allocation2 + $0x1d8] sm:$0xff] }
  0x1f   :  { %960 = vmatprep.subr.bf16.mxu0 %v1427_v43  ;;  %1001 = vmatprep.subr.bf16.mxu1 %v1429_v45  ;;  %v163_v8 = vld [vmem:[#allocation2 + $0x440] sm:$0x11]  ;;  %v1509_v15 = vcombine.high %v156_v9, %v164_v10  ;;  %v1508_v16 = vcombine.low %v156_v9, %v164_v10  ;;  %v1480_v40 = vcombine.low %v126_v28, %v134_v29  ;;  %v93_v43 = vld [vmem:[#allocation2 + $0x210] sm:$0xff]  ;;  %v94_v45 = vld [vmem:[#allocation2 + $0x218] sm:$0xff] }
  0x20   :  { %v1507_v13 = vcombine.high %v155_v7, %v163_v8  ;;  %v1506_v14 = vcombine.low %v155_v7, %v163_v8  ;;  %v1463_v41 = vcombine.high %v109_v35, %v117_v36  ;;  %v1465_v42 = vcombine.high %v110_v37, %v118_v38  ;;  %v70_v63 = vld [vmem:[#allocation2 + $0x158] sm:$0xff]  ;;  %v157_v20 = vld [vmem:[#allocation2 + $0x410] sm:$0xff] }
  0x21   :  { %v911_v23 = vsel %vm903_vm1, %v1508_v16, 0  ;;  %v1462_v47 = vcombine.low %v109_v35, %v117_v36  ;;  %v1464_v48 = vcombine.low %v110_v37, %v118_v38  ;;  %v1447_v49 = vcombine.high %v93_v43, %v101_v44  ;;  %v54_v7 = vld [vmem:[#allocation2 + $0xd8] sm:$0xff]  ;;  %v152_v35 = vld [vmem:[#allocation2 + $0x3e8] sm:$0xff] }
  0x22   :  { %961 = vmatpush1.bf16.msra.mxu0 %v1426_v51  ;;  %1002 = vmatpush1.bf16.msra.mxu1 %v1428_v52  ;;  %v905_v21 = vsel %vm903_vm1, %v1506_v14, 0  ;;  %v1449_v51 = vcombine.high %v94_v45, %v102_v46  ;;  %v77_v52 = vld [vmem:[#allocation2 + $0x190] sm:$0xff]  ;;  %v1446_v56 = vcombine.low %v93_v43, %v101_v44  ;;  %v1448_v57 = vcombine.low %v94_v45, %v102_v46  ;;  %v30_v14 = vld [vmem:[#allocation2 + $0x18] sm:$0xff]  ;;  %v136_v43 = vld [vmem:[#allocation2 + $0x368] sm:$0xff] }
  0x23   :  { %962 = vmatprep.subr.bf16.mxu0 %v1411_v53  ;;  %1003 = vmatprep.subr.bf16.mxu1 %v1413_v54  ;;  %v85_v53 = vld [vmem:[#allocation2 + $0x1d0] sm:$0xff]  ;;  %v78_v54 = vld [vmem:[#allocation2 + $0x198] sm:$0xff] }
  0x24   :  { %v1431_v58 = vcombine.high %v77_v52, %v85_v53  ;;  %v1430_v0 = vcombine.low %v77_v52, %v85_v53  ;;  %v1432_v1 = vcombine.low %v78_v54, %v86_v55  ;;  %v120_v52 = vld [vmem:[#allocation2 + $0x2e8] sm:$0xff] }
  0x26   :  { %963 = vmatpush1.bf16.msra.mxu0 %v1410_v59  ;;  %1004 = vmatpush1.bf16.msra.mxu1 %v1412_v60  ;;  %v1433_v59 = vcombine.high %v78_v54, %v86_v55  ;;  %v61_v60 = vld [vmem:[#allocation2 + $0x110] sm:$0xff] }
  0x27   :  { %964 = vmatprep.subr.bf16.mxu0 %v1395_v61  ;;  %1005 = vmatprep.subr.bf16.mxu1 %v1397_v62  ;;  %v69_v61 = vld [vmem:[#allocation2 + $0x150] sm:$0xff]  ;;  %v62_v62 = vld [vmem:[#allocation2 + $0x118] sm:$0xff] }
  0x28   :  { %v1415_v2 = vcombine.high %v61_v60, %v69_v61  ;;  %v1414_v8 = vcombine.low %v61_v60, %v69_v61  ;;  %v1416_v9 = vcombine.low %v62_v62, %v70_v63  ;;  %v104_v60 = vld [vmem:[#allocation2 + $0x268] sm:$0xff] }
  0x2a   :  { %965 = vmatpush1.bf16.msra.mxu0 %v1394_v3  ;;  %1006 = vmatpush1.bf16.msra.mxu1 %v1396_v4  ;;  %v1417_v3 = vcombine.high %v62_v62, %v70_v63  ;;  %v45_v4 = vld [vmem:[#allocation2 + $0x90] sm:$0xff] }
  0x2b   :  { %966 = vmatprep.subr.bf16.mxu0 %v1379_v5  ;;  %1007 = vmatprep.subr.bf16.mxu1 %v1381_v6  ;;  %v53_v5 = vld [vmem:[#allocation2 + $0xd0] sm:$0xff]  ;;  %v46_v6 = vld [vmem:[#allocation2 + $0x98] sm:$0xff] }
  0x2c   :  { %v1399_v10 = vcombine.high %v45_v4, %v53_v5  ;;  %v1398_v16 = vcombine.low %v45_v4, %v53_v5  ;;  %v1400_v17 = vcombine.low %v46_v6, %v54_v7  ;;  %v88_v4 = vld [vmem:[#allocation2 + $0x1e8] sm:$0xff] }
  0x2e   :  { %967 = vmatpush1.bf16.msra.mxu0 %v1378_v11  ;;  %1008 = vmatpush1.bf16.msra.mxu1 %v1380_v12  ;;  %v1401_v11 = vcombine.high %v46_v6, %v54_v7  ;;  %v29_v12 = vld [vmem:[#allocation2 + $0x10] sm:$0xff] }
  0x2f   :  { %1522 = vmatprep.subr.msk.bf16.mxu0 %vm903_vm1, %v1507_v13  ;;  %1524 = vmatprep.subr.msk.bf16.mxu1 %vm903_vm1, %v1509_v15  ;;  %v37_v13 = vld [vmem:[#allocation2 + $0x50] sm:$0xff]  ;;  %v38_v15 = vld [vmem:[#allocation2 + $0x58] sm:$0xff] }
  0x30   :  { %v1383_v18 = vcombine.high %v29_v12, %v37_v13  ;;  %v1385_v19 = vcombine.high %v30_v14, %v38_v15  ;;  %v1384_v25 = vcombine.low %v30_v14, %v38_v15 }
  0x32   :  { %983 = vmatpush2.bf16.msra.mxu0 %v905_v21  ;;  %1024 = vmatpush2.bf16.msra.mxu1 %v911_v23  ;;  %v165_v21 = vld [vmem:[#allocation2 + $0x450] sm:$0x11]  ;;  %v166_v23 = vld [vmem:[#allocation2 + $0x458] sm:$0x11] }
  0x33   :  { %1034 = vmatprep.subr.bf16.mxu0 %v1495_v22  ;;  %1075 = vmatprep.subr.bf16.mxu1 %v1497_v24  ;;  %v158_v22 = vld [vmem:[#allocation2 + $0x418] sm:$0xff]  ;;  %v1382_v24 = vcombine.low %v29_v12, %v37_v13  ;;  %v1511_v26 = vcombine.high %v157_v20, %v165_v21  ;;  %v1510_v28 = vcombine.low %v157_v20, %v165_v21  ;;  %v72_v12 = vld [vmem:[#allocation2 + $0x168] sm:$0xff] }
  0x34   :  { %v1513_v29 = vcombine.high %v158_v22, %v166_v23  ;;  %v56_v20 = vld [vmem:[#allocation2 + $0xe8] sm:$0xff] }
  0x35   :  { %985 = vmatmul.mubr.bf16.vlgmr.msra.gmra.mxu0 %v1613_v27  ;;  %1026 = vmatmul.mubr.bf16.vlgmr.msra.gmra.mxu1 %v1613_v27  ;;  %v917_v36 = vsel %vm903_vm1, %v1510_v28, 0  ;;  %v32_v28 = vld [vmem:[#allocation2 + $0x28] sm:$0xff] }
  0x36   :  { %1035 = vmatpush1.bf16.msra.mxu0 %v1494_v31  ;;  %1076 = vmatpush1.bf16.msra.mxu1 %v1496_v32  ;;  %v1512_v31 = vcombine.low %v158_v22, %v166_v23  ;;  %v143_v32 = vld [vmem:[#allocation2 + $0x3a0] sm:$0xff] }
  0x37   :  { %1036 = vmatprep.subr.bf16.mxu0 %v1479_v33  ;;  %1077 = vmatprep.subr.bf16.mxu1 %v1481_v34  ;;  %v151_v33 = vld [vmem:[#allocation2 + $0x3e0] sm:$0xff]  ;;  %v144_v34 = vld [vmem:[#allocation2 + $0x3a8] sm:$0xff] }
  0x38   :  { %1527 = vmatprep.mubr.msk.bf16.mxu0 %vm899_vm0, %v1601_v50  ;;  %1529 = vmatprep.mubr.msk.bf16.mxu1 %vm899_vm0, %v1601_v50  ;;  %v1499_v37 = vcombine.high %v143_v32, %v151_v33  ;;  %v923_v38 = vsel %vm903_vm1, %v1512_v31, 0  ;;  %v1498_v44 = vcombine.low %v143_v32, %v151_v33  ;;  %v1500_v45 = vcombine.low %v144_v34, %v152_v35 }
  0x3a   :  { %1037 = vmatpush1.bf16.msra.mxu0 %v1478_v39  ;;  %1078 = vmatpush1.bf16.msra.mxu1 %v1480_v40  ;;  %v1501_v39 = vcombine.high %v144_v34, %v152_v35  ;;  %v127_v40 = vld [vmem:[#allocation2 + $0x320] sm:$0xff] }
  0x3b   :  { %1038 = vmatprep.subr.bf16.mxu0 %v1463_v41  ;;  %1079 = vmatprep.subr.bf16.mxu1 %v1465_v42  ;;  %v135_v41 = vld [vmem:[#allocation2 + $0x360] sm:$0xff]  ;;  %v128_v42 = vld [vmem:[#allocation2 + $0x328] sm:$0xff] }
  0x3c   :  { %v1483_v46 = vcombine.high %v127_v40, %v135_v41  ;;  %v1482_v53 = vcombine.low %v127_v40, %v135_v41  ;;  %v1484_v54 = vcombine.low %v128_v42, %v136_v43  ;;  %v159_v35 = vld [vmem:[#allocation2 + $0x420] sm:$0xff] }
  0x3e   :  { %1039 = vmatpush1.bf16.msra.mxu0 %v1462_v47  ;;  %1080 = vmatpush1.bf16.msra.mxu1 %v1464_v48  ;;  %v1485_v47 = vcombine.high %v128_v42, %v136_v43  ;;  %v111_v48 = vld [vmem:[#allocation2 + $0x2a0] sm:$0xff] }
  0x3f   :  { %1040 = vmatprep.subr.bf16.mxu0 %v1447_v49  ;;  %1081 = vmatprep.subr.bf16.mxu1 %v1449_v51  ;;  %v119_v49 = vld [vmem:[#allocation2 + $0x2e0] sm:$0xff]  ;;  %v112_v51 = vld [vmem:[#allocation2 + $0x2a8] sm:$0xff] }
  0x40   :  { %v1467_v55 = vcombine.high %v111_v48, %v119_v49  ;;  %v1466_v61 = vcombine.low %v111_v48, %v119_v49  ;;  %v1468_v62 = vcombine.low %v112_v51, %v120_v52  ;;  %v154_v48 = vld [vmem:[#allocation2 + $0x3f8] sm:$0xff] }
  0x42   :  { %1041 = vmatpush1.bf16.msra.mxu0 %v1446_v56  ;;  %1082 = vmatpush1.bf16.msra.mxu1 %v1448_v57  ;;  %v1469_v56 = vcombine.high %v112_v51, %v120_v52  ;;  %v95_v57 = vld [vmem:[#allocation2 + $0x220] sm:$0xff] }
  0x43   :  { %1042 = vmatprep.subr.bf16.mxu0 %v1431_v58  ;;  %1083 = vmatprep.subr.bf16.mxu1 %v1433_v59  ;;  %v103_v58 = vld [vmem:[#allocation2 + $0x260] sm:$0xff]  ;;  %v96_v59 = vld [vmem:[#allocation2 + $0x228] sm:$0xff] }
  0x44   :  { %v1451_v63 = vcombine.high %v95_v57, %v103_v58  ;;  %v1450_v5 = vcombine.low %v95_v57, %v103_v58  ;;  %v1452_v6 = vcombine.low %v96_v59, %v104_v60  ;;  %v138_v57 = vld [vmem:[#allocation2 + $0x378] sm:$0xff] }
  0x46   :  { %1043 = vmatpush1.bf16.msra.mxu0 %v1430_v0  ;;  %1084 = vmatpush1.bf16.msra.mxu1 %v1432_v1  ;;  %v1453_v0 = vcombine.high %v96_v59, %v104_v60  ;;  %v79_v1 = vld [vmem:[#allocation2 + $0x1a0] sm:$0xff] }
  0x47   :  { %1044 = vmatprep.subr.bf16.mxu0 %v1415_v2  ;;  %1085 = vmatprep.subr.bf16.mxu1 %v1417_v3  ;;  %v87_v2 = vld [vmem:[#allocation2 + $0x1e0] sm:$0xff]  ;;  %v80_v3 = vld [vmem:[#allocation2 + $0x1a8] sm:$0xff] }
  0x48   :  { %v1435_v7 = vcombine.high %v79_v1, %v87_v2  ;;  %v1434_v13 = vcombine.low %v79_v1, %v87_v2  ;;  %v1436_v14 = vcombine.low %v80_v3, %v88_v4  ;;  %v122_v1 = vld [vmem:[#allocation2 + $0x2f8] sm:$0xff] }
  0x4a   :  { %1045 = vmatpush1.bf16.msra.mxu0 %v1414_v8  ;;  %1086 = vmatpush1.bf16.msra.mxu1 %v1416_v9  ;;  %v1437_v8 = vcombine.high %v80_v3, %v88_v4  ;;  %v63_v9 = vld [vmem:[#allocation2 + $0x120] sm:$0xff] }
  0x4b   :  { %1046 = vmatprep.subr.bf16.mxu0 %v1399_v10  ;;  %1087 = vmatprep.subr.bf16.mxu1 %v1401_v11  ;;  %v71_v10 = vld [vmem:[#allocation2 + $0x160] sm:$0xff]  ;;  %v64_v11 = vld [vmem:[#allocation2 + $0x128] sm:$0xff] }
  0x4c   :  { %v1419_v15 = vcombine.high %v63_v9, %v71_v10  ;;  %v1418_v21 = vcombine.low %v63_v9, %v71_v10  ;;  %v1420_v22 = vcombine.low %v64_v11, %v72_v12  ;;  %v106_v9 = vld [vmem:[#allocation2 + $0x278] sm:$0xff] }
  0x4e   :  { %1047 = vmatpush1.bf16.msra.mxu0 %v1398_v16  ;;  %1088 = vmatpush1.bf16.msra.mxu1 %v1400_v17  ;;  %v1421_v16 = vcombine.high %v64_v11, %v72_v12  ;;  %v47_v17 = vld [vmem:[#allocation2 + $0xa0] sm:$0xff] }
  0x4f   :  { %1048 = vmatprep.subr.bf16.mxu0 %v1383_v18  ;;  %1089 = vmatprep.subr.bf16.mxu1 %v1385_v19  ;;  %v55_v18 = vld [vmem:[#allocation2 + $0xe0] sm:$0xff]  ;;  %v48_v19 = vld [vmem:[#allocation2 + $0xa8] sm:$0xff] }
  0x50   :  { %v1403_v23 = vcombine.high %v47_v17, %v55_v18  ;;  %v1402_v31 = vcombine.low %v47_v17, %v55_v18  ;;  %v1404_v32 = vcombine.low %v48_v19, %v56_v20  ;;  %v90_v17 = vld [vmem:[#allocation2 + $0x1f8] sm:$0xff] }
  0x52   :  { %1049 = vmatpush1.bf16.msra.mxu0 %v1382_v24  ;;  %1090 = vmatpush1.bf16.msra.mxu1 %v1384_v25  ;;  %v1405_v24 = vcombine.high %v48_v19, %v56_v20  ;;  %v31_v25 = vld [vmem:[#allocation2 + $0x20] sm:$0xff] }
  0x53   :  { %1526 = vmatprep.subr.msk.bf16.mxu0 %vm903_vm1, %v1511_v26  ;;  %1528 = vmatprep.subr.msk.bf16.mxu1 %vm903_vm1, %v1513_v29  ;;  %v39_v26 = vld [vmem:[#allocation2 + $0x60] sm:$0xff]  ;;  %v40_v29 = vld [vmem:[#allocation2 + $0x68] sm:$0xff] }
  0x54   :  { %v1387_v33 = vcombine.high %v31_v25, %v39_v26  ;;  %v1389_v34 = vcombine.high %v32_v28, %v40_v29  ;;  %v1388_v40 = vcombine.low %v32_v28, %v40_v29 }
  0x56   :  { %1065 = vmatpush2.bf16.msra.mxu0 %v917_v36  ;;  %1106 = vmatpush2.bf16.msra.mxu1 %v923_v38  ;;  %v167_v36 = vld [vmem:[#allocation2 + $0x460] sm:$0x11]  ;;  %v168_v38 = vld [vmem:[#allocation2 + $0x468] sm:$0x11] }
  0x57   :  { %1116 = vmatprep.subr.bf16.mxu0 %v1499_v37  ;;  %1157 = vmatprep.subr.bf16.mxu1 %v1501_v39  ;;  %v160_v37 = vld [vmem:[#allocation2 + $0x428] sm:$0xff]  ;;  %v1386_v39 = vcombine.low %v31_v25, %v39_v26  ;;  %v1515_v41 = vcombine.high %v159_v35, %v167_v36  ;;  %v1514_v42 = vcombine.low %v159_v35, %v167_v36 }
  0x58   :  { %v1517_v43 = vcombine.high %v160_v37, %v168_v38 }
  0x59   :  { %1067 = vmatmul.mubr.bf16.vlgmr.msra.gmra.mxu0 %v1613_v27  ;;  %1108 = vmatmul.mubr.bf16.vlgmr.msra.gmra.mxu1 %v1613_v27  ;;  %v929_v49 = vsel %vm903_vm1, %v1514_v42, 0  ;;  %v42_v42 = vld [vmem:[#allocation2 + $0x78] sm:$0xff] }
  0x5a   :  { %1117 = vmatpush1.bf16.msra.mxu0 %v1498_v44  ;;  %1158 = vmatpush1.bf16.msra.mxu1 %v1500_v45  ;;  %v1516_v44 = vcombine.low %v160_v37, %v168_v38  ;;  %v145_v45 = vld [vmem:[#allocation2 + $0x3b0] sm:$0xff] }
  0x5b   :  { %1118 = vmatprep.subr.bf16.mxu0 %v1483_v46  ;;  %1159 = vmatprep.subr.bf16.mxu1 %v1485_v47  ;;  %v153_v46 = vld [vmem:[#allocation2 + $0x3f0] sm:$0xff]  ;;  %v146_v47 = vld [vmem:[#allocation2 + $0x3b8] sm:$0xff] }
  0x5c   :  { %1531 = vmatprep.mubr.msk.bf16.mxu0 %vm899_vm0, %v1601_v50  ;;  %1533 = vmatprep.mubr.msk.bf16.mxu1 %vm899_vm0, %v1601_v50  ;;  %v1503_v51 = vcombine.high %v145_v45, %v153_v46  ;;  %v935_v52 = vsel %vm903_vm1, %v1516_v44, 0  ;;  %v1502_v58 = vcombine.low %v145_v45, %v153_v46  ;;  %v1504_v59 = vcombine.low %v146_v47, %v154_v48 }
  0x5e   :  { %1119 = vmatpush1.bf16.msra.mxu0 %v1482_v53  ;;  %1160 = vmatpush1.bf16.msra.mxu1 %v1484_v54  ;;  %v1505_v53 = vcombine.high %v146_v47, %v154_v48  ;;  %v129_v54 = vld [vmem:[#allocation2 + $0x330] sm:$0xff] }
  0x5f   :  { %1120 = vmatprep.subr.bf16.mxu0 %v1467_v55  ;;  %1161 = vmatprep.subr.bf16.mxu1 %v1469_v56  ;;  %v137_v55 = vld [vmem:[#allocation2 + $0x370] sm:$0xff]  ;;  %v130_v56 = vld [vmem:[#allocation2 + $0x338] sm:$0xff] }
  0x60   :  { %v1487_v60 = vcombine.high %v129_v54, %v137_v55  ;;  %v1486_v2 = vcombine.low %v129_v54, %v137_v55  ;;  %v1488_v3 = vcombine.low %v130_v56, %v138_v57  ;;  %v161_v47 = vld [vmem:[#allocation2 + $0x430] sm:$0xff] }
  0x61   :  { %v169_v48 = vld [vmem:[#allocation2 + $0x470] sm:$0x11] }
  0x62   :  { %1121 = vmatpush1.bf16.msra.mxu0 %v1466_v61  ;;  %1162 = vmatpush1.bf16.msra.mxu1 %v1468_v62  ;;  %v1489_v61 = vcombine.high %v130_v56, %v138_v57  ;;  %v113_v62 = vld [vmem:[#allocation2 + $0x2b0] sm:$0xff]  ;;  %v1519_v54 = vcombine.high %v161_v47, %v169_v48  ;;  %v1518_v55 = vcombine.low %v161_v47, %v169_v48 }
  0x63   :  { %1122 = vmatprep.subr.bf16.mxu0 %v1451_v63  ;;  %1163 = vmatprep.subr.bf16.mxu1 %v1453_v0  ;;  %v121_v63 = vld [vmem:[#allocation2 + $0x2f0] sm:$0xff]  ;;  %v114_v0 = vld [vmem:[#allocation2 + $0x2b8] sm:$0xff] }
  0x64   :  { %v1471_v4 = vcombine.high %v113_v62, %v121_v63  ;;  %v1470_v10 = vcombine.low %v113_v62, %v121_v63  ;;  %v1472_v11 = vcombine.low %v114_v0, %v122_v1 }
  0x66   :  { %1123 = vmatpush1.bf16.msra.mxu0 %v1450_v5  ;;  %1164 = vmatpush1.bf16.msra.mxu1 %v1452_v6  ;;  %v1473_v5 = vcombine.high %v114_v0, %v122_v1  ;;  %v97_v6 = vld [vmem:[#allocation2 + $0x230] sm:$0xff] }
  0x67   :  { %1124 = vmatprep.subr.bf16.mxu0 %v1435_v7  ;;  %1165 = vmatprep.subr.bf16.mxu1 %v1437_v8  ;;  %v105_v7 = vld [vmem:[#allocation2 + $0x270] sm:$0xff]  ;;  %v98_v8 = vld [vmem:[#allocation2 + $0x238] sm:$0xff] }
  0x68   :  { %v1455_v12 = vcombine.high %v97_v6, %v105_v7  ;;  %v1454_v18 = vcombine.low %v97_v6, %v105_v7  ;;  %v1456_v19 = vcombine.low %v98_v8, %v106_v9 }
  0x6a   :  { %1125 = vmatpush1.bf16.msra.mxu0 %v1434_v13  ;;  %1166 = vmatpush1.bf16.msra.mxu1 %v1436_v14  ;;  %v1457_v13 = vcombine.high %v98_v8, %v106_v9  ;;  %v81_v14 = vld [vmem:[#allocation2 + $0x1b0] sm:$0xff] }
  0x6b   :  { %1126 = vmatprep.subr.bf16.mxu0 %v1419_v15  ;;  %1167 = vmatprep.subr.bf16.mxu1 %v1421_v16  ;;  %v89_v15 = vld [vmem:[#allocation2 + $0x1f0] sm:$0xff]  ;;  %v82_v16 = vld [vmem:[#allocation2 + $0x1b8] sm:$0xff] }
  0x6c   :  { %v1439_v20 = vcombine.high %v81_v14, %v89_v15  ;;  %v1438_v25 = vcombine.low %v81_v14, %v89_v15  ;;  %v1440_v26 = vcombine.low %v82_v16, %v90_v17 }
  0x6e   :  { %1127 = vmatpush1.bf16.msra.mxu0 %v1418_v21  ;;  %1168 = vmatpush1.bf16.msra.mxu1 %v1420_v22  ;;  %v65_v21 = vld [vmem:[#allocation2 + $0x130] sm:$0xff] }
  0x6f   :  { %1128 = vmatprep.subr.bf16.mxu0 %v1403_v23  ;;  %1169 = vmatprep.subr.bf16.mxu1 %v1405_v24  ;;  %v73_v22 = vld [vmem:[#allocation2 + $0x170] sm:$0xff]  ;;  %v66_v23 = vld [vmem:[#allocation2 + $0x138] sm:$0xff] }
  0x70   :  { %v74_v24 = vld [vmem:[#allocation2 + $0x178] sm:$0xff]  ;;  %v1423_v28 = vcombine.high %v65_v21, %v73_v22  ;;  %v1422_v35 = vcombine.low %v65_v21, %v73_v22 }
  0x71   :  { %v1425_v29 = vcombine.high %v66_v23, %v74_v24  ;;  %v1424_v36 = vcombine.low %v66_v23, %v74_v24 }
  0x72   :  { %1129 = vmatpush1.bf16.msra.mxu0 %v1402_v31  ;;  %1170 = vmatpush1.bf16.msra.mxu1 %v1404_v32  ;;  %v49_v31 = vld [vmem:[#allocation2 + $0xb0] sm:$0xff] }
  0x73   :  { %1130 = vmatprep.subr.bf16.mxu0 %v1387_v33  ;;  %1171 = vmatprep.subr.bf16.mxu1 %v1389_v34  ;;  %v57_v32 = vld [vmem:[#allocation2 + $0xf0] sm:$0xff]  ;;  %v50_v33 = vld [vmem:[#allocation2 + $0xb8] sm:$0xff] }
  0x74   :  { %v58_v34 = vld [vmem:[#allocation2 + $0xf8] sm:$0xff]  ;;  %v1407_v37 = vcombine.high %v49_v31, %v57_v32 }
  0x75   :  { %v1409_v38 = vcombine.high %v50_v33, %v58_v34  ;;  %v1408_v44 = vcombine.low %v50_v33, %v58_v34 }
  0x76   :  { %1131 = vmatpush1.bf16.msra.mxu0 %v1386_v39  ;;  %1172 = vmatpush1.bf16.msra.mxu1 %v1388_v40  ;;  %v33_v39 = vld [vmem:[#allocation2 + $0x30] sm:$0xff] }
  0x77   :  { %1530 = vmatprep.subr.msk.bf16.mxu0 %vm903_vm1, %v1515_v41  ;;  %1532 = vmatprep.subr.msk.bf16.mxu1 %vm903_vm1, %v1517_v43  ;;  %v41_v40 = vld [vmem:[#allocation2 + $0x70] sm:$0xff]  ;;  %v34_v41 = vld [vmem:[#allocation2 + $0x38] sm:$0xff]  ;;  %v1406_v43 = vcombine.low %v49_v31, %v57_v32 }
  0x78   :  { %v1391_v45 = vcombine.high %v33_v39, %v41_v40  ;;  %v1393_v46 = vcombine.high %v34_v41, %v42_v42 }
  0x7a   :  { %1147 = vmatpush2.bf16.msra.mxu0 %v929_v49  ;;  %1188 = vmatpush2.bf16.msra.mxu1 %v935_v52  ;;  %v162_v49 = vld [vmem:[#allocation2 + $0x438] sm:$0xff]  ;;  %v1390_v52 = vcombine.low %v33_v39, %v41_v40 }
  0x7b   :  { %1198 = vmatprep.subr.bf16.mxu0 %v1503_v51  ;;  %1239 = vmatprep.subr.bf16.mxu1 %v1505_v53  ;;  %v170_v51 = vld [vmem:[#allocation2 + $0x478] sm:$0x11]  ;;  %v1392_v53 = vcombine.low %v34_v41, %v42_v42 }
  0x7c   :  { %v1521_v56 = vcombine.high %v162_v49, %v170_v51  ;;  %v1520_v57 = vcombine.low %v162_v49, %v170_v51 }
  0x7d   :  { %1149 = vmatmul.mubr.bf16.vlgmr.msra.gmra.mxu0 %v1613_v27  ;;  %1190 = vmatmul.mubr.bf16.vlgmr.msra.gmra.mxu1 %v1613_v27 }
  0x7e   :  { %1199 = vmatpush1.bf16.msra.mxu0 %v1502_v58  ;;  %1240 = vmatpush1.bf16.msra.mxu1 %v1504_v59  ;;  %v941_v58 = vsel %vm903_vm1, %v1518_v55, 0  ;;  %v947_v59 = vsel %vm903_vm1, %v1520_v57, 0 }
  0x7f   :  { %1200 = vmatprep.subr.bf16.mxu0 %v1487_v60  ;;  %1241 = vmatprep.subr.bf16.mxu1 %v1489_v61  ;;  %v1569_v60 = vmov 1983009808  }
  0x80   :  { %1535 = vmatprep.mubr.msk.bf16.mxu0 %vm899_vm0, %v1601_v50  ;;  %1537 = vmatprep.mubr.msk.bf16.mxu1 %vm899_vm0, %v1601_v50  ;;  %v1441_v50 = vcombine.high %v82_v16, %v90_v17  ;;  %v1299_v61 = vunpack.c.l.s4 %v1569_v60 }
  0x82   :  { %1201 = vmatpush1.bf16.msra.mxu0 %v1486_v2  ;;  %1242 = vmatpush1.bf16.msra.mxu1 %v1488_v3  ;;  %v1300_v62 = vunpack.c.0.s8 %v1299_v61 }
  0x83   :  { %1202 = vmatprep.subr.bf16.mxu0 %v1471_v4  ;;  %1243 = vmatprep.subr.bf16.mxu1 %v1473_v5 }
  0x84   :  { %v1303_v1 = vsub.s32 %v1300_v62, %v1588_v30 }
  0x86   :  { %1203 = vmatpush1.bf16.msra.mxu0 %v1470_v10  ;;  %1244 = vmatpush1.bf16.msra.mxu1 %v1472_v11 }
  0x87   :  { %1204 = vmatprep.subr.bf16.mxu0 %v1455_v12  ;;  %1245 = vmatprep.subr.bf16.mxu1 %v1457_v13 }
  0x8a   :  { %1205 = vmatpush1.bf16.msra.mxu0 %v1454_v18  ;;  %1246 = vmatpush1.bf16.msra.mxu1 %v1456_v19 }
  0x8b   :  { %1206 = vmatprep.subr.bf16.mxu0 %v1439_v20  ;;  %1247 = vmatprep.subr.bf16.mxu1 %v1441_v50 }
  0x8e   :  { %1207 = vmatpush1.bf16.msra.mxu0 %v1438_v25  ;;  %1248 = vmatpush1.bf16.msra.mxu1 %v1440_v26 }
  0x8f   :  { %1208 = vmatprep.subr.bf16.mxu0 %v1423_v28  ;;  %1249 = vmatprep.subr.bf16.mxu1 %v1425_v29 }
  0x92   :  { %1209 = vmatpush1.bf16.msra.mxu0 %v1422_v35  ;;  %1250 = vmatpush1.bf16.msra.mxu1 %v1424_v36 }
  0x93   :  { %1210 = vmatprep.subr.bf16.mxu0 %v1407_v37  ;;  %1251 = vmatprep.subr.bf16.mxu1 %v1409_v38 }
  0x96   :  { %1211 = vmatpush1.bf16.msra.mxu0 %v1406_v43  ;;  %1252 = vmatpush1.bf16.msra.mxu1 %v1408_v44 }
  0x97   :  { %1212 = vmatprep.subr.bf16.mxu0 %v1391_v45  ;;  %1253 = vmatprep.subr.bf16.mxu1 %v1393_v46 }
  0x9a   :  { %1213 = vmatpush1.bf16.msra.mxu0 %v1390_v52  ;;  %1254 = vmatpush1.bf16.msra.mxu1 %v1392_v53 }
  0x9b   :  { %1534 = vmatprep.subr.msk.bf16.mxu0 %vm903_vm1, %v1519_v54  ;;  %1536 = vmatprep.subr.msk.bf16.mxu1 %vm903_vm1, %v1521_v56 }
  0x9e   :  { %1229 = vmatpush2.bf16.msra.mxu0 %v941_v58  ;;  %1270 = vmatpush2.bf16.msra.mxu1 %v947_v59 }
  0xa1   :  { %1231 = vmatmul.mubr.bf16.vlgmr.msra.gmra.mxu0 %v1613_v27  ;;  %1272 = vmatmul.mubr.bf16.vlgmr.msra.gmra.mxu1 %v1613_v27 }
  0xf5   :  { %v986_v63 = vpop.f32.mrf.mxu0  ;;  %v1027_v0 = vpop.f32.mrf.mxu1 }
  0xf7   :  { %v988_v2 = vpop.f32.mrf.mxu0  ;;  %v1029_v4 = vpop.f32.mrf.mxu1 }
  0xf8   :  { %v1296_v3 = vcombine.low %v986_v63, %v988_v2  ;;  %v1297_v5 = vcombine.low %v1027_v0, %v1029_v4 }
  0xf9   :  { %v990_v6 = vpop.f32.mrf.mxu0  ;;  %v1031_v8 = vpop.f32.mrf.mxu1 }
  0xfa   :  { %v1304_v7 = vrot.slane %v1296_v3, %v1303_v1  ;;  %v1311_v9 = vrot.slane %v1297_v5, %v1303_v1 }
  0xfb   :  { %v991_v10 = vpop.f32.mrf.mxu0  ;;  %v1032_v11 = vpop.f32.mrf.mxu1 }
  0xfc   :  { %v1312_v12 = vcombine.low %v1304_v7, %v1311_v9 }
  0xfe   :  { %1368 = vst [vmem:[%s1662_s2] sm:$0xff] %v1312_v12 }
 0x119   :  { %v1068_v27 = vpop.f32.mrf.mxu0  ;;  %v1109_v13 = vpop.f32.mrf.mxu1 }
 0x11b   :  { %v1070_v14 = vpop.f32.mrf.mxu0  ;;  %v1111_v30 = vpop.f32.mrf.mxu1 }
 0x11c   :  { %v1313_v15 = vcombine.low %v1068_v27, %v1070_v14  ;;  %v1314_v16 = vcombine.low %v1109_v13, %v1111_v30 }
 0x11d   :  { %v1072_v17 = vpop.f32.mrf.mxu0  ;;  %v1113_v19 = vpop.f32.mrf.mxu1 }
 0x11e   :  { %v1321_v18 = vrot.slane %v1313_v15, %v1303_v1  ;;  %v1328_v20 = vrot.slane %v1314_v16, %v1303_v1 }
 0x11f   :  { %v1073_v50 = vpop.f32.mrf.mxu0  ;;  %v1114_v21 = vpop.f32.mrf.mxu1 }
 0x120   :  { %v1329_v22 = vcombine.low %v1321_v18, %v1328_v20 }
 0x122   :  { %1369 = vst [vmem:[%s1662_s2 + $0x8] sm:$0xff] %v1329_v22 }
 0x13d   :  { %v1150_v23 = vpop.f32.mrf.mxu0  ;;  %v1191_v24 = vpop.f32.mrf.mxu1 }
 0x13f   :  { %v1152_v25 = vpop.f32.mrf.mxu0  ;;  %v1193_v28 = vpop.f32.mrf.mxu1 }
 0x140   :  { %v1330_v26 = vcombine.low %v1150_v23, %v1152_v25  ;;  %v1331_v29 = vcombine.low %v1191_v24, %v1193_v28 }
 0x141   :  { %v1154_v31 = vpop.f32.mrf.mxu0  ;;  %v1195_v33 = vpop.f32.mrf.mxu1 }
 0x142   :  { %v1338_v32 = vrot.slane %v1330_v26, %v1303_v1  ;;  %v1345_v34 = vrot.slane %v1331_v29, %v1303_v1 }
 0x143   :  { %v1155_v35 = vpop.f32.mrf.mxu0  ;;  %v1196_v36 = vpop.f32.mrf.mxu1 }
 0x144   :  { %v1346_v37 = vcombine.low %v1338_v32, %v1345_v34 }
 0x146   :  { %1370 = vst [vmem:[%s1662_s2 + $0x10] sm:$0xff] %v1346_v37 }
 0x161   :  { %v1232_v38 = vpop.f32.mrf.mxu0  ;;  %v1273_v39 = vpop.f32.mrf.mxu1 }
 0x163   :  { %v1234_v40 = vpop.f32.mrf.mxu0  ;;  %v1275_v42 = vpop.f32.mrf.mxu1 }
 0x164   :  { %v1347_v41 = vcombine.low %v1232_v38, %v1234_v40  ;;  %v1348_v43 = vcombine.low %v1273_v39, %v1275_v42 }
 0x165   :  { %v1236_v44 = vpop.f32.mrf.mxu0  ;;  %v1277_v46 = vpop.f32.mrf.mxu1 }
 0x166   :  { %v1355_v45 = vrot.slane %v1347_v41, %v1303_v1  ;;  %v1362_v47 = vrot.slane %v1348_v43, %v1303_v1 }
 0x167   :  { %v1237_v48 = vpop.f32.mrf.mxu0  ;;  %v1278_v49 = vpop.f32.mrf.mxu1 }
 0x168   :  { %v1363_v51 = vcombine.low %v1355_v45, %v1362_v47 }
 0x16a   :  { %1371 = vst [vmem:[%s1662_s2 + $0x18] sm:$0xff] %v1363_v51 }
 0x16b   :  { %1376 = vsyncpa [#allocation3], 1 }

// kernel: generator_forward.13
= control target key start
LH: loop header
LB: loop body
LE: loop exit
PB: predicated region body
PF: predicated region fallthrough
CT: control target
= control target key end

     0   :  { %vm14_vm0 = vcmask 516096   ;;  %vm34_vm1 = vcmask 523264   ;;  %v140_v0 = vmov 0.0   ;;  %s258_s0 = inlined_call_operand.vmem [shape: f32[128,64], index: 0, kind: input, shape index: {}]   ;;  %s259_s1 = inlined_call_operand.vmem [shape: f32[1,64], index: 1, kind: output, shape index: {0}]   ;;  %s260_s2 = inlined_call_operand.vmem [shape: f32[1,64], index: 2, kind: output, shape index: {1}]  }
   0x1   :  { %15 = vst.msk [vmem:[%s259_s1] sm:$0x1] %vm14_vm0, %v140_v0  ;;  %v17_v1 = vld [vmem:[%s258_s0] sm:$0xff]  ;;  %v18_v2 = vld [vmem:[%s258_s0 + $0x8] sm:$0xff]  ;;  %v19_v3 = vld [vmem:[%s258_s0 + $0x10] sm:$0xff] }
   0x2   :  { %16 = vst.msk [vmem:[%s260_s2] sm:$0x1] %vm14_vm0, %v140_v0  ;;  %v35_v4 = vsel %vm34_vm1, %v17_v1, 0.0  ;;  %v36_v5 = vsel %vm34_vm1, %v18_v2, 0.0  ;;  %v38_v6 = vsel %vm34_vm1, %v19_v3, 0.0  ;;  %v20_v7 = vld [vmem:[%s258_s0 + $0x18] sm:$0xff]  ;;  %v76_v15 = vmul.f32 %v17_v1, %v17_v1 }
   0x3   :  { %v37_v8 = vadd.f32 %v36_v5, %v35_v4  ;;  %v40_v9 = vsel %vm34_vm1, %v20_v7, 0.0  ;;  %v21_v10 = vld [vmem:[%s258_s0 + $0x20] sm:$0xff]  ;;  %v22_v13 = vld [vmem:[%s258_s0 + $0x28] sm:$0xff]  ;;  %v77_v16 = vmul.f32 %v18_v2, %v18_v2  ;;  %v78_v17 = vmul.f32 %v19_v3, %v19_v3  ;;  %v23_v19 = vld [vmem:[%s258_s0 + $0x30] sm:$0xff] }
   0x4   :  { %v42_v12 = vsel %vm34_vm1, %v21_v10, 0.0  ;;  %v44_v18 = vsel %vm34_vm1, %v22_v13, 0.0  ;;  %v79_v21 = vmul.f32 %v20_v7, %v20_v7  ;;  %v46_v22 = vsel %vm34_vm1, %v23_v19, 0.0  ;;  %v24_v24 = vld [vmem:[%s258_s0 + $0x38] sm:$0xff]  ;;  %v25_v31 = vld [vmem:[%s258_s0 + $0x40] sm:$0xff]  ;;  %v26_v37 = vld [vmem:[%s258_s0 + $0x48] sm:$0xff] }
   0x5   :  { %v39_v11 = vadd.f32 %v38_v6, %v37_v8  ;;  %v80_v23 = vmul.f32 %v21_v10, %v21_v10  ;;  %v92_v26 = vsel %vm34_vm1, %v76_v15, 0.0  ;;  %v93_v27 = vsel %vm34_vm1, %v77_v16, 0.0  ;;  %v27_v43 = vld [vmem:[%s258_s0 + $0x50] sm:$0xff]  ;;  %v28_v49 = vld [vmem:[%s258_s0 + $0x58] sm:$0xff]  ;;  %v29_v55 = vld [vmem:[%s258_s0 + $0x60] sm:$0xff] }
   0x6   :  { %v95_v28 = vsel %vm34_vm1, %v78_v17, 0.0  ;;  %v48_v29 = vsel %vm34_vm1, %v24_v24, 0.0  ;;  %v94_v30 = vadd.f32 %v93_v27, %v92_v26  ;;  %v81_v33 = vmul.f32 %v22_v13, %v22_v13  ;;  %v30_v61 = vld [vmem:[%s258_s0 + $0x68] sm:$0xff]  ;;  %v31_v3 = vld [vmem:[%s258_s0 + $0x70] sm:$0xff] }
   0x7   :  { %v41_v14 = vadd.f32 %v40_v9, %v39_v11  ;;  %v97_v34 = vsel %vm34_vm1, %v79_v21, 0.0  ;;  %v50_v35 = vsel %vm34_vm1, %v25_v31, 0.0  ;;  %v82_v39 = vmul.f32 %v23_v19, %v23_v19  ;;  %v32_v9 = vld [vmem:[%s258_s0 + $0x78] sm:$0xff] }
   0x8   :  { %v96_v36 = vadd.f32 %v95_v28, %v94_v30  ;;  %v99_v40 = vsel %vm34_vm1, %v80_v23, 0.0  ;;  %v52_v41 = vsel %vm34_vm1, %v26_v37, 0.0  ;;  %v83_v45 = vmul.f32 %v24_v24, %v24_v24 }
   0x9   :  { %v43_v20 = vadd.f32 %v42_v12, %v41_v14  ;;  %v101_v46 = vsel %vm34_vm1, %v81_v33, 0.0  ;;  %v54_v47 = vsel %vm34_vm1, %v27_v43, 0.0  ;;  %v84_v51 = vmul.f32 %v25_v31, %v25_v31 }
   0xa   :  { %v98_v42 = vadd.f32 %v97_v34, %v96_v36  ;;  %v103_v52 = vsel %vm34_vm1, %v82_v39, 0.0  ;;  %v56_v53 = vsel %vm34_vm1, %v28_v49, 0.0  ;;  %v85_v57 = vmul.f32 %v26_v37, %v26_v37  ;;  %v33_v36 = vld [vmem:[%s259_s1] sm:$0x1] }
   0xb   :  { %v45_v25 = vadd.f32 %v44_v18, %v43_v20  ;;  %v105_v58 = vsel %vm34_vm1, %v83_v45, 0.0  ;;  %v58_v59 = vsel %vm34_vm1, %v29_v55, 0.0  ;;  %v86_v63 = vmul.f32 %v27_v43, %v27_v43 }
   0xc   :  { %v100_v48 = vadd.f32 %v99_v40, %v98_v42  ;;  %v107_v0 = vsel %vm34_vm1, %v84_v51, 0.0  ;;  %v60_v1 = vsel %vm34_vm1, %v30_v61, 0.0  ;;  %v87_v5 = vmul.f32 %v28_v49, %v28_v49 }
   0xd   :  { %v47_v32 = vadd.f32 %v46_v22, %v45_v25  ;;  %v109_v6 = vsel %vm34_vm1, %v85_v57, 0.0  ;;  %v62_v7 = vsel %vm34_vm1, %v31_v3, 0.0  ;;  %v88_v11 = vmul.f32 %v29_v55, %v29_v55 }
   0xe   :  { %v102_v54 = vadd.f32 %v101_v46, %v100_v48  ;;  %v111_v12 = vsel %vm34_vm1, %v86_v63, 0.0  ;;  %v64_v13 = vsel %vm34_vm1, %v32_v9, 0.0  ;;  %v89_v16 = vmul.f32 %v30_v61, %v30_v61 }
   0xf   :  { %v49_v38 = vadd.f32 %v48_v29, %v47_v32  ;;  %v113_v17 = vsel %vm34_vm1, %v87_v5, 0.0  ;;  %v90_v20 = vmul.f32 %v31_v3, %v31_v3  ;;  %v115_v21 = vsel %vm34_vm1, %v88_v11, 0.0 }
  0x10   :  { %v104_v60 = vadd.f32 %v103_v52, %v102_v54  ;;  %v91_v24 = vmul.f32 %v32_v9, %v32_v9  ;;  %v117_v25 = vsel %vm34_vm1, %v89_v16, 0.0 }
  0x11   :  { %v51_v44 = vadd.f32 %v50_v35, %v49_v38  ;;  %v119_v28 = vsel %vm34_vm1, %v90_v20, 0.0 }
  0x12   :  { %v106_v2 = vadd.f32 %v105_v58, %v104_v60  ;;  %v121_v31 = vsel %vm34_vm1, %v91_v24, 0.0 }
  0x13   :  { %v53_v50 = vadd.f32 %v52_v41, %v51_v44  ;;  %v75_v44 = vld [vmem:[%s260_s2] sm:$0x1] }
  0x14   :  { %v108_v8 = vadd.f32 %v107_v0, %v106_v2 }
  0x15   :  { %v55_v56 = vadd.f32 %v54_v47, %v53_v50 }
  0x16   :  { %v110_v14 = vadd.f32 %v109_v6, %v108_v8 }
  0x17   :  { %v57_v62 = vadd.f32 %v56_v53, %v55_v56 }
  0x18   :  { %v112_v18 = vadd.f32 %v111_v12, %v110_v14 }
  0x19   :  { %v59_v4 = vadd.f32 %v58_v59, %v57_v62 }
  0x1a   :  { %v114_v22 = vadd.f32 %v113_v17, %v112_v18 }
  0x1b   :  { %v61_v10 = vadd.f32 %v60_v1, %v59_v4 }
  0x1c   :  { %v116_v26 = vadd.f32 %v115_v21, %v114_v22 }
  0x1d   :  { %v63_v15 = vadd.f32 %v62_v7, %v61_v10 }
  0x1e   :  { %v118_v29 = vadd.f32 %v117_v25, %v116_v26 }
  0x1f   :  { %v65_v19 = vadd.f32 %v64_v13, %v63_v15 }
  0x20   :  { %v120_v32 = vadd.f32 %v119_v28, %v118_v29 }
  0x21   :  { %v66_v23 = vrot.slane %v65_v19, 4 }
  0x22   :  { %v122_v34 = vadd.f32 %v121_v31, %v120_v32 }
  0x23   :  { %v67_v27 = vadd.f32 %v66_v23, %v65_v19 }
  0x24   :  { %v123_v37 = vrot.slane %v122_v34, 4 }
  0x25   :  { %v68_v30 = vrot.slane %v67_v27, 2 }
  0x26   :  { %v124_v39 = vadd.f32 %v123_v37, %v122_v34 }
  0x27   :  { %v69_v33 = vadd.f32 %v68_v30, %v67_v27 }
  0x28   :  { %v125_v41 = vrot.slane %v124_v39, 2 }
  0x29   :  { %v70_v35 = vrot.slane %v69_v33, 1 }
  0x2a   :  { %v126_v42 = vadd.f32 %v125_v41, %v124_v39 }
  0x2b   :  { %v71_v38 = vadd.f32 %v70_v35, %v69_v33 }
  0x2c   :  { %v127_v43 = vrot.slane %v126_v42, 1 }
  0x2d   :  { %v72_v40 = vadd.f32 %v71_v38, %v33_v36 }
  0x2e   :  { %v128_v45 = vadd.f32 %v127_v43, %v126_v42 }
  0x2f   :  { %74 = vst.msk [vmem:[%s259_s1] sm:$0x1] %vm14_vm0, %v72_v40 }
  0x30   :  { %v129_v46 = vadd.f32 %v128_v45, %v75_v44 }
  0x32   :  { %130 = vst.msk [vmem:[%s260_s2] sm:$0x1] %vm14_vm0, %v129_v46 }

// kernel: generator_forward.14
= control target key start
LH: loop header
LB: loop body
LE: loop exit
PB: predicated region body
PF: predicated region fallthrough
CT: control target
= control target key end

     0   :  { %9 = vsyncpa [#allocation3], 0  ;;  %s618_s15 = smov [#allocation2]   ;;  %s964_s0 = inlined_call_operand.vmem [shape: f32[128,64], index: 0, kind: input, shape index: {}]   ;;  %s965_s1 = inlined_call_operand.vmem [shape: f32[1,64], index: 1, kind: input, shape index: {}]   ;;  %s966_s2 = inlined_call_operand.vmem [shape: f32[1,64], index: 2, kind: input, shape index: {}]   ;;  %s967_s3 = inlined_call_operand.hbm [shape: bf16[64,512], index: 3, kind: input, shape index: {}]   ;;  %s968_s4 = inlined_call_operand.vmem [shape: f32[128,512], index: 4, kind: output, shape index: {}]  }
   0x1   :  { %s21_s16 = sshll.u32 %s618_s15, 4  ;;  %s22_s16 = int_to_ptr.vmem [resolvable:$true] %s21_s16 }
   0x2   :  { %s604_s17 = scalar_lea.vmem %s22_s16, 2048  ;;  %p609_p1 = scmp.lt.s32.totalorder %s22_s16, %s22_s16 }
   0x3   :  { %p605_p0 = scmp.ne.s32.totalorder %s22_s16, %s604_s17  ;;  %p610_p2 = scmp.lt.s32.totalorder %s604_s17, %s604_s17 }
   0x5   :  { %p611_p3 = por %p610_p2, %p609_p1 }
   0x7   :  { %p612_p4 = pnand %p611_p3, %p605_p0 }
   0x9   :  { %615 = shalt.err (!%p612_p4)
}
   0xa   :  { %s619_s18 = smov 256   ;;  %s620_s19 = smov 16  }
   0xb   :  { %27 = dma.hbm_to_vmem [thread:$0]  %s967_s3, 2048, %s22_s16, [#allocation3], %s619_s18, %s619_s18, %s620_s19  }
   0xc   :  { %616 = dma.done.wait [#allocation3], 2048  }
   0xd   :  { %617 = vsyncadd [#allocation3], 4294965248  ;;  %v621_v0 = vmov 0   ;;  %v572_v1 = vld [vmem:[#allocation2 + $0x64] ss:$16 sps:$4 sm:$0xff]   ;;  %v33_v17 = vld [vmem:[%s964_s0 + $0x8] sm:$0xff] }
   0xe   :  { %271 = vmatprep.mubr.bf16.mxu0 %v621_v0  ;;  %384 = vmatprep.mubr.bf16.mxu1 %v621_v0  ;;  %v574_v2 = vld [vmem:[#allocation2 + $0x6c] ss:$16 sps:$4 sm:$0xff]   ;;  %v576_v3 = vld [vmem:[#allocation2 + $0x60] ss:$16 sps:$4 sm:$0xff]   ;;  %v577_v4 = vld [vmem:[#allocation2 + $0x68] ss:$16 sps:$4 sm:$0xff]  }
   0xf   :  { %247 = vmatprep.subr.bf16.mxu0 %v572_v1  ;;  %360 = vmatprep.subr.bf16.mxu1 %v574_v2  ;;  %v578_v5 = vld [vmem:[#allocation2 + $0x44] ss:$16 sps:$4 sm:$0xff]   ;;  %v580_v6 = vld [vmem:[#allocation2 + $0x4c] ss:$16 sps:$4 sm:$0xff]   ;;  %v582_v7 = vld [vmem:[#allocation2 + $0x40] ss:$16 sps:$4 sm:$0xff]  }
  0x10   :  { %248 = vmatpush1.bf16.msra.mxu0 %v576_v3  ;;  %361 = vmatpush1.bf16.msra.mxu1 %v577_v4  ;;  %v583_v8 = vld [vmem:[#allocation2 + $0x48] ss:$16 sps:$4 sm:$0xff]   ;;  %v584_v9 = vld [vmem:[#allocation2 + $0x24] ss:$16 sps:$4 sm:$0xff]   ;;  %v586_v10 = vld [vmem:[#allocation2 + $0x2c] ss:$16 sps:$4 sm:$0xff]  }
  0x11   :  { %249 = vmatprep.subr.bf16.mxu0 %v578_v5  ;;  %362 = vmatprep.subr.bf16.mxu1 %v580_v6  ;;  %v588_v11 = vld [vmem:[#allocation2 + $0x20] ss:$16 sps:$4 sm:$0xff]   ;;  %v589_v12 = vld [vmem:[#allocation2 + $0x28] ss:$16 sps:$4 sm:$0xff]   ;;  %v590_v13 = vld [vmem:[#allocation2 + $0x4] ss:$16 sps:$4 sm:$0xff]  }
  0x12   :  { %v592_v14 = vld [vmem:[#allocation2 + $0xc] ss:$16 sps:$4 sm:$0xff]   ;;  %v594_v15 = vld [vmem:[#allocation2] ss:$16 sps:$4 sm:$0xff]   ;;  %v595_v20 = vld [vmem:[#allocation2 + $0x8] ss:$16 sps:$4 sm:$0xff]  }
  0x13   :  { %v32_v16 = vld [vmem:[%s964_s0] sm:$0xff]  ;;  %v34_v23 = vld [vmem:[%s964_s0 + $0x10] sm:$0xff]  ;;  %v35_v24 = vld [vmem:[%s964_s0 + $0x18] sm:$0xff]  ;;  %vm214_vm0 = vcmask 523264  }
  0x14   :  { %250 = vmatpush1.bf16.msra.mxu0 %v582_v7  ;;  %363 = vmatpush1.bf16.msra.mxu1 %v583_v8  ;;  %v661_v18 = vld [vmem:[%s965_s1] ss:$0 sm:$0xff]  ;;  %v37_v34 = vld [vmem:[%s964_s0 + $0x28] sm:$0xff]  ;;  %v38_v43 = vld [vmem:[%s964_s0 + $0x30] sm:$0xff] }
  0x15   :  { %251 = vmatprep.subr.bf16.mxu0 %v584_v9  ;;  %364 = vmatprep.subr.bf16.mxu1 %v586_v10  ;;  %v666_v19 = vld [vmem:[%s966_s2] ss:$0 sm:$0xff]  ;;  %v55_v21 = vmul.f32 %v661_v18, %v32_v16  ;;  %v56_v22 = vmul.f32 %v661_v18, %v33_v17  ;;  %v57_v25 = vmul.f32 %v661_v18, %v34_v23  ;;  %v39_v44 = vld [vmem:[%s964_s0 + $0x38] sm:$0xff]  ;;  %v41_v53 = vld [vmem:[%s964_s0 + $0x48] sm:$0xff] }
  0x16   :  { %v58_v26 = vmul.f32 %v661_v18, %v35_v24  ;;  %v36_v33 = vld [vmem:[%s964_s0 + $0x20] sm:$0xff]  ;;  %v60_v39 = vmul.f32 %v661_v18, %v37_v34  ;;  %v61_v47 = vmul.f32 %v661_v18, %v38_v43  ;;  %v62_v48 = vmul.f32 %v661_v18, %v39_v44  ;;  %v42_v61 = vld [vmem:[%s964_s0 + $0x50] sm:$0xff]  ;;  %v43_v62 = vld [vmem:[%s964_s0 + $0x58] sm:$0xff] }
  0x17   :  { %v78_v27 = vadd.f32 %v666_v19, %v55_v21  ;;  %v79_v28 = vadd.f32 %v666_v19, %v56_v22  ;;  %v80_v31 = vadd.f32 %v666_v19, %v57_v25  ;;  %v59_v38 = vmul.f32 %v661_v18, %v36_v33  ;;  %v40_v52 = vld [vmem:[%s964_s0 + $0x40] sm:$0xff]  ;;  %v45_v8 = vld [vmem:[%s964_s0 + $0x68] sm:$0xff]  ;;  %v46_v16 = vld [vmem:[%s964_s0 + $0x70] sm:$0xff] }
  0x18   :  { %252 = vmatpush1.bf16.msra.mxu0 %v588_v11  ;;  %365 = vmatpush1.bf16.msra.mxu1 %v589_v12  ;;  %v81_v32 = vadd.f32 %v666_v19, %v58_v26  ;;  %v83_v42 = vadd.f32 %v666_v19, %v60_v39  ;;  %v84_v50 = vadd.f32 %v666_v19, %v61_v47  ;;  %v44_v7 = vld [vmem:[%s964_s0 + $0x60] sm:$0xff]  ;;  %v47_v17 = vld [vmem:[%s964_s0 + $0x78] sm:$0xff] }
  0x19   :  { %253 = vmatprep.subr.bf16.mxu0 %v590_v13  ;;  %366 = vmatprep.subr.bf16.mxu1 %v592_v14  ;;  %v94_v29 = vmax.f32 %v78_v27, 0.0  ;;  %v95_v30 = vmax.f32 %v79_v28, 0.0  ;;  %v96_v36 = vmax.f32 %v80_v31, 0.0  ;;  %v82_v41 = vadd.f32 %v666_v19, %v59_v38 }
  0x1a   :  { %v97_v37 = vmax.f32 %v81_v32, 0.0  ;;  %v99_v46 = vmax.f32 %v83_v42, 0.0  ;;  %v85_v51 = vadd.f32 %v666_v19, %v62_v48  ;;  %v100_v54 = vmax.f32 %v84_v50, 0.0 }
  0x1b   :  { %v110_v35 = vpack.c.bf16 %v95_v30, %v94_v29  ;;  %v98_v45 = vmax.f32 %v82_v41, 0.0  ;;  %v63_v56 = vmul.f32 %v661_v18, %v40_v52  ;;  %v64_v57 = vmul.f32 %v661_v18, %v41_v53 }
  0x1c   :  { %254 = vmatpush1.bf16.msra.mxu0 %v594_v15  ;;  %367 = vmatpush1.bf16.msra.mxu1 %v595_v20  ;;  %v111_v40 = vpack.c.bf16 %v97_v37, %v96_v36  ;;  %v101_v55 = vmax.f32 %v85_v51, 0.0  ;;  %v65_v2 = vmul.f32 %v661_v18, %v42_v61  ;;  %v66_v3 = vmul.f32 %v661_v18, %v43_v62 }
  0x1d   :  { %v112_v49 = vpack.c.bf16 %v99_v46, %v98_v45  ;;  %v86_v59 = vadd.f32 %v666_v19, %v63_v56  ;;  %v87_v60 = vadd.f32 %v666_v19, %v64_v57  ;;  %v67_v11 = vmul.f32 %v661_v18, %v44_v7 }
  0x1e   :  { %v113_v58 = vpack.c.bf16 %v101_v55, %v100_v54  ;;  %v88_v5 = vadd.f32 %v666_v19, %v65_v2  ;;  %v89_v6 = vadd.f32 %v666_v19, %v66_v3  ;;  %v68_v12 = vmul.f32 %v661_v18, %v45_v8 }
  0x1f   :  { %552 = vmatmul.mubr.msk.bf16.vlgmr.msra.gmra.mxu0 %vm214_vm0, %v110_v35  ;;  %560 = vmatmul.mubr.msk.bf16.vlgmr.msra.gmra.mxu1 %vm214_vm0, %v110_v35  ;;  %v102_v63 = vmax.f32 %v86_v59, 0.0  ;;  %v103_v1 = vmax.f32 %v87_v60, 0.0  ;;  %v90_v14 = vadd.f32 %v666_v19, %v67_v11  ;;  %v69_v22 = vmul.f32 %v661_v18, %v46_v16 }
  0x20   :  { %281 = vmatprep.mubr.bf16.mxu0 %v621_v0  ;;  %394 = vmatprep.mubr.bf16.mxu1 %v621_v0  ;;  %v104_v9 = vmax.f32 %v88_v5, 0.0  ;;  %v105_v10 = vmax.f32 %v89_v6, 0.0  ;;  %v91_v15 = vadd.f32 %v666_v19, %v68_v12  ;;  %v70_v23 = vmul.f32 %v661_v18, %v47_v17 }
  0x21   :  { %v114_v4 = vpack.c.bf16 %v103_v1, %v102_v63  ;;  %v106_v20 = vmax.f32 %v90_v14, 0.0  ;;  %v92_v25 = vadd.f32 %v666_v19, %v69_v22 }
  0x22   :  { %v115_v13 = vpack.c.bf16 %v105_v10, %v104_v9  ;;  %v107_v21 = vmax.f32 %v91_v15, 0.0  ;;  %v93_v26 = vadd.f32 %v666_v19, %v70_v23 }
  0x23   :  { %v108_v27 = vmax.f32 %v92_v25, 0.0 }
  0x24   :  { %v116_v24 = vpack.c.bf16 %v107_v21, %v106_v20  ;;  %v109_v28 = vmax.f32 %v93_v26, 0.0 }
  0x26   :  { %v117_v18 = vpack.c.bf16 %v109_v28, %v108_v27 }
  0x27   :  { %553 = vmatmul.mubr.msk.bf16.gmra.mxu0 %vm214_vm0, %v111_v40  ;;  %561 = vmatmul.mubr.msk.bf16.gmra.mxu1 %vm214_vm0, %v111_v40 }
  0x28   :  { %291 = vmatprep.mubr.bf16.mxu0 %v621_v0  ;;  %404 = vmatprep.mubr.bf16.mxu1 %v621_v0 }
  0x2f   :  { %554 = vmatmul.mubr.msk.bf16.gmra.mxu0 %vm214_vm0, %v112_v49  ;;  %562 = vmatmul.mubr.msk.bf16.gmra.mxu1 %vm214_vm0, %v112_v49 }
  0x30   :  { %301 = vmatprep.mubr.bf16.mxu0 %v621_v0  ;;  %414 = vmatprep.mubr.bf16.mxu1 %v621_v0 }
  0x37   :  { %555 = vmatmul.mubr.msk.bf16.gmra.mxu0 %vm214_vm0, %v113_v58  ;;  %563 = vmatmul.mubr.msk.bf16.gmra.mxu1 %vm214_vm0, %v113_v58 }
  0x38   :  { %311 = vmatprep.mubr.bf16.mxu0 %v621_v0  ;;  %424 = vmatprep.mubr.bf16.mxu1 %v621_v0 }
  0x3f   :  { %556 = vmatmul.mubr.msk.bf16.gmra.mxu0 %vm214_vm0, %v114_v4  ;;  %564 = vmatmul.mubr.msk.bf16.gmra.mxu1 %vm214_vm0, %v114_v4 }
  0x40   :  { %321 = vmatprep.mubr.bf16.mxu0 %v621_v0  ;;  %434 = vmatprep.mubr.bf16.mxu1 %v621_v0 }
  0x47   :  { %557 = vmatmul.mubr.msk.bf16.gmra.mxu0 %vm214_vm0, %v115_v13  ;;  %565 = vmatmul.mubr.msk.bf16.gmra.mxu1 %vm214_vm0, %v115_v13 }
  0x48   :  { %331 = vmatprep.mubr.bf16.mxu0 %v621_v0  ;;  %444 = vmatprep.mubr.bf16.mxu1 %v621_v0 }
  0x4f   :  { %558 = vmatmul.mubr.msk.bf16.gmra.mxu0 %vm214_vm0, %v116_v24  ;;  %566 = vmatmul.mubr.msk.bf16.gmra.mxu1 %vm214_vm0, %v116_v24 }
  0x50   :  { %341 = vmatprep.mubr.bf16.mxu0 %v621_v0  ;;  %454 = vmatprep.mubr.bf16.mxu1 %v621_v0 }
  0x57   :  { %559 = vmatmul.mubr.msk.bf16.gmra.mxu0 %vm214_vm0, %v117_v18  ;;  %567 = vmatmul.mubr.msk.bf16.gmra.mxu1 %vm214_vm0, %v117_v18 }
  0xdf   :  { %v273_v29 = vpop.f32.mrf.mxu0  ;;  %v386_v30 = vpop.f32.mrf.mxu1 }
  0xe0   :  { %465 = vst [vmem:[%s968_s4] sm:$0xff] %v273_v29  ;;  %467 = vst [vmem:[%s968_s4 + $0x10] sm:$0xff] %v386_v30 }
  0xe1   :  { %v275_v19 = vpop.f32.mrf.mxu0  ;;  %v388_v31 = vpop.f32.mrf.mxu1 }
  0xe2   :  { %466 = vst [vmem:[%s968_s4 + $0x8] sm:$0xff] %v275_v19  ;;  %468 = vst [vmem:[%s968_s4 + $0x18] sm:$0xff] %v388_v31 }
  0xe3   :  { %v277_v0 = vpop.f32.mrf.mxu0  ;;  %v390_v32 = vpop.f32.mrf.mxu1 }
  0xe4   :  { %469 = vst [vmem:[%s968_s4 + $0x20] sm:$0xff] %v277_v0  ;;  %471 = vst [vmem:[%s968_s4 + $0x30] sm:$0xff] %v390_v32 }
  0xe5   :  { %v279_v33 = vpop.f32.mrf.mxu0  ;;  %v392_v34 = vpop.f32.mrf.mxu1 }
  0xe6   :  { %470 = vst [vmem:[%s968_s4 + $0x28] sm:$0xff] %v279_v33  ;;  %472 = vst [vmem:[%s968_s4 + $0x38] sm:$0xff] %v392_v34 }
  0xe7   :  { %v283_v35 = vpop.f32.mrf.mxu0  ;;  %v396_v36 = vpop.f32.mrf.mxu1 }
  0xe8   :  { %473 = vst [vmem:[%s968_s4 + $0x40] sm:$0xff] %v283_v35  ;;  %475 = vst [vmem:[%s968_s4 + $0x50] sm:$0xff] %v396_v36 }
  0xe9   :  { %v285_v37 = vpop.f32.mrf.mxu0  ;;  %v398_v38 = vpop.f32.mrf.mxu1 }
  0xea   :  { %474 = vst [vmem:[%s968_s4 + $0x48] sm:$0xff] %v285_v37  ;;  %476 = vst [vmem:[%s968_s4 + $0x58] sm:$0xff] %v398_v38 }
  0xeb   :  { %v287_v39 = vpop.f32.mrf.mxu0  ;;  %v400_v40 = vpop.f32.mrf.mxu1 }
  0xec   :  { %477 = vst [vmem:[%s968_s4 + $0x60] sm:$0xff] %v287_v39  ;;  %479 = vst [vmem:[%s968_s4 + $0x70] sm:$0xff] %v400_v40 }
  0xed   :  { %v289_v41 = vpop.f32.mrf.mxu0  ;;  %v402_v42 = vpop.f32.mrf.mxu1 }
  0xee   :  { %478 = vst [vmem:[%s968_s4 + $0x68] sm:$0xff] %v289_v41  ;;  %480 = vst [vmem:[%s968_s4 + $0x78] sm:$0xff] %v402_v42 }
  0xef   :  { %v293_v43 = vpop.f32.mrf.mxu0  ;;  %v406_v44 = vpop.f32.mrf.mxu1 }
  0xf0   :  { %481 = vst [vmem:[%s968_s4 + $0x80] sm:$0xff] %v293_v43  ;;  %483 = vst [vmem:[%s968_s4 + $0x90] sm:$0xff] %v406_v44 }
  0xf1   :  { %v295_v45 = vpop.f32.mrf.mxu0  ;;  %v408_v46 = vpop.f32.mrf.mxu1 }
  0xf2   :  { %482 = vst [vmem:[%s968_s4 + $0x88] sm:$0xff] %v295_v45  ;;  %484 = vst [vmem:[%s968_s4 + $0x98] sm:$0xff] %v408_v46 }
  0xf3   :  { %v297_v47 = vpop.f32.mrf.mxu0  ;;  %v410_v48 = vpop.f32.mrf.mxu1 }
  0xf4   :  { %485 = vst [vmem:[%s968_s4 + $0xa0] sm:$0xff] %v297_v47  ;;  %487 = vst [vmem:[%s968_s4 + $0xb0] sm:$0xff] %v410_v48 }
  0xf5   :  { %v299_v49 = vpop.f32.mrf.mxu0  ;;  %v412_v50 = vpop.f32.mrf.mxu1 }
  0xf6   :  { %486 = vst [vmem:[%s968_s4 + $0xa8] sm:$0xff] %v299_v49  ;;  %488 = vst [vmem:[%s968_s4 + $0xb8] sm:$0xff] %v412_v50 }
  0xf7   :  { %v303_v51 = vpop.f32.mrf.mxu0  ;;  %v416_v52 = vpop.f32.mrf.mxu1 }
  0xf8   :  { %489 = vst [vmem:[%s968_s4 + $0xc0] sm:$0xff] %v303_v51  ;;  %491 = vst [vmem:[%s968_s4 + $0xd0] sm:$0xff] %v416_v52 }
  0xf9   :  { %v305_v53 = vpop.f32.mrf.mxu0  ;;  %v418_v54 = vpop.f32.mrf.mxu1 }
  0xfa   :  { %490 = vst [vmem:[%s968_s4 + $0xc8] sm:$0xff] %v305_v53  ;;  %492 = vst [vmem:[%s968_s4 + $0xd8] sm:$0xff] %v418_v54 }
  0xfb   :  { %v307_v55 = vpop.f32.mrf.mxu0  ;;  %v420_v56 = vpop.f32.mrf.mxu1 }
  0xfc   :  { %493 = vst [vmem:[%s968_s4 + $0xe0] sm:$0xff] %v307_v55  ;;  %495 = vst [vmem:[%s968_s4 + $0xf0] sm:$0xff] %v420_v56 }
  0xfd   :  { %v309_v57 = vpop.f32.mrf.mxu0  ;;  %v422_v58 = vpop.f32.mrf.mxu1 }
  0xfe   :  { %494 = vst [vmem:[%s968_s4 + $0xe8] sm:$0xff] %v309_v57  ;;  %496 = vst [vmem:[%s968_s4 + $0xf8] sm:$0xff] %v422_v58 }
  0xff   :  { %v313_v59 = vpop.f32.mrf.mxu0  ;;  %v426_v60 = vpop.f32.mrf.mxu1 }
 0x100   :  { %497 = vst [vmem:[%s968_s4 + $0x100] sm:$0xff] %v313_v59  ;;  %499 = vst [vmem:[%s968_s4 + $0x110] sm:$0xff] %v426_v60 }
 0x101   :  { %v315_v61 = vpop.f32.mrf.mxu0  ;;  %v428_v62 = vpop.f32.mrf.mxu1 }
 0x102   :  { %498 = vst [vmem:[%s968_s4 + $0x108] sm:$0xff] %v315_v61  ;;  %500 = vst [vmem:[%s968_s4 + $0x118] sm:$0xff] %v428_v62 }
 0x103   :  { %v317_v63 = vpop.f32.mrf.mxu0  ;;  %v430_v1 = vpop.f32.mrf.mxu1 }
 0x104   :  { %501 = vst [vmem:[%s968_s4 + $0x120] sm:$0xff] %v317_v63  ;;  %503 = vst [vmem:[%s968_s4 + $0x130] sm:$0xff] %v430_v1 }
 0x105   :  { %v319_v2 = vpop.f32.mrf.mxu0  ;;  %v432_v3 = vpop.f32.mrf.mxu1 }
 0x106   :  { %502 = vst [vmem:[%s968_s4 + $0x128] sm:$0xff] %v319_v2  ;;  %504 = vst [vmem:[%s968_s4 + $0x138] sm:$0xff] %v432_v3 }
 0x107   :  { %v323_v4 = vpop.f32.mrf.mxu0  ;;  %v436_v5 = vpop.f32.mrf.mxu1 }
 0x108   :  { %505 = vst [vmem:[%s968_s4 + $0x140] sm:$0xff] %v323_v4  ;;  %507 = vst [vmem:[%s968_s4 + $0x150] sm:$0xff] %v436_v5 }
 0x109   :  { %v325_v6 = vpop.f32.mrf.mxu0  ;;  %v438_v7 = vpop.f32.mrf.mxu1 }
 0x10a   :  { %506 = vst [vmem:[%s968_s4 + $0x148] sm:$0xff] %v325_v6  ;;  %508 = vst [vmem:[%s968_s4 + $0x158] sm:$0xff] %v438_v7 }
 0x10b   :  { %v327_v8 = vpop.f32.mrf.mxu0  ;;  %v440_v9 = vpop.f32.mrf.mxu1 }
 0x10c   :  { %509 = vst [vmem:[%s968_s4 + $0x160] sm:$0xff] %v327_v8  ;;  %511 = vst [vmem:[%s968_s4 + $0x170] sm:$0xff] %v440_v9 }
 0x10d   :  { %v329_v10 = vpop.f32.mrf.mxu0  ;;  %v442_v11 = vpop.f32.mrf.mxu1 }
 0x10e   :  { %510 = vst [vmem:[%s968_s4 + $0x168] sm:$0xff] %v329_v10  ;;  %512 = vst [vmem:[%s968_s4 + $0x178] sm:$0xff] %v442_v11 }
 0x10f   :  { %v333_v12 = vpop.f32.mrf.mxu0  ;;  %v446_v13 = vpop.f32.mrf.mxu1 }
 0x110   :  { %513 = vst [vmem:[%s968_s4 + $0x180] sm:$0xff] %v333_v12  ;;  %515 = vst [vmem:[%s968_s4 + $0x190] sm:$0xff] %v446_v13 }
 0x111   :  { %v335_v14 = vpop.f32.mrf.mxu0  ;;  %v448_v15 = vpop.f32.mrf.mxu1 }
 0x112   :  { %514 = vst [vmem:[%s968_s4 + $0x188] sm:$0xff] %v335_v14  ;;  %516 = vst [vmem:[%s968_s4 + $0x198] sm:$0xff] %v448_v15 }
 0x113   :  { %v337_v16 = vpop.f32.mrf.mxu0  ;;  %v450_v17 = vpop.f32.mrf.mxu1 }
 0x114   :  { %517 = vst [vmem:[%s968_s4 + $0x1a0] sm:$0xff] %v337_v16  ;;  %519 = vst [vmem:[%s968_s4 + $0x1b0] sm:$0xff] %v450_v17 }
 0x115   :  { %v339_v20 = vpop.f32.mrf.mxu0  ;;  %v452_v21 = vpop.f32.mrf.mxu1 }
 0x116   :  { %518 = vst [vmem:[%s968_s4 + $0x1a8] sm:$0xff] %v339_v20  ;;  %520 = vst [vmem:[%s968_s4 + $0x1b8] sm:$0xff] %v452_v21 }
 0x117   :  { %v343_v22 = vpop.f32.mrf.mxu0  ;;  %v456_v23 = vpop.f32.mrf.mxu1 }
 0x118   :  { %521 = vst [vmem:[%s968_s4 + $0x1c0] sm:$0xff] %v343_v22  ;;  %523 = vst [vmem:[%s968_s4 + $0x1d0] sm:$0xff] %v456_v23 }
 0x119   :  { %v345_v24 = vpop.f32.mrf.mxu0  ;;  %v458_v25 = vpop.f32.mrf.mxu1 }
 0x11a   :  { %522 = vst [vmem:[%s968_s4 + $0x1c8] sm:$0xff] %v345_v24  ;;  %524 = vst [vmem:[%s968_s4 + $0x1d8] sm:$0xff] %v458_v25 }
 0x11b   :  { %v347_v26 = vpop.f32.mrf.mxu0  ;;  %v460_v27 = vpop.f32.mrf.mxu1 }
 0x11c   :  { %525 = vst [vmem:[%s968_s4 + $0x1e0] sm:$0xff] %v347_v26  ;;  %527 = vst [vmem:[%s968_s4 + $0x1f0] sm:$0xff] %v460_v27 }
 0x11d   :  { %v349_v28 = vpop.f32.mrf.mxu0  ;;  %v462_v18 = vpop.f32.mrf.mxu1 }
 0x11e   :  { %526 = vst [vmem:[%s968_s4 + $0x1e8] sm:$0xff] %v349_v28  ;;  %528 = vst [vmem:[%s968_s4 + $0x1f8] sm:$0xff] %v462_v18 }
 0x11f   :  { %533 = vsyncpa [#allocation3], 1 }

// kernel: generator_forward.15
= control target key start
LH: loop header
LB: loop body
LE: loop exit
PB: predicated region body
PF: predicated region fallthrough
CT: control target
= control target key end

     0   :  { %vm14_vm0 = vcmask 253952   ;;  %vm82_vm1 = vcmask 261120   ;;  %v428_v0 = vmov 0.0   ;;  %s1318_s0 = inlined_call_operand.vmem [shape: f32[512,32], index: 0, kind: input, shape index: {}]   ;;  %s1319_s1 = inlined_call_operand.vmem [shape: f32[1,32], index: 1, kind: output, shape index: {0}]   ;;  %s1320_s2 = inlined_call_operand.vmem [shape: f32[1,32], index: 2, kind: output, shape index: {1}]  }
   0x1   :  { %15 = vst.msk [vmem:[%s1319_s1] sm:$0x1] %vm14_vm0, %v428_v0  ;;  %16 = vst.msk [vmem:[%s1320_s2] sm:$0x1] %vm14_vm0, %v428_v0  ;;  %v455_v1 = vld [vmem:[%s1318_s0] sm:$0xff]  ;;  %v460_v2 = vld [vmem:[%s1318_s0 + $0x8] sm:$0xff] }
   0x2   :  { %v465_v3 = vld [vmem:[%s1318_s0 + $0x10] sm:$0xff]  ;;  %v83_v4 = vsel %vm82_vm1, %v455_v1, 0.0  ;;  %v84_v5 = vsel %vm82_vm1, %v460_v2, 0.0  ;;  %v476_v7 = vld [vmem:[%s1318_s0 + $0x18] sm:$0xff]  ;;  %v483_v10 = vld [vmem:[%s1318_s0 + $0x20] sm:$0xff] }
   0x3   :  { %v86_v6 = vsel %vm82_vm1, %v465_v3, 0.0  ;;  %v85_v8 = vadd.f32 %v84_v5, %v83_v4  ;;  %v88_v9 = vsel %vm82_vm1, %v476_v7, 0.0  ;;  %v90_v12 = vsel %vm82_vm1, %v483_v10, 0.0  ;;  %v490_v13 = vld [vmem:[%s1318_s0 + $0x28] sm:$0xff]  ;;  %v497_v16 = vld [vmem:[%s1318_s0 + $0x30] sm:$0xff]  ;;  %v502_v18 = vld [vmem:[%s1318_s0 + $0x38] sm:$0xff] }
   0x4   :  { %v92_v15 = vsel %vm82_vm1, %v490_v13, 0.0  ;;  %v507_v19 = vld [vmem:[%s1318_s0 + $0x40] sm:$0xff]  ;;  %v94_v20 = vsel %vm82_vm1, %v497_v16, 0.0  ;;  %v514_v21 = vld [vmem:[%s1318_s0 + $0x48] sm:$0xff]  ;;  %v519_v22 = vld [vmem:[%s1318_s0 + $0x50] sm:$0xff]  ;;  %v96_v25 = vsel %vm82_vm1, %v502_v18, 0.0 }
   0x5   :  { %v87_v11 = vadd.f32 %v86_v6, %v85_v8  ;;  %v524_v23 = vld [vmem:[%s1318_s0 + $0x58] sm:$0xff]  ;;  %v98_v26 = vsel %vm82_vm1, %v507_v19, 0.0  ;;  %v533_v27 = vld [vmem:[%s1318_s0 + $0x108] sm:$0xff]  ;;  %v538_v28 = vld [vmem:[%s1318_s0 + $0x110] sm:$0xff]  ;;  %v100_v30 = vsel %vm82_vm1, %v514_v21, 0.0  ;;  %v102_v31 = vsel %vm82_vm1, %v519_v22, 0.0 }
   0x6   :  { %v543_v29 = vld [vmem:[%s1318_s0 + $0x118] sm:$0xff]  ;;  %v551_v32 = vsel %vm82_vm1, %v524_v23, 0.0  ;;  %v556_v33 = vld [vmem:[%s1318_s0 + $0x120] sm:$0xff]  ;;  %v561_v34 = vld [vmem:[%s1318_s0 + $0x128] sm:$0xff]  ;;  %v570_v37 = vsel %vm82_vm1, %v533_v27, 0.0  ;;  %v574_v38 = vsel %vm82_vm1, %v538_v28, 0.0 }
   0x7   :  { %v89_v14 = vadd.f32 %v88_v9, %v87_v11  ;;  %v566_v35 = vld [vmem:[%s1318_s0 + $0x130] sm:$0xff]  ;;  %1339 = vst [vmem:[#allocation2_spill] sm:$0xff] %v570_v37  ;;  %1340 = vst [vmem:[#allocation3_spill] sm:$0xff] %v574_v38  ;;  %v578_v39 = vsel %vm82_vm1, %v543_v29, 0.0  ;;  %v583_v40 = vld [vmem:[%s1318_s0 + $0x138] sm:$0xff]  ;;  %v597_v43 = vsel %vm82_vm1, %v556_v33, 0.0  ;;  %v222_v37 = vmul.f32 %v465_v3, %v465_v3 }
   0x8   :  { %1341 = vst [vmem:[#allocation4_spill] sm:$0xff] %v578_v39  ;;  %v588_v41 = vld [vmem:[%s1318_s0 + $0x140] sm:$0xff]  ;;  %v593_v42 = vld [vmem:[%s1318_s0 + $0x148] sm:$0xff]  ;;  %1342 = vst [vmem:[#allocation5_spill] sm:$0xff] %v597_v43  ;;  %v601_v44 = vsel %vm82_vm1, %v561_v34, 0.0  ;;  %v605_v45 = vsel %vm82_vm1, %v566_v35, 0.0 }
   0x9   :  { %v91_v17 = vadd.f32 %v90_v12, %v89_v14  ;;  %1343 = vst [vmem:[#allocation6_spill] sm:$0xff] %v601_v44  ;;  %1344 = vst [vmem:[#allocation7_spill] sm:$0xff] %v605_v45  ;;  %v610_v46 = vld [vmem:[%s1318_s0 + $0x150] sm:$0xff]  ;;  %v615_v47 = vld [vmem:[%s1318_s0 + $0x158] sm:$0xff]  ;;  %v624_v50 = vsel %vm82_vm1, %v583_v40, 0.0  ;;  %v628_v51 = vsel %vm82_vm1, %v588_v41, 0.0 }
   0xa   :  { %v620_v48 = vld [vmem:[%s1318_s0 + $0x160] sm:$0xff]  ;;  %1345 = vst [vmem:[#allocation8_spill] sm:$0xff] %v624_v50  ;;  %1346 = vst [vmem:[#allocation9_spill] sm:$0xff] %v628_v51  ;;  %v632_v52 = vsel %vm82_vm1, %v593_v42, 0.0  ;;  %v637_v53 = vld [vmem:[%s1318_s0 + $0x168] sm:$0xff]  ;;  %v651_v56 = vsel %vm82_vm1, %v610_v46, 0.0 }
   0xb   :  { %v93_v24 = vadd.f32 %v92_v15, %v91_v17  ;;  %1347 = vst [vmem:[#allocation10_spill] sm:$0xff] %v632_v52  ;;  %v642_v54 = vld [vmem:[%s1318_s0 + $0x170] sm:$0xff]  ;;  %v647_v55 = vld [vmem:[%s1318_s0 + $0x178] sm:$0xff]  ;;  %1348 = vst [vmem:[#allocation11_spill] sm:$0xff] %v651_v56  ;;  %v655_v57 = vsel %vm82_vm1, %v615_v47, 0.0  ;;  %v659_v58 = vsel %vm82_vm1, %v620_v48, 0.0 }
   0xc   :  { %1349 = vst [vmem:[#allocation12_spill] sm:$0xff] %v655_v57  ;;  %1350 = vst [vmem:[#allocation13_spill] sm:$0xff] %v659_v58  ;;  %v664_v59 = vld [vmem:[%s1318_s0 + $0x180] sm:$0xff]  ;;  %v669_v60 = vld [vmem:[%s1318_s0 + $0x188] sm:$0xff]  ;;  %v678_v63 = vsel %vm82_vm1, %v637_v53, 0.0  ;;  %v682_v0 = vsel %vm82_vm1, %v642_v54, 0.0 }
   0xd   :  { %v95_v36 = vadd.f32 %v94_v20, %v93_v24  ;;  %v674_v61 = vld [vmem:[%s1318_s0 + $0x190] sm:$0xff]  ;;  %1351 = vst [vmem:[#allocation14_spill] sm:$0xff] %v678_v63  ;;  %1352 = vst [vmem:[#allocation15_spill] sm:$0xff] %v682_v0  ;;  %v686_v4 = vsel %vm82_vm1, %v647_v55, 0.0  ;;  %v691_v5 = vld [vmem:[%s1318_s0 + $0x198] sm:$0xff]  ;;  %v705_v9 = vsel %vm82_vm1, %v664_v59, 0.0 }
   0xe   :  { %1353 = vst [vmem:[#allocation16_spill] sm:$0xff] %v686_v4  ;;  %v696_v6 = vld [vmem:[%s1318_s0 + $0x1a0] sm:$0xff]  ;;  %v701_v8 = vld [vmem:[%s1318_s0 + $0x1a8] sm:$0xff]  ;;  %1354 = vst [vmem:[#allocation17_spill] sm:$0xff] %v705_v9  ;;  %v709_v11 = vsel %vm82_vm1, %v669_v60, 0.0  ;;  %v713_v12 = vsel %vm82_vm1, %v674_v61, 0.0 }
   0xf   :  { %v97_v49 = vadd.f32 %v96_v25, %v95_v36  ;;  %1355 = vst [vmem:[#allocation18_spill] sm:$0xff] %v709_v11  ;;  %1356 = vst [vmem:[#allocation19_spill] sm:$0xff] %v713_v12  ;;  %v718_v14 = vld [vmem:[%s1318_s0 + $0x60] sm:$0xff]  ;;  %v723_v15 = vld [vmem:[%s1318_s0 + $0x1b0] sm:$0xff]  ;;  %v737_v25 = vsel %vm82_vm1, %v691_v5, 0.0  ;;  %v745_v36 = vsel %vm82_vm1, %v701_v8, 0.0 }
  0x10   :  { %v728_v17 = vld [vmem:[%s1318_s0 + $0x1b8] sm:$0xff]  ;;  %v733_v20 = vld [vmem:[%s1318_s0 + $0x1c0] sm:$0xff]  ;;  %1357 = vst [vmem:[#allocation20_spill] sm:$0xff] %v737_v25  ;;  %1359 = vst [vmem:[#allocation22_spill] sm:$0xff] %v745_v36 }
  0x11   :  { %v99_v62 = vadd.f32 %v98_v26, %v97_v49  ;;  %v741_v26 = vsel %vm82_vm1, %v696_v6, 0.0  ;;  %v750_v49 = vld [vmem:[%s1318_s0 + $0x1c8] sm:$0xff]  ;;  %v768_v36 = vsel %vm82_vm1, %v728_v17, 0.0  ;;  %v772_v25 = vsel %vm82_vm1, %v733_v20, 0.0  ;;  %v777_v12 = vld [vmem:[%s1318_s0 + $0x1e0] sm:$0xff]  ;;  %v804_v0 = vld [vmem:[%s1318_s0 + $0x1f8] sm:$0xff] }
  0x12   :  { %1358 = vst [vmem:[#allocation21_spill] sm:$0xff] %v741_v26  ;;  %v764_v26 = vsel %vm82_vm1, %v723_v15, 0.0  ;;  %1361 = vst [vmem:[#allocation24_spill] sm:$0xff] %v768_v36  ;;  %v782_v11 = vld [vmem:[%s1318_s0 + $0x1e8] sm:$0xff]  ;;  %v791_v9 = vsel %vm82_vm1, %v750_v49, 0.0  ;;  %v826_v58 = vsel %vm82_vm1, %v804_v0, 0.0 }
  0x13   :  { %v101_v24 = vadd.f32 %v100_v30, %v99_v62  ;;  %v755_v30 = vld [vmem:[%s1318_s0 + $0x1d0] sm:$0xff]  ;;  %v760_v62 = vld [vmem:[%s1318_s0 + $0x1d8] sm:$0xff]  ;;  %1360 = vst [vmem:[#allocation23_spill] sm:$0xff] %v764_v26  ;;  %1362 = vst [vmem:[#allocation25_spill] sm:$0xff] %v772_v25 }
  0x14   :  { %v787_v26 = vld [vmem:[%s1318_s0 + $0x1f0] sm:$0xff]  ;;  %1364 = vst [vmem:[#allocation27_spill] sm:$0xff] %v791_v9  ;;  %v795_v25 = vsel %vm82_vm1, %v755_v30, 0.0  ;;  %v799_v4 = vsel %vm82_vm1, %v760_v62, 0.0  ;;  %1367 = vst [vmem:[#allocation30_spill] sm:$0xff] %v804_v0  ;;  %v814_v9 = vsel %vm82_vm1, %v782_v11, 0.0 }
  0x15   :  { %1363 = vst [vmem:[#allocation26_spill] sm:$0xff] %v787_v26  ;;  %v103_v36 = vadd.f32 %v102_v31, %v101_v24  ;;  %1365 = vst [vmem:[#allocation28_spill] sm:$0xff] %v795_v25  ;;  %v106_v31 = vsel %vm82_vm1, %v718_v14, 0.0  ;;  %v810_v24 = vsel %vm82_vm1, %v777_v12, 0.0  ;;  %v818_v25 = vsel %vm82_vm1, %v787_v26, 0.0  ;;  %v855_v56 = vld [vmem:[%s1318_s0 + $0x90] sm:$0xff] }
  0x16   :  { %1366 = vst [vmem:[#allocation29_spill] sm:$0xff] %v799_v4  ;;  %1368 = vst [vmem:[#allocation31_spill] sm:$0xff] %v810_v24  ;;  %v30_v4 = vld [vmem:[%s1318_s0 + $0x68] sm:$0xff]  ;;  %v860_v52 = vld [vmem:[%s1318_s0 + $0x98] sm:$0xff] }
  0x17   :  { %1369 = vst [vmem:[#allocation32_spill] sm:$0xff] %v814_v9  ;;  %1370 = vst [vmem:[#allocation33_spill] sm:$0xff] %v818_v25  ;;  %v105_v63 = vadd.f32 %v551_v32, %v103_v36  ;;  %v108_v24 = vsel %vm82_vm1, %v30_v4, 0.0  ;;  %v31_v9 = vld [vmem:[%s1318_s0 + $0x70] sm:$0xff]  ;;  %v835_v25 = vld [vmem:[%s1318_s0 + $0x78] sm:$0xff]  ;;  %v120_v39 = vsel %vm82_vm1, %v860_v52, 0.0 }
  0x18   :  { %1371 = vst [vmem:[#allocation34_spill] sm:$0xff] %v826_v58  ;;  %1372 = vst [vmem:[#allocation35_spill] sm:$0xff] %v835_v25  ;;  %v840_v32 = vld [vmem:[%s1318_s0 + $0x80] sm:$0xff]  ;;  %v845_v36 = vld [vmem:[%s1318_s0 + $0x88] sm:$0xff]  ;;  %v110_v58 = vsel %vm82_vm1, %v31_v9, 0.0 }
  0x19   :  { %v107_v57 = vadd.f32 %v106_v31, %v105_v63  ;;  %1373 = vst [vmem:[#allocation36_spill] sm:$0xff] %v840_v32  ;;  %1374 = vst [vmem:[#allocation37_spill] sm:$0xff] %v845_v36  ;;  %v220_v63 = vmul.f32 %v455_v1, %v455_v1  ;;  %v221_v31 = vmul.f32 %v460_v2, %v460_v2  ;;  %v865_v51 = vld [vmem:[%s1318_s0 + $0xa0] sm:$0xff]  ;;  %v112_v1 = vsel %vm82_vm1, %v835_v25, 0.0  ;;  %v876_v44 = vld [vmem:[%s1318_s0 + $0xa8] sm:$0xff] }
  0x1a   :  { %1375 = vst [vmem:[#allocation38_spill] sm:$0xff] %v855_v56  ;;  %1376 = vst [vmem:[#allocation39_spill] sm:$0xff] %v860_v52  ;;  %v114_v2 = vsel %vm82_vm1, %v840_v32, 0.0  ;;  %v116_v45 = vsel %vm82_vm1, %v845_v36, 0.0  ;;  %v881_v43 = vld [vmem:[%s1318_s0 + $0xb0] sm:$0xff]  ;;  %v122_v38 = vsel %vm82_vm1, %v865_v51, 0.0  ;;  %v223_v25 = vmul.f32 %v476_v7, %v476_v7 }
  0x1b   :  { %1377 = vst [vmem:[#allocation40_spill] sm:$0xff] %v865_v51  ;;  %v109_v50 = vadd.f32 %v108_v24, %v107_v57  ;;  %1378 = vst [vmem:[#allocation41_spill] sm:$0xff] %v876_v44  ;;  %v886_v57 = vld [vmem:[%s1318_s0 + $0xb8] sm:$0xff]  ;;  %v118_v24 = vsel %vm82_vm1, %v855_v56, 0.0  ;;  %v899_v36 = vld [vmem:[%s1318_s0 + $0xc0] sm:$0xff]  ;;  %v124_v51 = vsel %vm82_vm1, %v876_v44, 0.0 }
  0x1c   :  { %1379 = vst [vmem:[#allocation42_spill] sm:$0xff] %v881_v43  ;;  %1380 = vst [vmem:[#allocation43_spill] sm:$0xff] %v886_v57  ;;  %v904_v32 = vld [vmem:[%s1318_s0 + $0xc8] sm:$0xff]  ;;  %v909_v52 = vld [vmem:[%s1318_s0 + $0xd0] sm:$0xff]  ;;  %v915_v3 = vsel %vm82_vm1, %v881_v43, 0.0 }
  0x1d   :  { %1381 = vst [vmem:[#allocation44_spill] sm:$0xff] %v899_v36  ;;  %1382 = vst [vmem:[#allocation45_spill] sm:$0xff] %v904_v32  ;;  %v111_v56 = vadd.f32 %v110_v58, %v109_v50  ;;  %v922_v0 = vld [vmem:[%s1318_s0 + $0xd8] sm:$0xff]  ;;  %v927_v26 = vld [vmem:[%s1318_s0 + $0xe0] sm:$0xff]  ;;  %v931_v50 = vsel %vm82_vm1, %v886_v57, 0.0  ;;  %v935_v58 = vsel %vm82_vm1, %v899_v36, 0.0 }
  0x1e   :  { %1383 = vst [vmem:[#allocation46_spill] sm:$0xff] %v909_v52  ;;  %1384 = vst [vmem:[#allocation47_spill] sm:$0xff] %v922_v0  ;;  %v939_v7 = vsel %vm82_vm1, %v904_v32, 0.0  ;;  %v943_v43 = vsel %vm82_vm1, %v909_v52, 0.0  ;;  %v948_v44 = vld [vmem:[%s1318_s0 + $0xe8] sm:$0xff]  ;;  %v953_v57 = vld [vmem:[%s1318_s0 + $0xf0] sm:$0xff]  ;;  %v224_v52 = vmul.f32 %v483_v10, %v483_v10  ;;  %v228_v10 = vmul.f32 %v507_v19, %v507_v19 }
  0x1f   :  { %1385 = vst [vmem:[#allocation48_spill] sm:$0xff] %v927_v26  ;;  %1386 = vst [vmem:[#allocation49_spill] sm:$0xff] %v935_v58  ;;  %v113_v36 = vadd.f32 %v112_v1, %v111_v56  ;;  %v957_v58 = vsel %vm82_vm1, %v922_v0, 0.0  ;;  %v961_v32 = vsel %vm82_vm1, %v927_v26, 0.0  ;;  %v225_v56 = vmul.f32 %v490_v13, %v490_v13 }
  0x20   :  { %1387 = vst [vmem:[#allocation50_spill] sm:$0xff] %v939_v7  ;;  %1388 = vst [vmem:[#allocation51_spill] sm:$0xff] %v943_v43  ;;  %v967_v43 = vsel %vm82_vm1, %v948_v44, 0.0  ;;  %v971_v7 = vsel %vm82_vm1, %v953_v57, 0.0  ;;  %v226_v1 = vmul.f32 %v497_v16, %v497_v16  ;;  %v227_v26 = vmul.f32 %v502_v18, %v502_v18 }
  0x21   :  { %1389 = vst [vmem:[#allocation52_spill] sm:$0xff] %v948_v44  ;;  %1390 = vst [vmem:[#allocation53_spill] sm:$0xff] %v953_v57  ;;  %v115_v0 = vadd.f32 %v114_v2, %v113_v36  ;;  %v229_v44 = vmul.f32 %v514_v21, %v514_v21  ;;  %v230_v57 = vmul.f32 %v519_v22, %v519_v22 }
  0x22   :  { %1391 = vst [vmem:[#allocation54_spill] sm:$0xff] %v971_v7  ;;  %v231_v7 = vmul.f32 %v524_v23, %v524_v23  ;;  %v232_v13 = vmul.f32 %v718_v14, %v718_v14  ;;  %v989_v16 = vmul.f32 %v30_v4, %v30_v4  ;;  %v991_v2 = vmul.f32 %v31_v9, %v31_v9 }
  0x23   :  { %v117_v36 = vadd.f32 %v116_v45, %v115_v0  ;;  %v253_v18 = vmul.f32 %v533_v27, %v533_v27  ;;  %v254_v19 = vmul.f32 %v538_v28, %v538_v28  ;;  %v255_v21 = vmul.f32 %v543_v29, %v543_v29 }
  0x24   :  { %v256_v22 = vmul.f32 %v556_v33, %v556_v33  ;;  %v257_v23 = vmul.f32 %v561_v34, %v561_v34  ;;  %v258_v45 = vmul.f32 %v566_v35, %v566_v35  ;;  %v259_v4 = vmul.f32 %v583_v40, %v583_v40 }
  0x25   :  { %v119_v0 = vadd.f32 %v118_v24, %v117_v36  ;;  %v260_v27 = vmul.f32 %v588_v41, %v588_v41  ;;  %v261_v28 = vmul.f32 %v593_v42, %v593_v42  ;;  %v262_v29 = vmul.f32 %v610_v46, %v610_v46 }
  0x26   :  { %v263_v33 = vmul.f32 %v615_v47, %v615_v47  ;;  %v284_v34 = vsel %vm82_vm1, %v220_v63, 0.0  ;;  %v285_v35 = vsel %vm82_vm1, %v221_v31, 0.0  ;;  %v264_v40 = vmul.f32 %v620_v48, %v620_v48 }
  0x27   :  { %v121_v9 = vadd.f32 %v120_v39, %v119_v0  ;;  %v286_v14 = vadd.f32 %v285_v35, %v284_v34  ;;  %v287_v41 = vsel %vm82_vm1, %v222_v37, 0.0  ;;  %v265_v42 = vmul.f32 %v637_v53, %v637_v53  ;;  %v1392_v0 = vld [vmem:[#allocation26_spill] sm:$0xff] }
  0x28   :  { %v266_v46 = vmul.f32 %v642_v54, %v642_v54  ;;  %v267_v47 = vmul.f32 %v647_v55, %v647_v55  ;;  %v289_v63 = vsel %vm82_vm1, %v223_v25, 0.0  ;;  %v268_v39 = vmul.f32 %v664_v59, %v664_v59  ;;  %v1393_v34 = vld [vmem:[#allocation30_spill] sm:$0xff] }
  0x29   :  { %v123_v24 = vadd.f32 %v122_v38, %v121_v9  ;;  %v269_v48 = vmul.f32 %v669_v60, %v669_v60  ;;  %v288_v31 = vadd.f32 %v287_v41, %v286_v14  ;;  %v270_v37 = vmul.f32 %v674_v61, %v674_v61  ;;  %v1394_v41 = vld [vmem:[#allocation49_spill] sm:$0xff] }
  0x2a   :  { %v271_v53 = vmul.f32 %v691_v5, %v691_v5  ;;  %v272_v54 = vmul.f32 %v696_v6, %v696_v6  ;;  %v291_v55 = vsel %vm82_vm1, %v224_v52, 0.0  ;;  %v273_v38 = vmul.f32 %v701_v8, %v701_v8 }
  0x2b   :  { %v125_v25 = vadd.f32 %v124_v51, %v123_v24  ;;  %v274_v59 = vmul.f32 %v723_v15, %v723_v15  ;;  %v290_v60 = vadd.f32 %v289_v63, %v288_v31  ;;  %v275_v36 = vmul.f32 %v728_v17, %v728_v17 }
  0x2c   :  { %v276_v61 = vmul.f32 %v733_v20, %v733_v20  ;;  %v277_v5 = vmul.f32 %v750_v49, %v750_v49  ;;  %v293_v6 = vsel %vm82_vm1, %v225_v56, 0.0  ;;  %v278_v52 = vmul.f32 %v755_v30, %v755_v30 }
  0x2d   :  { %v127_v51 = vadd.f32 %v915_v3, %v125_v25  ;;  %v279_v8 = vmul.f32 %v760_v62, %v760_v62  ;;  %v292_v15 = vadd.f32 %v291_v55, %v290_v60  ;;  %v280_v17 = vmul.f32 %v777_v12, %v777_v12  ;;  %v1396_v25 = vld [vmem:[#allocation51_spill] sm:$0xff] }
  0x2e   :  { %v281_v20 = vmul.f32 %v782_v11, %v782_v11  ;;  %v282_v49 = vmul.f32 %v1392_v0, %v1392_v0  ;;  %v295_v56 = vsel %vm82_vm1, %v226_v1, 0.0  ;;  %v283_v30 = vmul.f32 %v1393_v34, %v1393_v34  ;;  %v1398_v34 = vld [vmem:[#allocation54_spill] sm:$0xff] }
  0x2f   :  { %v129_v3 = vadd.f32 %v931_v50, %v127_v51  ;;  %v294_v35 = vadd.f32 %v293_v6, %v292_v15  ;;  %v297_v62 = vsel %vm82_vm1, %v227_v26, 0.0  ;;  %v299_v9 = vsel %vm82_vm1, %v228_v10, 0.0 }
  0x30   :  { %v301_v12 = vsel %vm82_vm1, %v229_v44, 0.0  ;;  %v303_v14 = vsel %vm82_vm1, %v230_v57, 0.0  ;;  %v305_v11 = vsel %vm82_vm1, %v231_v7, 0.0  ;;  %v307_v1 = vsel %vm82_vm1, %v232_v13, 0.0  ;;  %v1395_v7 = vld [vmem:[#allocation50_spill] sm:$0xff] }
  0x31   :  { %v131_v63 = vadd.f32 %v1394_v41, %v129_v3  ;;  %v296_v24 = vadd.f32 %v295_v56, %v294_v35  ;;  %v1072_v50 = vsel %vm82_vm1, %v253_v18, 0.0  ;;  %v1075_v31 = vsel %vm82_vm1, %v254_v19, 0.0  ;;  %v1397_v56 = vld [vmem:[#allocation35_spill] sm:$0xff] }
  0x32   :  { %v1078_v26 = vsel %vm82_vm1, %v255_v21, 0.0  ;;  %v1081_v44 = vsel %vm82_vm1, %v256_v22, 0.0  ;;  %v1084_v57 = vsel %vm82_vm1, %v257_v23, 0.0  ;;  %v1088_v13 = vsel %vm82_vm1, %v258_v45, 0.0 }
  0x33   :  { %v133_v10 = vadd.f32 %v1395_v7, %v131_v63  ;;  %v298_v55 = vadd.f32 %v297_v62, %v296_v24  ;;  %v1091_v18 = vsel %vm82_vm1, %v259_v4, 0.0  ;;  %v1094_v19 = vsel %vm82_vm1, %v260_v27, 0.0  ;;  %v1399_v62 = vld [vmem:[#allocation36_spill] sm:$0xff] }
  0x34   :  { %v1097_v21 = vsel %vm82_vm1, %v261_v28, 0.0  ;;  %v1100_v22 = vsel %vm82_vm1, %v262_v29, 0.0  ;;  %v1103_v23 = vsel %vm82_vm1, %v263_v33, 0.0  ;;  %v1107_v45 = vsel %vm82_vm1, %v264_v40, 0.0 }
  0x35   :  { %v135_v60 = vadd.f32 %v1396_v25, %v133_v10  ;;  %v300_v6 = vadd.f32 %v299_v9, %v298_v55  ;;  %v1110_v4 = vsel %vm82_vm1, %v265_v42, 0.0  ;;  %v1113_v27 = vsel %vm82_vm1, %v266_v46, 0.0  ;;  %v1401_v10 = vld [vmem:[#allocation38_spill] sm:$0xff] }
  0x36   :  { %v1116_v28 = vsel %vm82_vm1, %v267_v47, 0.0  ;;  %v1119_v29 = vsel %vm82_vm1, %v268_v39, 0.0  ;;  %v1122_v33 = vsel %vm82_vm1, %v269_v48, 0.0  ;;  %v1126_v40 = vsel %vm82_vm1, %v270_v37, 0.0  ;;  %v1402_v25 = vld [vmem:[#allocation2_spill] sm:$0xff] }
  0x37   :  { %v137_v51 = vadd.f32 %v957_v58, %v135_v60  ;;  %v302_v15 = vadd.f32 %v301_v12, %v300_v6  ;;  %v1129_v42 = vsel %vm82_vm1, %v271_v53, 0.0  ;;  %v1132_v46 = vsel %vm82_vm1, %v272_v54, 0.0 }
  0x38   :  { %v1135_v47 = vsel %vm82_vm1, %v273_v38, 0.0  ;;  %v1138_v39 = vsel %vm82_vm1, %v274_v59, 0.0  ;;  %v1141_v48 = vsel %vm82_vm1, %v275_v36, 0.0  ;;  %v1145_v37 = vsel %vm82_vm1, %v276_v61, 0.0 }
  0x39   :  { %v139_v58 = vadd.f32 %v961_v32, %v137_v51  ;;  %v304_v0 = vadd.f32 %v303_v14, %v302_v15  ;;  %v1148_v53 = vsel %vm82_vm1, %v277_v5, 0.0  ;;  %v1151_v54 = vsel %vm82_vm1, %v278_v52, 0.0  ;;  %v1165_v32 = vld [vmem:[%s1318_s0 + $0xf8] sm:$0xff]  ;;  %v1403_v51 = vld [vmem:[#allocation39_spill] sm:$0xff] }
  0x3a   :  { %v1154_v38 = vsel %vm82_vm1, %v279_v8, 0.0  ;;  %v1157_v59 = vsel %vm82_vm1, %v280_v17, 0.0  ;;  %v1160_v36 = vsel %vm82_vm1, %v281_v20, 0.0  ;;  %v1169_v52 = vsel %vm82_vm1, %v282_v49, 0.0 }
  0x3b   :  { %v141_v61 = vadd.f32 %v967_v43, %v139_v58  ;;  %v306_v5 = vadd.f32 %v305_v11, %v304_v0  ;;  %v1172_v8 = vsel %vm82_vm1, %v283_v30, 0.0  ;;  %v144_v17 = vsel %vm82_vm1, %v1165_v32, 0.0  ;;  %v1183_v43 = vld [vmem:[%s1318_s0 + $0x100] sm:$0xff]  ;;  %v1404_v58 = vld [vmem:[#allocation3_spill] sm:$0xff] }
  0x3c   :  { %v235_v20 = vmul.f32 %v1397_v56, %v1397_v56  ;;  %v309_v3 = vsel %vm82_vm1, %v989_v16, 0.0  ;;  %v146_v30 = vsel %vm82_vm1, %v1183_v43, 0.0  ;;  %v236_v9 = vmul.f32 %v1399_v62, %v1399_v62  ;;  %v1400_v16 = vld [vmem:[#allocation37_spill] sm:$0xff] }
  0x3d   :  { %v143_v49 = vadd.f32 %v1398_v34, %v141_v61  ;;  %v308_v35 = vadd.f32 %v307_v1, %v306_v5  ;;  %v311_v12 = vsel %vm82_vm1, %v991_v2, 0.0  ;;  %v237_v41 = vmul.f32 %v1400_v16, %v1400_v16  ;;  %v1405_v5 = vld [vmem:[#allocation40_spill] sm:$0xff]  ;;  %v1408_v62 = vld [vmem:[#allocation5_spill] sm:$0xff] }
  0x3e   :  { %v313_v63 = vsel %vm82_vm1, %v235_v20, 0.0  ;;  %v238_v1 = vmul.f32 %v1401_v10, %v1401_v10  ;;  %v315_v55 = vsel %vm82_vm1, %v236_v9, 0.0  ;;  %v239_v2 = vmul.f32 %v1403_v51, %v1403_v51  ;;  %v1406_v20 = vld [vmem:[#allocation4_spill] sm:$0xff] }
  0x3f   :  { %v145_v14 = vadd.f32 %v144_v17, %v143_v49  ;;  %v310_v11 = vadd.f32 %v309_v3, %v308_v35  ;;  %v317_v15 = vsel %vm82_vm1, %v237_v41, 0.0  ;;  %v240_v17 = vmul.f32 %v1405_v5, %v1405_v5  ;;  %v1407_v49 = vld [vmem:[#allocation41_spill] sm:$0xff]  ;;  %v1410_v41 = vld [vmem:[#allocation6_spill] sm:$0xff] }
  0x40   :  { %v319_v56 = vsel %vm82_vm1, %v238_v1, 0.0  ;;  %v241_v35 = vmul.f32 %v1407_v49, %v1407_v49 }
  0x41   :  { %v147_v24 = vadd.f32 %v146_v30, %v145_v14  ;;  %v312_v7 = vadd.f32 %v311_v12, %v310_v11  ;;  %v321_v30 = vsel %vm82_vm1, %v239_v2, 0.0  ;;  %v1409_v14 = vld [vmem:[#allocation42_spill] sm:$0xff]  ;;  %v323_v16 = vsel %vm82_vm1, %v240_v17, 0.0 }
  0x42   :  { %v242_v11 = vmul.f32 %v1409_v14, %v1409_v14  ;;  %v325_v1 = vsel %vm82_vm1, %v241_v35, 0.0 }
  0x43   :  { %v149_v60 = vadd.f32 %v1402_v25, %v147_v24  ;;  %v314_v6 = vadd.f32 %v313_v63, %v312_v7  ;;  %v1411_v7 = vld [vmem:[#allocation43_spill] sm:$0xff] }
  0x44   :  { %v243_v10 = vmul.f32 %v1411_v7, %v1411_v7  ;;  %v327_v2 = vsel %vm82_vm1, %v242_v11, 0.0 }
  0x45   :  { %v151_v0 = vadd.f32 %v1404_v58, %v149_v60  ;;  %v316_v61 = vadd.f32 %v315_v55, %v314_v6  ;;  %v1412_v55 = vld [vmem:[#allocation7_spill] sm:$0xff]  ;;  %v1413_v6 = vld [vmem:[#allocation44_spill] sm:$0xff] }
  0x46   :  { %v244_v51 = vmul.f32 %v1413_v6, %v1413_v6  ;;  %v329_v17 = vsel %vm82_vm1, %v243_v10, 0.0 }
  0x47   :  { %v153_v3 = vadd.f32 %v1406_v20, %v151_v0  ;;  %v318_v34 = vadd.f32 %v317_v15, %v316_v61  ;;  %v1414_v15 = vld [vmem:[#allocation8_spill] sm:$0xff]  ;;  %v1415_v61 = vld [vmem:[#allocation45_spill] sm:$0xff] }
  0x48   :  { %v245_v5 = vmul.f32 %v1415_v61, %v1415_v61  ;;  %v331_v35 = vsel %vm82_vm1, %v244_v51, 0.0 }
  0x49   :  { %v155_v9 = vadd.f32 %v1408_v62, %v153_v3  ;;  %v320_v12 = vadd.f32 %v319_v56, %v318_v34  ;;  %v1416_v56 = vld [vmem:[#allocation9_spill] sm:$0xff]  ;;  %v1417_v34 = vld [vmem:[#allocation46_spill] sm:$0xff] }
  0x4a   :  { %v246_v49 = vmul.f32 %v1417_v34, %v1417_v34  ;;  %v333_v11 = vsel %vm82_vm1, %v245_v5, 0.0 }
  0x4b   :  { %v157_v63 = vadd.f32 %v1410_v41, %v155_v9  ;;  %v322_v24 = vadd.f32 %v321_v30, %v320_v12  ;;  %v1418_v30 = vld [vmem:[#allocation10_spill] sm:$0xff]  ;;  %v1419_v12 = vld [vmem:[#allocation47_spill] sm:$0xff] }
  0x4c   :  { %v247_v14 = vmul.f32 %v1419_v12, %v1419_v12  ;;  %v335_v10 = vsel %vm82_vm1, %v246_v49, 0.0  ;;  %v1427_v49 = vld [vmem:[#allocation15_spill] sm:$0xff]  ;;  %v1428_v12 = vld [vmem:[#allocation16_spill] sm:$0xff] }
  0x4d   :  { %v159_v25 = vadd.f32 %v1412_v55, %v157_v63  ;;  %v324_v60 = vadd.f32 %v323_v16, %v322_v24  ;;  %v1420_v16 = vld [vmem:[#allocation11_spill] sm:$0xff]  ;;  %v1421_v24 = vld [vmem:[#allocation48_spill] sm:$0xff] }
  0x4e   :  { %v248_v7 = vmul.f32 %v1421_v24, %v1421_v24  ;;  %v337_v51 = vsel %vm82_vm1, %v247_v14, 0.0 }
  0x4f   :  { %v161_v58 = vadd.f32 %v1414_v15, %v159_v25  ;;  %v326_v0 = vadd.f32 %v325_v1, %v324_v60  ;;  %v1422_v1 = vld [vmem:[#allocation12_spill] sm:$0xff] }
  0x50   :  { %v1423_v60 = vld [vmem:[#allocation52_spill] sm:$0xff]  ;;  %v339_v5 = vsel %vm82_vm1, %v248_v7, 0.0  ;;  %v1430_v7 = vld [vmem:[#allocation18_spill] sm:$0xff] }
  0x51   :  { %v163_v20 = vadd.f32 %v1416_v56, %v161_v58  ;;  %v328_v3 = vadd.f32 %v327_v2, %v326_v0  ;;  %v249_v6 = vmul.f32 %v1423_v60, %v1423_v60  ;;  %v1424_v2 = vld [vmem:[#allocation13_spill] sm:$0xff] }
  0x52   :  { %v1425_v0 = vld [vmem:[#allocation53_spill] sm:$0xff] }
  0x53   :  { %v165_v62 = vadd.f32 %v1418_v30, %v163_v20  ;;  %v330_v9 = vadd.f32 %v329_v17, %v328_v3  ;;  %v250_v61 = vmul.f32 %v1425_v0, %v1425_v0  ;;  %v1426_v17 = vld [vmem:[#allocation14_spill] sm:$0xff]  ;;  %v251_v3 = vmul.f32 %v1165_v32, %v1165_v32 }
  0x54   :  { %v341_v34 = vsel %vm82_vm1, %v249_v6, 0.0  ;;  %v1432_v6 = vld [vmem:[#allocation20_spill] sm:$0xff]  ;;  %v1434_v0 = vld [vmem:[#allocation22_spill] sm:$0xff] }
  0x55   :  { %v167_v41 = vadd.f32 %v1420_v16, %v165_v62  ;;  %v332_v63 = vadd.f32 %v331_v35, %v330_v9  ;;  %v252_v62 = vmul.f32 %v1183_v43, %v1183_v43  ;;  %v343_v9 = vsel %vm82_vm1, %v250_v61, 0.0 }
  0x56   :  { %v345_v16 = vsel %vm82_vm1, %v251_v3, 0.0  ;;  %v1436_v3 = vld [vmem:[#allocation24_spill] sm:$0xff] }
  0x57   :  { %v169_v55 = vadd.f32 %v1422_v1, %v167_v41  ;;  %v334_v25 = vadd.f32 %v333_v11, %v332_v63  ;;  %v1429_v41 = vld [vmem:[#allocation17_spill] sm:$0xff]  ;;  %v347_v32 = vsel %vm82_vm1, %v252_v62, 0.0  ;;  %v1438_v62 = vld [vmem:[#allocation27_spill] sm:$0xff] }
  0x59   :  { %v171_v15 = vadd.f32 %v1424_v2, %v169_v55  ;;  %v336_v58 = vadd.f32 %v335_v10, %v334_v25  ;;  %v1431_v55 = vld [vmem:[#allocation19_spill] sm:$0xff]  ;;  %v1433_v2 = vld [vmem:[#allocation21_spill] sm:$0xff] }
  0x5b   :  { %v173_v56 = vadd.f32 %v1426_v17, %v171_v15  ;;  %v338_v20 = vadd.f32 %v337_v51, %v336_v58  ;;  %v1435_v17 = vld [vmem:[#allocation23_spill] sm:$0xff] }
  0x5d   :  { %v175_v35 = vadd.f32 %v1427_v49, %v173_v56  ;;  %v340_v30 = vadd.f32 %v339_v5, %v338_v20 }
  0x5f   :  { %v177_v14 = vadd.f32 %v1428_v12, %v175_v35  ;;  %v342_v11 = vadd.f32 %v341_v34, %v340_v30  ;;  %v1437_v35 = vld [vmem:[#allocation25_spill] sm:$0xff]  ;;  %v1439_v12 = vld [vmem:[#allocation28_spill] sm:$0xff] }
  0x61   :  { %v179_v63 = vadd.f32 %v1429_v41, %v177_v14  ;;  %v344_v24 = vadd.f32 %v343_v9, %v342_v11  ;;  %v1440_v11 = vld [vmem:[#allocation29_spill] sm:$0xff]  ;;  %v1441_v41 = vld [vmem:[#allocation31_spill] sm:$0xff] }
  0x63   :  { %v181_v10 = vadd.f32 %v1430_v7, %v179_v63  ;;  %v346_v1 = vadd.f32 %v345_v16, %v344_v24  ;;  %v1442_v24 = vld [vmem:[#allocation32_spill] sm:$0xff]  ;;  %v1443_v7 = vld [vmem:[#allocation33_spill] sm:$0xff] }
  0x65   :  { %v183_v25 = vadd.f32 %v1431_v55, %v181_v10  ;;  %v348_v60 = vadd.f32 %v347_v32, %v346_v1  ;;  %v1444_v1 = vld [vmem:[#allocation34_spill] sm:$0xff] }
  0x67   :  { %v185_v43 = vadd.f32 %v1432_v6, %v183_v25  ;;  %v350_v51 = vadd.f32 %v1072_v50, %v348_v60 }
  0x69   :  { %v187_v15 = vadd.f32 %v1433_v2, %v185_v43  ;;  %v352_v58 = vadd.f32 %v1075_v31, %v350_v51 }
  0x6b   :  { %v189_v61 = vadd.f32 %v1434_v0, %v187_v15  ;;  %v354_v5 = vadd.f32 %v1078_v26, %v352_v58 }
  0x6d   :  { %v191_v56 = vadd.f32 %v1435_v17, %v189_v61  ;;  %v356_v20 = vadd.f32 %v1081_v44, %v354_v5 }
  0x6f   :  { %v193_v34 = vadd.f32 %v1436_v3, %v191_v56  ;;  %v358_v49 = vadd.f32 %v1084_v57, %v356_v20 }
  0x71   :  { %v195_v30 = vadd.f32 %v1437_v35, %v193_v34  ;;  %v360_v50 = vadd.f32 %v1088_v13, %v358_v49 }
  0x73   :  { %v197_v9 = vadd.f32 %v1438_v62, %v195_v30  ;;  %v362_v31 = vadd.f32 %v1091_v18, %v360_v50 }
  0x75   :  { %v199_v14 = vadd.f32 %v1439_v12, %v197_v9  ;;  %v364_v26 = vadd.f32 %v1094_v19, %v362_v31 }
  0x77   :  { %v201_v16 = vadd.f32 %v1440_v11, %v199_v14  ;;  %v366_v44 = vadd.f32 %v1097_v21, %v364_v26 }
  0x79   :  { %v203_v63 = vadd.f32 %v1441_v41, %v201_v16  ;;  %v368_v57 = vadd.f32 %v1100_v22, %v366_v44 }
  0x7b   :  { %v205_v32 = vadd.f32 %v1442_v24, %v203_v63  ;;  %v370_v13 = vadd.f32 %v1103_v23, %v368_v57 }
  0x7d   :  { %v207_v10 = vadd.f32 %v1443_v7, %v205_v32  ;;  %v372_v18 = vadd.f32 %v1107_v45, %v370_v13  ;;  %v81_v45 = vld [vmem:[%s1319_s1] sm:$0x1] }
  0x7f   :  { %v209_v55 = vadd.f32 %v1444_v1, %v207_v10  ;;  %v374_v19 = vadd.f32 %v1110_v4, %v372_v18 }
  0x81   :  { %v210_v25 = vrot.slane %v209_v55, 4  ;;  %v376_v60 = vadd.f32 %v1113_v27, %v374_v19 }
  0x83   :  { %v211_v21 = vadd.f32 %v210_v25, %v209_v55  ;;  %v378_v6 = vadd.f32 %v1116_v28, %v376_v60 }
  0x85   :  { %v212_v43 = vrot.slane %v211_v21, 2  ;;  %v380_v22 = vadd.f32 %v1119_v29, %v378_v6 }
  0x87   :  { %v213_v51 = vadd.f32 %v212_v43, %v211_v21  ;;  %v382_v23 = vadd.f32 %v1122_v33, %v380_v22 }
  0x89   :  { %v214_v2 = vrot.slane %v213_v51, 1  ;;  %v384_v15 = vadd.f32 %v1126_v40, %v382_v23 }
  0x8b   :  { %v215_v4 = vadd.f32 %v214_v2, %v213_v51  ;;  %v386_v58 = vadd.f32 %v1129_v42, %v384_v15 }
  0x8d   :  { %v216_v27 = vadd.f32 %v215_v4, %v81_v45  ;;  %v388_v0 = vadd.f32 %v1132_v46, %v386_v58 }
  0x8f   :  { %218 = vst.msk [vmem:[%s1319_s1] sm:$0x1] %vm14_vm0, %v216_v27  ;;  %v390_v28 = vadd.f32 %v1135_v47, %v388_v0 }
  0x91   :  { %v392_v29 = vadd.f32 %v1138_v39, %v390_v28 }
  0x93   :  { %v394_v33 = vadd.f32 %v1141_v48, %v392_v29 }
  0x95   :  { %v396_v40 = vadd.f32 %v1145_v37, %v394_v33  ;;  %v219_v37 = vld [vmem:[%s1320_s2] sm:$0x1] }
  0x97   :  { %v398_v61 = vadd.f32 %v1148_v53, %v396_v40 }
  0x99   :  { %v400_v42 = vadd.f32 %v1151_v54, %v398_v61 }
  0x9b   :  { %v402_v5 = vadd.f32 %v1154_v38, %v400_v42 }
  0x9d   :  { %v404_v46 = vadd.f32 %v1157_v59, %v402_v5 }
  0x9f   :  { %v406_v17 = vadd.f32 %v1160_v36, %v404_v46 }
  0xa1   :  { %v408_v56 = vadd.f32 %v1169_v52, %v406_v17 }
  0xa3   :  { %v410_v47 = vadd.f32 %v1172_v8, %v408_v56 }
  0xa5   :  { %v411_v20 = vrot.slane %v410_v47, 4 }
  0xa7   :  { %v412_v39 = vadd.f32 %v411_v20, %v410_v47 }
  0xa9   :  { %v413_v3 = vrot.slane %v412_v39, 2 }
  0xab   :  { %v414_v48 = vadd.f32 %v413_v3, %v412_v39 }
  0xad   :  { %v415_v34 = vrot.slane %v414_v48, 1 }
  0xaf   :  { %v416_v53 = vadd.f32 %v415_v34, %v414_v48 }
  0xb1   :  { %v417_v54 = vadd.f32 %v416_v53, %v219_v37 }
  0xb3   :  { %418 = vst.msk [vmem:[%s1320_s2] sm:$0x1] %vm14_vm0, %v417_v54 }

// kernel: generator_forward.16
= control target key start
LH: loop header
LB: loop body
LE: loop exit
PB: predicated region body
PF: predicated region fallthrough
CT: control target
= control target key end

     0   :  { %v975_v1 = vmov 0   ;;  %vm344_vm0 = vcmask 261120   ;;  %s1851_s3 = inlined_call_operand.vmem [shape: bf16[32,256], index: 3, kind: input, shape index: {}]   ;;  %s1852_s0 = inlined_call_operand.vmem [shape: f32[512,32], index: 0, kind: input, shape index: {}]   ;;  %s1853_s1 = inlined_call_operand.vmem [shape: f32[1,32], index: 1, kind: input, shape index: {}]   ;;  %s1854_s2 = inlined_call_operand.vmem [shape: f32[1,32], index: 2, kind: input, shape index: {}]   ;;  %s1855_s4 = inlined_call_operand.vmem [shape: f32[512,256], index: 4, kind: output, shape index: {}]  }
   0x1   :  { %v969_v0 = vld [vmem:[%s1851_s3 + $0x14] ss:$8 sps:$4 sm:$0xff]   ;;  %473 = vmatprep.mubr.bf16.mxu0 %v975_v1  ;;  %633 = vmatprep.mubr.bf16.mxu1 %v975_v1  ;;  %v971_v2 = vld [vmem:[%s1851_s3 + $0x10] ss:$8 sps:$4 sm:$0xff]   ;;  %v972_v3 = vld [vmem:[%s1851_s3 + $0x4] ss:$8 sps:$4 sm:$0xff]  }
   0x2   :  { %453 = vmatprep.subr.bf16.mxu0 %v969_v0  ;;  %964 = vmatprep.subr.bf16.mxu1 %v969_v0  ;;  %v974_v4 = vld [vmem:[%s1851_s3] ss:$8 sps:$4 sm:$0xff]   ;;  %v20_v13 = vld [vmem:[%s1852_s0 + $0x10] sm:$0xff]  ;;  %v21_v16 = vld [vmem:[%s1852_s0 + $0x18] sm:$0xff] }
   0x3   :  { %v18_v5 = vld [vmem:[%s1852_s0] sm:$0xff]  ;;  %454 = vmatpush1.bf16.msra.mxu0 %v971_v2  ;;  %966 = vmatpush1.bf16.msra.mxu1 %v971_v2  ;;  %v19_v6 = vld [vmem:[%s1852_s0 + $0x8] sm:$0xff]  ;;  %v52_v18 = vld [vmem:[%s1852_s0 + $0x110] sm:$0xff] }
   0x4   :  { %v1024_v7 = vld [vmem:[%s1853_s1] ss:$0 sm:$0xff]  ;;  %455 = vmatprep.subr.bf16.mxu0 %v972_v3  ;;  %965 = vmatprep.subr.bf16.mxu1 %v972_v3  ;;  %v51_v12 = vld [vmem:[%s1852_s0 + $0x108] sm:$0xff]  ;;  %v53_v19 = vld [vmem:[%s1852_s0 + $0x118] sm:$0xff] }
   0x5   :  { %v1029_v8 = vld [vmem:[%s1854_s2] ss:$0 sm:$0xff]  ;;  %v89_v9 = vmul.f32 %v1024_v7, %v18_v5  ;;  %v90_v10 = vmul.f32 %v1024_v7, %v19_v6  ;;  %v122_v15 = vmul.f32 %v1024_v7, %v51_v12  ;;  %v91_v17 = vmul.f32 %v1024_v7, %v20_v13  ;;  %v23_v32 = vld [vmem:[%s1852_s0 + $0x28] sm:$0xff]  ;;  %v24_v42 = vld [vmem:[%s1852_s0 + $0x30] sm:$0xff] }
   0x6   :  { %v50_v11 = vld [vmem:[%s1852_s0 + $0x100] sm:$0xff]  ;;  %v92_v22 = vmul.f32 %v1024_v7, %v21_v16  ;;  %v123_v23 = vmul.f32 %v1024_v7, %v52_v18  ;;  %v124_v31 = vmul.f32 %v1024_v7, %v53_v19  ;;  %v55_v37 = vld [vmem:[%s1852_s0 + $0x128] sm:$0xff]  ;;  %v94_v45 = vmul.f32 %v1024_v7, %v23_v32  ;;  %v25_v47 = vld [vmem:[%s1852_s0 + $0x38] sm:$0xff] }
   0x7   :  { %v121_v14 = vmul.f32 %v1024_v7, %v50_v11  ;;  %v160_v20 = vadd.f32 %v1029_v8, %v89_v9  ;;  %v161_v21 = vadd.f32 %v1029_v8, %v90_v10  ;;  %456 = vmatpush1.bf16.msra.mxu0 %v974_v4  ;;  %967 = vmatpush1.bf16.msra.mxu1 %v974_v4  ;;  %v22_v27 = vld [vmem:[%s1852_s0 + $0x20] sm:$0xff]  ;;  %v56_v51 = vld [vmem:[%s1852_s0 + $0x130] sm:$0xff]  ;;  %v57_v56 = vld [vmem:[%s1852_s0 + $0x138] sm:$0xff] }
   0x8   :  { %v193_v25 = vadd.f32 %v1029_v8, %v122_v15  ;;  %v162_v26 = vadd.f32 %v1029_v8, %v91_v17  ;;  %v163_v30 = vadd.f32 %v1029_v8, %v92_v22  ;;  %v54_v33 = vld [vmem:[%s1852_s0 + $0x120] sm:$0xff]  ;;  %v194_v36 = vadd.f32 %v1029_v8, %v123_v23  ;;  %v27_v60 = vld [vmem:[%s1852_s0 + $0x48] sm:$0xff]  ;;  %v28_v13 = vld [vmem:[%s1852_s0 + $0x50] sm:$0xff] }
   0x9   :  { %v192_v24 = vadd.f32 %v1029_v8, %v121_v14  ;;  %v224_v28 = vmax.f32 %v160_v20, 0.0  ;;  %v225_v29 = vmax.f32 %v161_v21, 0.0  ;;  %v195_v40 = vadd.f32 %v1029_v8, %v124_v31  ;;  %v26_v57 = vld [vmem:[%s1852_s0 + $0x40] sm:$0xff]  ;;  %v59_v9 = vld [vmem:[%s1852_s0 + $0x148] sm:$0xff]  ;;  %v29_v16 = vld [vmem:[%s1852_s0 + $0x58] sm:$0xff] }
   0xa   :  { %v257_v35 = vmax.f32 %v193_v25, 0.0  ;;  %v226_v39 = vmax.f32 %v162_v26, 0.0  ;;  %v93_v41 = vmul.f32 %v1024_v7, %v22_v27  ;;  %v227_v44 = vmax.f32 %v163_v30, 0.0  ;;  %v58_v6 = vld [vmem:[%s1852_s0 + $0x140] sm:$0xff]  ;;  %v60_v21 = vld [vmem:[%s1852_s0 + $0x150] sm:$0xff]  ;;  %v61_v22 = vld [vmem:[%s1852_s0 + $0x158] sm:$0xff] }
   0xb   :  { %v256_v34 = vmax.f32 %v192_v24, 0.0  ;;  %v288_v38 = vpack.c.bf16 %v225_v29, %v224_v28  ;;  %v125_v46 = vmul.f32 %v1024_v7, %v54_v33  ;;  %v258_v48 = vmax.f32 %v194_v36, 0.0  ;;  %v30_v31 = vld [vmem:[%s1852_s0 + $0x60] sm:$0xff]  ;;  %v31_v36 = vld [vmem:[%s1852_s0 + $0x68] sm:$0xff] }
   0xc   :  { %v164_v49 = vadd.f32 %v1029_v8, %v93_v41  ;;  %v126_v50 = vmul.f32 %v1024_v7, %v55_v37  ;;  %v259_v52 = vmax.f32 %v195_v40, 0.0  ;;  %v165_v53 = vadd.f32 %v1029_v8, %v94_v45  ;;  %v62_v37 = vld [vmem:[%s1852_s0 + $0x160] sm:$0xff] }
   0xd   :  { %v304_v43 = vpack.c.bf16 %v257_v35, %v256_v34  ;;  %932 = vmatmul.mubr.msk.bf16.vlgmr.msra.gmra.mxu0 %vm344_vm0, %v288_v38  ;;  %v196_v54 = vadd.f32 %v1029_v8, %v125_v46  ;;  %v95_v55 = vmul.f32 %v1024_v7, %v24_v42  ;;  %v96_v59 = vmul.f32 %v1024_v7, %v25_v47  ;;  %v63_v42 = vld [vmem:[%s1852_s0 + $0x168] sm:$0xff] }
   0xe   :  { %483 = vmatprep.mubr.bf16.mxu0 %v975_v1  ;;  %v197_v58 = vadd.f32 %v1029_v8, %v126_v50  ;;  %v289_v61 = vpack.c.bf16 %v227_v44, %v226_v39  ;;  %v228_v62 = vmax.f32 %v164_v49, 0.0  ;;  %v229_v63 = vmax.f32 %v165_v53, 0.0 }
   0xf   :  { %948 = vmatmul.mubr.msk.bf16.vlgmr.msra.gmra.mxu1 %vm344_vm0, %v304_v43  ;;  %v127_v0 = vmul.f32 %v1024_v7, %v56_v51  ;;  %v260_v2 = vmax.f32 %v196_v54, 0.0  ;;  %v128_v4 = vmul.f32 %v1024_v7, %v57_v56  ;;  %v97_v5 = vmul.f32 %v1024_v7, %v26_v57  ;;  %v32_v51 = vld [vmem:[%s1852_s0 + $0x70] sm:$0xff] }
  0x10   :  { %643 = vmatprep.mubr.bf16.mxu1 %v975_v1  ;;  %v261_v3 = vmax.f32 %v197_v58, 0.0  ;;  %v305_v10 = vpack.c.bf16 %v259_v52, %v258_v48  ;;  %v166_v11 = vadd.f32 %v1029_v8, %v95_v55  ;;  %v98_v12 = vmul.f32 %v1024_v7, %v27_v60  ;;  %v33_v52 = vld [vmem:[%s1852_s0 + $0x78] sm:$0xff] }
  0x11   :  { %v167_v14 = vadd.f32 %v1029_v8, %v96_v59  ;;  %v198_v15 = vadd.f32 %v1029_v8, %v127_v0  ;;  %v199_v17 = vadd.f32 %v1029_v8, %v128_v4  ;;  %v168_v18 = vadd.f32 %v1029_v8, %v97_v5  ;;  %v35_v4 = vld [vmem:[%s1852_s0 + $0x88] sm:$0xff] }
  0x12   :  { %v129_v19 = vmul.f32 %v1024_v7, %v58_v6  ;;  %v130_v20 = vmul.f32 %v1024_v7, %v59_v9  ;;  %v290_v23 = vpack.c.bf16 %v229_v63, %v228_v62  ;;  %v306_v24 = vpack.c.bf16 %v261_v3, %v260_v2  ;;  %v34_v62 = vld [vmem:[%s1852_s0 + $0x80] sm:$0xff] }
  0x13   :  { %v169_v25 = vadd.f32 %v1029_v8, %v98_v12  ;;  %v99_v26 = vmul.f32 %v1024_v7, %v28_v13  ;;  %v230_v27 = vmax.f32 %v166_v11, 0.0  ;;  %v100_v30 = vmul.f32 %v1024_v7, %v29_v16  ;;  %v65_v11 = vld [vmem:[%s1852_s0 + $0x178] sm:$0xff]  ;;  %v66_v16 = vld [vmem:[%s1852_s0 + $0x180] sm:$0xff] }
  0x14   :  { %v200_v28 = vadd.f32 %v1029_v8, %v129_v19  ;;  %v201_v29 = vadd.f32 %v1029_v8, %v130_v20  ;;  %v231_v32 = vmax.f32 %v167_v14, 0.0  ;;  %v131_v34 = vmul.f32 %v1024_v7, %v60_v21 }
  0x15   :  { %933 = vmatmul.mubr.msk.bf16.gmra.mxu0 %vm344_vm0, %v289_v61  ;;  %v170_v33 = vadd.f32 %v1029_v8, %v99_v26  ;;  %v132_v35 = vmul.f32 %v1024_v7, %v61_v22  ;;  %v262_v38 = vmax.f32 %v198_v15, 0.0  ;;  %v263_v39 = vmax.f32 %v199_v17, 0.0  ;;  %v64_v61 = vld [vmem:[%s1852_s0 + $0x170] sm:$0xff]  ;;  %v67_v17 = vld [vmem:[%s1852_s0 + $0x188] sm:$0xff] }
  0x16   :  { %493 = vmatprep.mubr.bf16.mxu0 %v975_v1  ;;  %v232_v40 = vmax.f32 %v168_v18, 0.0  ;;  %v171_v41 = vadd.f32 %v1029_v8, %v100_v30  ;;  %v233_v43 = vmax.f32 %v169_v25, 0.0  ;;  %v202_v44 = vadd.f32 %v1029_v8, %v131_v34  ;;  %v36_v22 = vld [vmem:[%s1852_s0 + $0x90] sm:$0xff] }
  0x17   :  { %949 = vmatmul.mubr.msk.bf16.gmra.mxu1 %vm344_vm0, %v305_v10  ;;  %v203_v45 = vadd.f32 %v1029_v8, %v132_v35  ;;  %v101_v46 = vmul.f32 %v1024_v7, %v30_v31  ;;  %v264_v47 = vmax.f32 %v200_v28, 0.0  ;;  %v265_v48 = vmax.f32 %v201_v29, 0.0 }
  0x18   :  { %653 = vmatprep.mubr.bf16.mxu1 %v975_v1  ;;  %v102_v49 = vmul.f32 %v1024_v7, %v31_v36  ;;  %v133_v50 = vmul.f32 %v1024_v7, %v62_v37  ;;  %v234_v53 = vmax.f32 %v170_v33, 0.0  ;;  %v235_v54 = vmax.f32 %v171_v41, 0.0  ;;  %v69_v33 = vld [vmem:[%s1852_s0 + $0x198] sm:$0xff] }
  0x19   :  { %v172_v55 = vadd.f32 %v1029_v8, %v101_v46  ;;  %v134_v56 = vmul.f32 %v1024_v7, %v63_v42  ;;  %v266_v57 = vmax.f32 %v202_v44, 0.0  ;;  %v267_v58 = vmax.f32 %v203_v45, 0.0  ;;  %v38_v42 = vld [vmem:[%s1852_s0 + $0xa0] sm:$0xff] }
  0x1a   :  { %v173_v59 = vadd.f32 %v1029_v8, %v102_v49  ;;  %v204_v60 = vadd.f32 %v1029_v8, %v133_v50  ;;  %v291_v63 = vpack.c.bf16 %v231_v32, %v230_v27  ;;  %v103_v2 = vmul.f32 %v1024_v7, %v32_v51  ;;  %v37_v27 = vld [vmem:[%s1852_s0 + $0x98] sm:$0xff]  ;;  %v68_v32 = vld [vmem:[%s1852_s0 + $0x190] sm:$0xff] }
  0x1b   :  { %v205_v0 = vadd.f32 %v1029_v8, %v134_v56  ;;  %v104_v3 = vmul.f32 %v1024_v7, %v33_v52  ;;  %v307_v5 = vpack.c.bf16 %v263_v39, %v262_v38  ;;  %v1193_v6 = vpack.c.bf16 %v233_v43, %v232_v40 }
  0x1c   :  { %v236_v9 = vmax.f32 %v172_v55, 0.0  ;;  %v237_v10 = vmax.f32 %v173_v59, 0.0  ;;  %v268_v12 = vmax.f32 %v204_v60, 0.0  ;;  %v135_v14 = vmul.f32 %v1024_v7, %v64_v61 }
  0x1d   :  { %934 = vmatmul.mubr.msk.bf16.gmra.mxu0 %vm344_vm0, %v290_v23  ;;  %v269_v13 = vmax.f32 %v205_v0, 0.0  ;;  %v105_v15 = vmul.f32 %v1024_v7, %v34_v62  ;;  %v1207_v18 = vpack.c.bf16 %v265_v48, %v264_v47  ;;  %v1209_v19 = vpack.c.bf16 %v235_v54, %v234_v53  ;;  %v39_v47 = vld [vmem:[%s1852_s0 + $0xa8] sm:$0xff]  ;;  %v70_v48 = vld [vmem:[%s1852_s0 + $0x1a0] sm:$0xff] }
  0x1e   :  { %503 = vmatprep.mubr.bf16.mxu0 %v975_v1  ;;  %v1211_v20 = vpack.c.bf16 %v267_v58, %v266_v57  ;;  %v106_v21 = vmul.f32 %v1024_v7, %v35_v4  ;;  %v1218_v23 = vadd.f32 %v1029_v8, %v103_v2  ;;  %v136_v25 = vmul.f32 %v1024_v7, %v65_v11  ;;  %v71_v53 = vld [vmem:[%s1852_s0 + $0x1a8] sm:$0xff]  ;;  %v40_v58 = vld [vmem:[%s1852_s0 + $0xb0] sm:$0xff] }
  0x1f   :  { %950 = vmatmul.mubr.msk.bf16.gmra.mxu1 %vm344_vm0, %v306_v24  ;;  %v1221_v24 = vadd.f32 %v1029_v8, %v104_v3  ;;  %v176_v26 = vadd.f32 %v1029_v8, %v105_v15  ;;  %v1228_v28 = vpack.c.bf16 %v237_v10, %v236_v9  ;;  %v137_v30 = vmul.f32 %v1024_v7, %v66_v16 }
  0x20   :  { %663 = vmatprep.mubr.bf16.mxu1 %v975_v1  ;;  %v177_v29 = vadd.f32 %v1029_v8, %v106_v21  ;;  %v138_v31 = vmul.f32 %v1024_v7, %v67_v17  ;;  %v1239_v34 = vpack.c.bf16 %v269_v13, %v268_v12  ;;  %v1242_v35 = vadd.f32 %v1029_v8, %v135_v14  ;;  %v73_v13 = vld [vmem:[%s1852_s0 + $0x1b8] sm:$0xff]  ;;  %v42_v14 = vld [vmem:[%s1852_s0 + $0xc0] sm:$0xff] }
  0x21   :  { %v240_v36 = vmax.f32 %v176_v26, 0.0  ;;  %v107_v37 = vmul.f32 %v1024_v7, %v36_v22  ;;  %v208_v39 = vadd.f32 %v1029_v8, %v137_v30  ;;  %v108_v41 = vmul.f32 %v1024_v7, %v37_v27  ;;  %v43_v22 = vld [vmem:[%s1852_s0 + $0xc8] sm:$0xff] }
  0x22   :  { %v241_v38 = vmax.f32 %v177_v29, 0.0  ;;  %v209_v40 = vadd.f32 %v1029_v8, %v138_v31  ;;  %v1253_v43 = vadd.f32 %v1029_v8, %v136_v25  ;;  %v139_v45 = vmul.f32 %v1024_v7, %v68_v32 }
  0x23   :  { %v178_v44 = vadd.f32 %v1029_v8, %v107_v37  ;;  %v140_v46 = vmul.f32 %v1024_v7, %v69_v33  ;;  %v272_v50 = vmax.f32 %v208_v39, 0.0  ;;  %v179_v52 = vadd.f32 %v1029_v8, %v108_v41  ;;  %v75_v37 = vld [vmem:[%s1852_s0 + $0x1c8] sm:$0xff]  ;;  %v44_v41 = vld [vmem:[%s1852_s0 + $0xd0] sm:$0xff] }
  0x24   :  { %v1266_v49 = vpack.c.bf16 %v241_v38, %v240_v36  ;;  %v273_v51 = vmax.f32 %v209_v40, 0.0  ;;  %v210_v55 = vadd.f32 %v1029_v8, %v139_v45  ;;  %v109_v57 = vmul.f32 %v1024_v7, %v38_v42  ;;  %v74_v36 = vld [vmem:[%s1852_s0 + $0x1c0] sm:$0xff] }
  0x25   :  { %935 = vmatmul.mubr.msk.bf16.gmra.mxu0 %vm344_vm0, %v291_v63  ;;  %v242_v54 = vmax.f32 %v178_v44, 0.0  ;;  %v211_v56 = vadd.f32 %v1029_v8, %v140_v46  ;;  %v243_v60 = vmax.f32 %v179_v52, 0.0  ;;  %v110_v61 = vmul.f32 %v1024_v7, %v39_v47  ;;  %v41_v63 = vld [vmem:[%s1852_s0 + $0xb8] sm:$0xff]  ;;  %v76_v52 = vld [vmem:[%s1852_s0 + $0x1d0] sm:$0xff] }
  0x26   :  { %513 = vmatprep.mubr.bf16.mxu0 %v975_v1  ;;  %v1279_v59 = vpack.c.bf16 %v273_v51, %v272_v50  ;;  %v141_v62 = vmul.f32 %v1024_v7, %v70_v48  ;;  %v274_v0 = vmax.f32 %v210_v55, 0.0  ;;  %v180_v3 = vadd.f32 %v1029_v8, %v109_v57  ;;  %v45_v46 = vld [vmem:[%s1852_s0 + $0xd8] sm:$0xff] }
  0x27   :  { %951 = vmatmul.mubr.msk.bf16.gmra.mxu1 %vm344_vm0, %v307_v5  ;;  %v275_v2 = vmax.f32 %v211_v56, 0.0  ;;  %v142_v4 = vmul.f32 %v1024_v7, %v71_v53  ;;  %v72_v5 = vld [vmem:[%s1852_s0 + $0x1b0] sm:$0xff]  ;;  %v1291_v9 = vpack.c.bf16 %v243_v60, %v242_v54  ;;  %v181_v10 = vadd.f32 %v1029_v8, %v110_v61  ;;  %v77_v53 = vld [vmem:[%s1852_s0 + $0x1d8] sm:$0xff] }
  0x28   :  { %673 = vmatprep.mubr.bf16.mxu1 %v975_v1  ;;  %v212_v11 = vadd.f32 %v1029_v8, %v141_v62  ;;  %v111_v12 = vmul.f32 %v1024_v7, %v40_v58  ;;  %v244_v16 = vmax.f32 %v180_v3, 0.0  ;;  %v112_v21 = vmul.f32 %v1024_v7, %v41_v63  ;;  %v46_v63 = vld [vmem:[%s1852_s0 + $0xe0] sm:$0xff] }
  0x29   :  { %v1302_v15 = vpack.c.bf16 %v275_v2, %v274_v0  ;;  %v213_v17 = vadd.f32 %v1029_v8, %v142_v4  ;;  %v245_v25 = vmax.f32 %v181_v10, 0.0  ;;  %v143_v29 = vmul.f32 %v1024_v7, %v72_v5  ;;  %v47_v5 = vld [vmem:[%s1852_s0 + $0xe8] sm:$0xff]  ;;  %v78_v10 = vld [vmem:[%s1852_s0 + $0x1e0] sm:$0xff] }
  0x2a   :  { %v276_v26 = vmax.f32 %v212_v11, 0.0  ;;  %v182_v27 = vadd.f32 %v1029_v8, %v111_v12  ;;  %v183_v31 = vadd.f32 %v1029_v8, %v112_v21  ;;  %v144_v32 = vmul.f32 %v1024_v7, %v73_v13 }
  0x2b   :  { %v277_v30 = vmax.f32 %v213_v17, 0.0  ;;  %v113_v33 = vmul.f32 %v1024_v7, %v42_v14  ;;  %v214_v39 = vadd.f32 %v1029_v8, %v143_v29  ;;  %v114_v40 = vmul.f32 %v1024_v7, %v43_v22 }
  0x2c   :  { %v246_v38 = vmax.f32 %v182_v27, 0.0  ;;  %v247_v44 = vmax.f32 %v183_v31, 0.0  ;;  %v145_v50 = vmul.f32 %v1024_v7, %v74_v36  ;;  %v146_v51 = vmul.f32 %v1024_v7, %v75_v37  ;;  %v49_v31 = vld [vmem:[%s1852_s0 + $0xf8] sm:$0xff]  ;;  %v80_v37 = vld [vmem:[%s1852_s0 + $0x1f0] sm:$0xff] }
  0x2d   :  { %936 = vmatmul.mubr.msk.bf16.gmra.mxu0 %vm344_vm0, %v1193_v6  ;;  %v1325_v6 = vpack.c.bf16 %v245_v25, %v244_v16  ;;  %v1333_v42 = vpack.c.bf16 %v277_v30, %v276_v26  ;;  %v184_v45 = vadd.f32 %v1029_v8, %v113_v33  ;;  %v278_v47 = vmax.f32 %v214_v39, 0.0  ;;  %v79_v16 = vld [vmem:[%s1852_s0 + $0x1e8] sm:$0xff]  ;;  %v48_v26 = vld [vmem:[%s1852_s0 + $0xf0] sm:$0xff] }
  0x2e   :  { %523 = vmatprep.mubr.bf16.mxu0 %v975_v1  ;;  %v185_v48 = vadd.f32 %v1029_v8, %v114_v40  ;;  %v1349_v54 = vpack.c.bf16 %v247_v44, %v246_v38  ;;  %v115_v57 = vmul.f32 %v1024_v7, %v44_v41  ;;  %v216_v60 = vadd.f32 %v1029_v8, %v145_v50  ;;  %v81_v44 = vld [vmem:[%s1852_s0 + $0x1f8] sm:$0xff] }
  0x2f   :  { %952 = vmatmul.mubr.msk.bf16.gmra.mxu1 %vm344_vm0, %v1207_v18  ;;  %v215_v18 = vadd.f32 %v1029_v8, %v144_v32  ;;  %v248_v56 = vmax.f32 %v184_v45, 0.0  ;;  %v217_v61 = vadd.f32 %v1029_v8, %v146_v51  ;;  %v116_v62 = vmul.f32 %v1024_v7, %v45_v46 }
  0x30   :  { %683 = vmatprep.mubr.bf16.mxu1 %v975_v1  ;;  %v249_v58 = vmax.f32 %v185_v48, 0.0  ;;  %v186_v2 = vadd.f32 %v1029_v8, %v115_v57  ;;  %v147_v3 = vmul.f32 %v1024_v7, %v76_v52  ;;  %v148_v4 = vmul.f32 %v1024_v7, %v77_v53 }
  0x31   :  { %v279_v55 = vmax.f32 %v215_v18, 0.0  ;;  %v280_v12 = vmax.f32 %v216_v60, 0.0  ;;  %v281_v13 = vmax.f32 %v217_v61, 0.0  ;;  %v187_v14 = vadd.f32 %v1029_v8, %v116_v62 }
  0x32   :  { %v1369_v11 = vpack.c.bf16 %v249_v58, %v248_v56  ;;  %v250_v17 = vmax.f32 %v186_v2, 0.0  ;;  %v218_v21 = vadd.f32 %v1029_v8, %v147_v3  ;;  %v219_v22 = vadd.f32 %v1029_v8, %v148_v4 }
  0x33   :  { %v1358_v0 = vpack.c.bf16 %v279_v55, %v278_v47  ;;  %v117_v25 = vmul.f32 %v1024_v7, %v46_v63  ;;  %v1386_v27 = vpack.c.bf16 %v281_v13, %v280_v12  ;;  %v251_v29 = vmax.f32 %v187_v14, 0.0 }
  0x34   :  { %v149_v30 = vmul.f32 %v1024_v7, %v78_v10  ;;  %v282_v32 = vmax.f32 %v218_v21, 0.0  ;;  %v283_v33 = vmax.f32 %v219_v22, 0.0  ;;  %v119_v41 = vmul.f32 %v1024_v7, %v48_v26 }
  0x35   :  { %937 = vmatmul.mubr.msk.bf16.gmra.mxu0 %vm344_vm0, %v1209_v19  ;;  %v118_v19 = vmul.f32 %v1024_v7, %v47_v5  ;;  %v188_v36 = vadd.f32 %v1029_v8, %v117_v25  ;;  %v301_v38 = vpack.c.bf16 %v251_v29, %v250_v17  ;;  %v120_v47 = vmul.f32 %v1024_v7, %v49_v31 }
  0x36   :  { %533 = vmatprep.mubr.bf16.mxu0 %v975_v1  ;;  %v220_v40 = vadd.f32 %v1029_v8, %v149_v30  ;;  %v317_v18 = vpack.c.bf16 %v283_v33, %v282_v32  ;;  %v190_v51 = vadd.f32 %v1029_v8, %v119_v41  ;;  %v151_v52 = vmul.f32 %v1024_v7, %v80_v37 }
  0x37   :  { %953 = vmatmul.mubr.msk.bf16.gmra.mxu1 %vm344_vm0, %v1211_v20  ;;  %v150_v20 = vmul.f32 %v1024_v7, %v79_v16  ;;  %v189_v39 = vadd.f32 %v1029_v8, %v118_v19  ;;  %v252_v45 = vmax.f32 %v188_v36, 0.0  ;;  %v191_v55 = vadd.f32 %v1029_v8, %v120_v47 }
  0x38   :  { %693 = vmatprep.mubr.bf16.mxu1 %v975_v1  ;;  %v284_v50 = vmax.f32 %v220_v40, 0.0  ;;  %v152_v56 = vmul.f32 %v1024_v7, %v81_v44  ;;  %v238_v57 = vmax.f32 %v1218_v23, 0.0  ;;  %v254_v60 = vmax.f32 %v190_v51, 0.0 }
  0x39   :  { %v221_v46 = vadd.f32 %v1029_v8, %v150_v20  ;;  %v253_v48 = vmax.f32 %v189_v39, 0.0  ;;  %v222_v61 = vadd.f32 %v1029_v8, %v151_v52  ;;  %v239_v62 = vmax.f32 %v1221_v24, 0.0 }
  0x3a   :  { %v255_v2 = vmax.f32 %v191_v55, 0.0  ;;  %v223_v3 = vadd.f32 %v1029_v8, %v152_v56  ;;  %v270_v7 = vmax.f32 %v1242_v35, 0.0  ;;  %v271_v23 = vmax.f32 %v1253_v43, 0.0 }
  0x3b   :  { %v285_v53 = vmax.f32 %v221_v46, 0.0  ;;  %v302_v58 = vpack.c.bf16 %v253_v48, %v252_v45  ;;  %v286_v4 = vmax.f32 %v222_v61, 0.0  ;;  %v295_v10 = vpack.c.bf16 %v239_v62, %v238_v57 }
  0x3c   :  { %v303_v5 = vpack.c.bf16 %v255_v2, %v254_v60  ;;  %v311_v12 = vpack.c.bf16 %v271_v23, %v270_v7 }
  0x3d   :  { %938 = vmatmul.mubr.msk.bf16.gmra.mxu0 %vm344_vm0, %v1228_v28  ;;  %v318_v63 = vpack.c.bf16 %v285_v53, %v284_v50  ;;  %v287_v28 = vmax.f32 %v223_v3, 0.0 }
  0x3e   :  { %543 = vmatprep.mubr.bf16.mxu0 %v975_v1 }
  0x3f   :  { %954 = vmatmul.mubr.msk.bf16.gmra.mxu1 %vm344_vm0, %v1239_v34  ;;  %v319_v24 = vpack.c.bf16 %v287_v28, %v286_v4 }
  0x40   :  { %703 = vmatprep.mubr.bf16.mxu1 %v975_v1 }
  0x45   :  { %939 = vmatmul.mubr.msk.bf16.gmra.mxu0 %vm344_vm0, %v295_v10 }
  0x46   :  { %553 = vmatprep.mubr.bf16.mxu0 %v975_v1 }
  0x47   :  { %955 = vmatmul.mubr.msk.bf16.gmra.mxu1 %vm344_vm0, %v311_v12 }
  0x48   :  { %713 = vmatprep.mubr.bf16.mxu1 %v975_v1 }
  0x4d   :  { %940 = vmatmul.mubr.msk.bf16.gmra.mxu0 %vm344_vm0, %v1266_v49 }
  0x4e   :  { %563 = vmatprep.mubr.bf16.mxu0 %v975_v1 }
  0x4f   :  { %956 = vmatmul.mubr.msk.bf16.gmra.mxu1 %vm344_vm0, %v1279_v59 }
  0x50   :  { %723 = vmatprep.mubr.bf16.mxu1 %v975_v1 }
  0x55   :  { %941 = vmatmul.mubr.msk.bf16.gmra.mxu0 %vm344_vm0, %v1291_v9 }
  0x56   :  { %573 = vmatprep.mubr.bf16.mxu0 %v975_v1 }
  0x57   :  { %957 = vmatmul.mubr.msk.bf16.gmra.mxu1 %vm344_vm0, %v1302_v15 }
  0x58   :  { %733 = vmatprep.mubr.bf16.mxu1 %v975_v1 }
  0x5d   :  { %942 = vmatmul.mubr.msk.bf16.gmra.mxu0 %vm344_vm0, %v1325_v6 }
  0x5e   :  { %583 = vmatprep.mubr.bf16.mxu0 %v975_v1 }
  0x5f   :  { %958 = vmatmul.mubr.msk.bf16.gmra.mxu1 %vm344_vm0, %v1333_v42 }
  0x60   :  { %743 = vmatprep.mubr.bf16.mxu1 %v975_v1 }
  0x65   :  { %943 = vmatmul.mubr.msk.bf16.gmra.mxu0 %vm344_vm0, %v1349_v54 }
  0x66   :  { %593 = vmatprep.mubr.bf16.mxu0 %v975_v1 }
  0x67   :  { %959 = vmatmul.mubr.msk.bf16.gmra.mxu1 %vm344_vm0, %v1358_v0 }
  0x68   :  { %753 = vmatprep.mubr.bf16.mxu1 %v975_v1 }
  0x6d   :  { %944 = vmatmul.mubr.msk.bf16.gmra.mxu0 %vm344_vm0, %v1369_v11 }
  0x6e   :  { %603 = vmatprep.mubr.bf16.mxu0 %v975_v1 }
  0x6f   :  { %960 = vmatmul.mubr.msk.bf16.gmra.mxu1 %vm344_vm0, %v1386_v27 }
  0x70   :  { %763 = vmatprep.mubr.bf16.mxu1 %v975_v1 }
  0x75   :  { %945 = vmatmul.mubr.msk.bf16.gmra.mxu0 %vm344_vm0, %v301_v38 }
  0x76   :  { %613 = vmatprep.mubr.bf16.mxu0 %v975_v1 }
  0x77   :  { %961 = vmatmul.mubr.msk.bf16.gmra.mxu1 %vm344_vm0, %v317_v18 }
  0x78   :  { %773 = vmatprep.mubr.bf16.mxu1 %v975_v1 }
  0x7d   :  { %946 = vmatmul.mubr.msk.bf16.gmra.mxu0 %vm344_vm0, %v302_v58 }
  0x7e   :  { %623 = vmatprep.mubr.bf16.mxu0 %v975_v1 }
  0x7f   :  { %962 = vmatmul.mubr.msk.bf16.gmra.mxu1 %vm344_vm0, %v318_v63 }
  0x80   :  { %783 = vmatprep.mubr.bf16.mxu1 %v975_v1 }
  0x85   :  { %947 = vmatmul.mubr.msk.bf16.gmra.mxu0 %vm344_vm0, %v303_v5 }
  0x87   :  { %963 = vmatmul.mubr.msk.bf16.gmra.mxu1 %vm344_vm0, %v319_v24 }
  0xcd   :  { %v475_v8 = vpop.f32.mrf.mxu0 }
  0xce   :  { %794 = vst [vmem:[%s1855_s4] sm:$0xff] %v475_v8 }
  0xcf   :  { %v635_v34 = vpop.f32.mrf.mxu1  ;;  %v477_v35 = vpop.f32.mrf.mxu0 }
  0xd0   :  { %858 = vst [vmem:[%s1855_s4 + $0x200] sm:$0xff] %v635_v34  ;;  %795 = vst [vmem:[%s1855_s4 + $0x8] sm:$0xff] %v477_v35 }
  0xd1   :  { %v637_v1 = vpop.f32.mrf.mxu1  ;;  %v479_v43 = vpop.f32.mrf.mxu0 }
  0xd2   :  { %859 = vst [vmem:[%s1855_s4 + $0x208] sm:$0xff] %v637_v1  ;;  %796 = vst [vmem:[%s1855_s4 + $0x10] sm:$0xff] %v479_v43 }
  0xd3   :  { %v639_v49 = vpop.f32.mrf.mxu1  ;;  %v481_v59 = vpop.f32.mrf.mxu0 }
  0xd4   :  { %860 = vst [vmem:[%s1855_s4 + $0x210] sm:$0xff] %v639_v49  ;;  %797 = vst [vmem:[%s1855_s4 + $0x18] sm:$0xff] %v481_v59 }
  0xd5   :  { %v641_v9 = vpop.f32.mrf.mxu1  ;;  %v485_v15 = vpop.f32.mrf.mxu0 }
  0xd6   :  { %861 = vst [vmem:[%s1855_s4 + $0x218] sm:$0xff] %v641_v9  ;;  %798 = vst [vmem:[%s1855_s4 + $0x20] sm:$0xff] %v485_v15 }
  0xd7   :  { %v645_v6 = vpop.f32.mrf.mxu1  ;;  %v487_v42 = vpop.f32.mrf.mxu0 }
  0xd8   :  { %862 = vst [vmem:[%s1855_s4 + $0x220] sm:$0xff] %v645_v6  ;;  %799 = vst [vmem:[%s1855_s4 + $0x28] sm:$0xff] %v487_v42 }
  0xd9   :  { %v647_v54 = vpop.f32.mrf.mxu1  ;;  %v489_v0 = vpop.f32.mrf.mxu0 }
  0xda   :  { %863 = vst [vmem:[%s1855_s4 + $0x228] sm:$0xff] %v647_v54  ;;  %800 = vst [vmem:[%s1855_s4 + $0x30] sm:$0xff] %v489_v0 }
  0xdb   :  { %v649_v11 = vpop.f32.mrf.mxu1  ;;  %v491_v13 = vpop.f32.mrf.mxu0 }
  0xdc   :  { %864 = vst [vmem:[%s1855_s4 + $0x230] sm:$0xff] %v649_v11  ;;  %801 = vst [vmem:[%s1855_s4 + $0x38] sm:$0xff] %v491_v13 }
  0xdd   :  { %v651_v14 = vpop.f32.mrf.mxu1  ;;  %v495_v16 = vpop.f32.mrf.mxu0 }
  0xde   :  { %865 = vst [vmem:[%s1855_s4 + $0x238] sm:$0xff] %v651_v14  ;;  %802 = vst [vmem:[%s1855_s4 + $0x40] sm:$0xff] %v495_v16 }
  0xdf   :  { %v655_v17 = vpop.f32.mrf.mxu1  ;;  %v497_v21 = vpop.f32.mrf.mxu0 }
  0xe0   :  { %866 = vst [vmem:[%s1855_s4 + $0x240] sm:$0xff] %v655_v17  ;;  %803 = vst [vmem:[%s1855_s4 + $0x48] sm:$0xff] %v497_v21 }
  0xe1   :  { %v657_v22 = vpop.f32.mrf.mxu1  ;;  %v499_v25 = vpop.f32.mrf.mxu0 }
  0xe2   :  { %867 = vst [vmem:[%s1855_s4 + $0x248] sm:$0xff] %v657_v22  ;;  %804 = vst [vmem:[%s1855_s4 + $0x50] sm:$0xff] %v499_v25 }
  0xe3   :  { %v659_v26 = vpop.f32.mrf.mxu1  ;;  %v501_v27 = vpop.f32.mrf.mxu0 }
  0xe4   :  { %868 = vst [vmem:[%s1855_s4 + $0x250] sm:$0xff] %v659_v26  ;;  %805 = vst [vmem:[%s1855_s4 + $0x58] sm:$0xff] %v501_v27 }
  0xe5   :  { %v661_v29 = vpop.f32.mrf.mxu1  ;;  %v505_v19 = vpop.f32.mrf.mxu0 }
  0xe6   :  { %869 = vst [vmem:[%s1855_s4 + $0x258] sm:$0xff] %v661_v29  ;;  %806 = vst [vmem:[%s1855_s4 + $0x60] sm:$0xff] %v505_v19 }
  0xe7   :  { %v665_v30 = vpop.f32.mrf.mxu1  ;;  %v507_v31 = vpop.f32.mrf.mxu0 }
  0xe8   :  { %870 = vst [vmem:[%s1855_s4 + $0x260] sm:$0xff] %v665_v30  ;;  %807 = vst [vmem:[%s1855_s4 + $0x68] sm:$0xff] %v507_v31 }
  0xe9   :  { %v667_v32 = vpop.f32.mrf.mxu1  ;;  %v509_v33 = vpop.f32.mrf.mxu0 }
  0xea   :  { %871 = vst [vmem:[%s1855_s4 + $0x268] sm:$0xff] %v667_v32  ;;  %808 = vst [vmem:[%s1855_s4 + $0x70] sm:$0xff] %v509_v33 }
  0xeb   :  { %v669_v36 = vpop.f32.mrf.mxu1  ;;  %v511_v20 = vpop.f32.mrf.mxu0 }
  0xec   :  { %872 = vst [vmem:[%s1855_s4 + $0x270] sm:$0xff] %v669_v36  ;;  %809 = vst [vmem:[%s1855_s4 + $0x78] sm:$0xff] %v511_v20 }
  0xed   :  { %v671_v37 = vpop.f32.mrf.mxu1  ;;  %v515_v38 = vpop.f32.mrf.mxu0 }
  0xee   :  { %873 = vst [vmem:[%s1855_s4 + $0x278] sm:$0xff] %v671_v37  ;;  %810 = vst [vmem:[%s1855_s4 + $0x80] sm:$0xff] %v515_v38 }
  0xef   :  { %v675_v39 = vpop.f32.mrf.mxu1  ;;  %v517_v40 = vpop.f32.mrf.mxu0 }
  0xf0   :  { %874 = vst [vmem:[%s1855_s4 + $0x280] sm:$0xff] %v675_v39  ;;  %811 = vst [vmem:[%s1855_s4 + $0x88] sm:$0xff] %v517_v40 }
  0xf1   :  { %v677_v41 = vpop.f32.mrf.mxu1  ;;  %v519_v44 = vpop.f32.mrf.mxu0 }
  0xf2   :  { %875 = vst [vmem:[%s1855_s4 + $0x288] sm:$0xff] %v677_v41  ;;  %812 = vst [vmem:[%s1855_s4 + $0x90] sm:$0xff] %v519_v44 }
  0xf3   :  { %v679_v18 = vpop.f32.mrf.mxu1  ;;  %v521_v45 = vpop.f32.mrf.mxu0 }
  0xf4   :  { %876 = vst [vmem:[%s1855_s4 + $0x290] sm:$0xff] %v679_v18  ;;  %813 = vst [vmem:[%s1855_s4 + $0x98] sm:$0xff] %v521_v45 }
  0xf5   :  { %v681_v46 = vpop.f32.mrf.mxu1  ;;  %v525_v47 = vpop.f32.mrf.mxu0 }
  0xf6   :  { %877 = vst [vmem:[%s1855_s4 + $0x298] sm:$0xff] %v681_v46  ;;  %814 = vst [vmem:[%s1855_s4 + $0xa0] sm:$0xff] %v525_v47 }
  0xf7   :  { %v685_v48 = vpop.f32.mrf.mxu1  ;;  %v527_v50 = vpop.f32.mrf.mxu0 }
  0xf8   :  { %878 = vst [vmem:[%s1855_s4 + $0x2a0] sm:$0xff] %v685_v48  ;;  %815 = vst [vmem:[%s1855_s4 + $0xa8] sm:$0xff] %v527_v50 }
  0xf9   :  { %v687_v51 = vpop.f32.mrf.mxu1  ;;  %v529_v52 = vpop.f32.mrf.mxu0 }
  0xfa   :  { %879 = vst [vmem:[%s1855_s4 + $0x2a8] sm:$0xff] %v687_v51  ;;  %816 = vst [vmem:[%s1855_s4 + $0xb0] sm:$0xff] %v529_v52 }
  0xfb   :  { %v689_v53 = vpop.f32.mrf.mxu1  ;;  %v531_v55 = vpop.f32.mrf.mxu0 }
  0xfc   :  { %880 = vst [vmem:[%s1855_s4 + $0x2b0] sm:$0xff] %v689_v53  ;;  %817 = vst [vmem:[%s1855_s4 + $0xb8] sm:$0xff] %v531_v55 }
  0xfd   :  { %v691_v56 = vpop.f32.mrf.mxu1  ;;  %v535_v57 = vpop.f32.mrf.mxu0 }
  0xfe   :  { %881 = vst [vmem:[%s1855_s4 + $0x2b8] sm:$0xff] %v691_v56  ;;  %818 = vst [vmem:[%s1855_s4 + $0xc0] sm:$0xff] %v535_v57 }
  0xff   :  { %v695_v58 = vpop.f32.mrf.mxu1  ;;  %v537_v60 = vpop.f32.mrf.mxu0 }
 0x100   :  { %882 = vst [vmem:[%s1855_s4 + $0x2c0] sm:$0xff] %v695_v58  ;;  %819 = vst [vmem:[%s1855_s4 + $0xc8] sm:$0xff] %v537_v60 }
 0x101   :  { %v697_v61 = vpop.f32.mrf.mxu1  ;;  %v539_v62 = vpop.f32.mrf.mxu0 }
 0x102   :  { %883 = vst [vmem:[%s1855_s4 + $0x2c8] sm:$0xff] %v697_v61  ;;  %820 = vst [vmem:[%s1855_s4 + $0xd0] sm:$0xff] %v539_v62 }
 0x103   :  { %v699_v63 = vpop.f32.mrf.mxu1  ;;  %v541_v2 = vpop.f32.mrf.mxu0 }
 0x104   :  { %884 = vst [vmem:[%s1855_s4 + $0x2d0] sm:$0xff] %v699_v63  ;;  %821 = vst [vmem:[%s1855_s4 + $0xd8] sm:$0xff] %v541_v2 }
 0x105   :  { %v701_v3 = vpop.f32.mrf.mxu1  ;;  %v545_v7 = vpop.f32.mrf.mxu0 }
 0x106   :  { %885 = vst [vmem:[%s1855_s4 + $0x2d8] sm:$0xff] %v701_v3  ;;  %822 = vst [vmem:[%s1855_s4 + $0xe0] sm:$0xff] %v545_v7 }
 0x107   :  { %v705_v23 = vpop.f32.mrf.mxu1  ;;  %v547_v4 = vpop.f32.mrf.mxu0 }
 0x108   :  { %886 = vst [vmem:[%s1855_s4 + $0x2e0] sm:$0xff] %v705_v23  ;;  %823 = vst [vmem:[%s1855_s4 + $0xe8] sm:$0xff] %v547_v4 }
 0x109   :  { %v707_v5 = vpop.f32.mrf.mxu1  ;;  %v549_v28 = vpop.f32.mrf.mxu0 }
 0x10a   :  { %887 = vst [vmem:[%s1855_s4 + $0x2e8] sm:$0xff] %v707_v5  ;;  %824 = vst [vmem:[%s1855_s4 + $0xf0] sm:$0xff] %v549_v28 }
 0x10b   :  { %v709_v10 = vpop.f32.mrf.mxu1  ;;  %v551_v24 = vpop.f32.mrf.mxu0 }
 0x10c   :  { %888 = vst [vmem:[%s1855_s4 + $0x2f0] sm:$0xff] %v709_v10  ;;  %825 = vst [vmem:[%s1855_s4 + $0xf8] sm:$0xff] %v551_v24 }
 0x10d   :  { %v711_v12 = vpop.f32.mrf.mxu1  ;;  %v555_v8 = vpop.f32.mrf.mxu0 }
 0x10e   :  { %889 = vst [vmem:[%s1855_s4 + $0x2f8] sm:$0xff] %v711_v12  ;;  %826 = vst [vmem:[%s1855_s4 + $0x100] sm:$0xff] %v555_v8 }
 0x10f   :  { %v715_v34 = vpop.f32.mrf.mxu1  ;;  %v557_v35 = vpop.f32.mrf.mxu0 }
 0x110   :  { %890 = vst [vmem:[%s1855_s4 + $0x300] sm:$0xff] %v715_v34  ;;  %827 = vst [vmem:[%s1855_s4 + $0x108] sm:$0xff] %v557_v35 }
 0x111   :  { %v717_v1 = vpop.f32.mrf.mxu1  ;;  %v559_v43 = vpop.f32.mrf.mxu0 }
 0x112   :  { %891 = vst [vmem:[%s1855_s4 + $0x308] sm:$0xff] %v717_v1  ;;  %828 = vst [vmem:[%s1855_s4 + $0x110] sm:$0xff] %v559_v43 }
 0x113   :  { %v719_v49 = vpop.f32.mrf.mxu1  ;;  %v561_v59 = vpop.f32.mrf.mxu0 }
 0x114   :  { %892 = vst [vmem:[%s1855_s4 + $0x310] sm:$0xff] %v719_v49  ;;  %829 = vst [vmem:[%s1855_s4 + $0x118] sm:$0xff] %v561_v59 }
 0x115   :  { %v721_v9 = vpop.f32.mrf.mxu1  ;;  %v565_v15 = vpop.f32.mrf.mxu0 }
 0x116   :  { %893 = vst [vmem:[%s1855_s4 + $0x318] sm:$0xff] %v721_v9  ;;  %830 = vst [vmem:[%s1855_s4 + $0x120] sm:$0xff] %v565_v15 }
 0x117   :  { %v725_v6 = vpop.f32.mrf.mxu1  ;;  %v567_v42 = vpop.f32.mrf.mxu0 }
 0x118   :  { %894 = vst [vmem:[%s1855_s4 + $0x320] sm:$0xff] %v725_v6  ;;  %831 = vst [vmem:[%s1855_s4 + $0x128] sm:$0xff] %v567_v42 }
 0x119   :  { %v727_v54 = vpop.f32.mrf.mxu1  ;;  %v569_v0 = vpop.f32.mrf.mxu0 }
 0x11a   :  { %895 = vst [vmem:[%s1855_s4 + $0x328] sm:$0xff] %v727_v54  ;;  %832 = vst [vmem:[%s1855_s4 + $0x130] sm:$0xff] %v569_v0 }
 0x11b   :  { %v729_v11 = vpop.f32.mrf.mxu1  ;;  %v571_v13 = vpop.f32.mrf.mxu0 }
 0x11c   :  { %896 = vst [vmem:[%s1855_s4 + $0x330] sm:$0xff] %v729_v11  ;;  %833 = vst [vmem:[%s1855_s4 + $0x138] sm:$0xff] %v571_v13 }
 0x11d   :  { %v731_v14 = vpop.f32.mrf.mxu1  ;;  %v575_v16 = vpop.f32.mrf.mxu0 }
 0x11e   :  { %897 = vst [vmem:[%s1855_s4 + $0x338] sm:$0xff] %v731_v14  ;;  %834 = vst [vmem:[%s1855_s4 + $0x140] sm:$0xff] %v575_v16 }
 0x11f   :  { %v735_v17 = vpop.f32.mrf.mxu1  ;;  %v577_v21 = vpop.f32.mrf.mxu0 }
 0x120   :  { %898 = vst [vmem:[%s1855_s4 + $0x340] sm:$0xff] %v735_v17  ;;  %835 = vst [vmem:[%s1855_s4 + $0x148] sm:$0xff] %v577_v21 }
 0x121   :  { %v737_v22 = vpop.f32.mrf.mxu1  ;;  %v579_v25 = vpop.f32.mrf.mxu0 }
 0x122   :  { %899 = vst [vmem:[%s1855_s4 + $0x348] sm:$0xff] %v737_v22  ;;  %836 = vst [vmem:[%s1855_s4 + $0x150] sm:$0xff] %v579_v25 }
 0x123   :  { %v739_v26 = vpop.f32.mrf.mxu1  ;;  %v581_v27 = vpop.f32.mrf.mxu0 }
 0x124   :  { %900 = vst [vmem:[%s1855_s4 + $0x350] sm:$0xff] %v739_v26  ;;  %837 = vst [vmem:[%s1855_s4 + $0x158] sm:$0xff] %v581_v27 }
 0x125   :  { %v741_v29 = vpop.f32.mrf.mxu1  ;;  %v585_v19 = vpop.f32.mrf.mxu0 }
 0x126   :  { %901 = vst [vmem:[%s1855_s4 + $0x358] sm:$0xff] %v741_v29  ;;  %838 = vst [vmem:[%s1855_s4 + $0x160] sm:$0xff] %v585_v19 }
 0x127   :  { %v745_v30 = vpop.f32.mrf.mxu1  ;;  %v587_v31 = vpop.f32.mrf.mxu0 }
 0x128   :  { %902 = vst [vmem:[%s1855_s4 + $0x360] sm:$0xff] %v745_v30  ;;  %839 = vst [vmem:[%s1855_s4 + $0x168] sm:$0xff] %v587_v31 }
 0x129   :  { %v747_v32 = vpop.f32.mrf.mxu1  ;;  %v589_v33 = vpop.f32.mrf.mxu0 }
 0x12a   :  { %903 = vst [vmem:[%s1855_s4 + $0x368] sm:$0xff] %v747_v32  ;;  %840 = vst [vmem:[%s1855_s4 + $0x170] sm:$0xff] %v589_v33 }
 0x12b   :  { %v749_v36 = vpop.f32.mrf.mxu1  ;;  %v591_v20 = vpop.f32.mrf.mxu0 }
 0x12c   :  { %904 = vst [vmem:[%s1855_s4 + $0x370] sm:$0xff] %v749_v36  ;;  %841 = vst [vmem:[%s1855_s4 + $0x178] sm:$0xff] %v591_v20 }
 0x12d   :  { %v751_v37 = vpop.f32.mrf.mxu1  ;;  %v595_v38 = vpop.f32.mrf.mxu0 }
 0x12e   :  { %905 = vst [vmem:[%s1855_s4 + $0x378] sm:$0xff] %v751_v37  ;;  %842 = vst [vmem:[%s1855_s4 + $0x180] sm:$0xff] %v595_v38 }
 0x12f   :  { %v755_v39 = vpop.f32.mrf.mxu1  ;;  %v597_v40 = vpop.f32.mrf.mxu0 }
 0x130   :  { %906 = vst [vmem:[%s1855_s4 + $0x380] sm:$0xff] %v755_v39  ;;  %843 = vst [vmem:[%s1855_s4 + $0x188] sm:$0xff] %v597_v40 }
 0x131   :  { %v757_v41 = vpop.f32.mrf.mxu1  ;;  %v599_v44 = vpop.f32.mrf.mxu0 }
 0x132   :  { %907 = vst [vmem:[%s1855_s4 + $0x388] sm:$0xff] %v757_v41  ;;  %844 = vst [vmem:[%s1855_s4 + $0x190] sm:$0xff] %v599_v44 }
 0x133   :  { %v759_v18 = vpop.f32.mrf.mxu1  ;;  %v601_v45 = vpop.f32.mrf.mxu0 }
 0x134   :  { %908 = vst [vmem:[%s1855_s4 + $0x390] sm:$0xff] %v759_v18  ;;  %845 = vst [vmem:[%s1855_s4 + $0x198] sm:$0xff] %v601_v45 }
 0x135   :  { %v761_v46 = vpop.f32.mrf.mxu1  ;;  %v605_v47 = vpop.f32.mrf.mxu0 }
 0x136   :  { %909 = vst [vmem:[%s1855_s4 + $0x398] sm:$0xff] %v761_v46  ;;  %846 = vst [vmem:[%s1855_s4 + $0x1a0] sm:$0xff] %v605_v47 }
 0x137   :  { %v765_v48 = vpop.f32.mrf.mxu1  ;;  %v607_v50 = vpop.f32.mrf.mxu0 }
 0x138   :  { %910 = vst [vmem:[%s1855_s4 + $0x3a0] sm:$0xff] %v765_v48  ;;  %847 = vst [vmem:[%s1855_s4 + $0x1a8] sm:$0xff] %v607_v50 }
 0x139   :  { %v767_v51 = vpop.f32.mrf.mxu1  ;;  %v609_v52 = vpop.f32.mrf.mxu0 }
 0x13a   :  { %911 = vst [vmem:[%s1855_s4 + $0x3a8] sm:$0xff] %v767_v51  ;;  %848 = vst [vmem:[%s1855_s4 + $0x1b0] sm:$0xff] %v609_v52 }
 0x13b   :  { %v769_v53 = vpop.f32.mrf.mxu1  ;;  %v611_v55 = vpop.f32.mrf.mxu0 }
 0x13c   :  { %912 = vst [vmem:[%s1855_s4 + $0x3b0] sm:$0xff] %v769_v53  ;;  %849 = vst [vmem:[%s1855_s4 + $0x1b8] sm:$0xff] %v611_v55 }
 0x13d   :  { %v771_v56 = vpop.f32.mrf.mxu1  ;;  %v615_v57 = vpop.f32.mrf.mxu0 }
 0x13e   :  { %913 = vst [vmem:[%s1855_s4 + $0x3b8] sm:$0xff] %v771_v56  ;;  %850 = vst [vmem:[%s1855_s4 + $0x1c0] sm:$0xff] %v615_v57 }
 0x13f   :  { %v775_v58 = vpop.f32.mrf.mxu1  ;;  %v617_v60 = vpop.f32.mrf.mxu0 }
 0x140   :  { %914 = vst [vmem:[%s1855_s4 + $0x3c0] sm:$0xff] %v775_v58  ;;  %851 = vst [vmem:[%s1855_s4 + $0x1c8] sm:$0xff] %v617_v60 }
 0x141   :  { %v777_v61 = vpop.f32.mrf.mxu1  ;;  %v619_v62 = vpop.f32.mrf.mxu0 }
 0x142   :  { %915 = vst [vmem:[%s1855_s4 + $0x3c8] sm:$0xff] %v777_v61  ;;  %852 = vst [vmem:[%s1855_s4 + $0x1d0] sm:$0xff] %v619_v62 }
 0x143   :  { %v779_v63 = vpop.f32.mrf.mxu1  ;;  %v621_v2 = vpop.f32.mrf.mxu0 }
 0x144   :  { %916 = vst [vmem:[%s1855_s4 + $0x3d0] sm:$0xff] %v779_v63  ;;  %853 = vst [vmem:[%s1855_s4 + $0x1d8] sm:$0xff] %v621_v2 }
 0x145   :  { %v781_v3 = vpop.f32.mrf.mxu1  ;;  %v625_v7 = vpop.f32.mrf.mxu0 }
 0x146   :  { %917 = vst [vmem:[%s1855_s4 + $0x3d8] sm:$0xff] %v781_v3  ;;  %854 = vst [vmem:[%s1855_s4 + $0x1e0] sm:$0xff] %v625_v7 }
 0x147   :  { %v785_v23 = vpop.f32.mrf.mxu1  ;;  %v627_v4 = vpop.f32.mrf.mxu0 }
 0x148   :  { %918 = vst [vmem:[%s1855_s4 + $0x3e0] sm:$0xff] %v785_v23  ;;  %855 = vst [vmem:[%s1855_s4 + $0x1e8] sm:$0xff] %v627_v4 }
 0x149   :  { %v787_v5 = vpop.f32.mrf.mxu1  ;;  %v629_v28 = vpop.f32.mrf.mxu0 }
 0x14a   :  { %919 = vst [vmem:[%s1855_s4 + $0x3e8] sm:$0xff] %v787_v5  ;;  %856 = vst [vmem:[%s1855_s4 + $0x1f0] sm:$0xff] %v629_v28 }
 0x14b   :  { %v789_v10 = vpop.f32.mrf.mxu1  ;;  %v631_v24 = vpop.f32.mrf.mxu0 }
 0x14c   :  { %920 = vst [vmem:[%s1855_s4 + $0x3f0] sm:$0xff] %v789_v10  ;;  %857 = vst [vmem:[%s1855_s4 + $0x1f8] sm:$0xff] %v631_v24 }
 0x14d   :  { %v791_v12 = vpop.f32.mrf.mxu1 }
 0x14e   :  { %921 = vst [vmem:[%s1855_s4 + $0x3f8] sm:$0xff] %v791_v12 }

// kernel: generator_forward.17
= control target key start
LH: loop header
LB: loop body
LE: loop exit
PB: predicated region body
PF: predicated region fallthrough
CT: control target
= control target key end

     0   :  { %s614_s9 = smov 0   ;;  %s1132_s0 = inlined_call_operand.vmem [shape: f32[2048,16], index: 0, kind: input, shape index: {}]   ;;  %s1133_s1 = inlined_call_operand.vmem [shape: f32[1,16], index: 1, kind: output, shape index: {0}]   ;;  %s1134_s2 = inlined_call_operand.vmem [shape: f32[1,16], index: 2, kind: output, shape index: {1}]  }
   0x1 LB: > { %s572_s10 = sadd.s32 4294967295, %s596_s9   ;;  %p575_p0 = scmp.ge.s32.totalorder %s596_s9, 1  ;;  %s596_s9 = sphi %s614_s9, %s13_s9  }
   0x2   : > { %p106_p1 = scmp.lt.s32.totalorder %s596_s9, 5 }
   0x4   : > { %p107_p2 = pnand %p575_p0, %p106_p1 }
   0x5   : > { %s576_s11 = sshll.u32 (!%p107_p2), %s572_s10, 6  ;;  %p578_p4 = scmp.ne.s32.totalorder (!%p107_p2), %s572_s10, 0 }
   0x6   : > { %110 = sbr.rel (%p107_p2) target bundleno = 182 (0xb6), region = 24  ;;  %p124_p3 = scmp.lt.s32.totalorder (!%p107_p2), %s576_s11, 255 }
   0xb   : > { %s1136_s11 = smov (!%p124_p3, %s576_s11), 255  ;;  %132 = sbr.rel (%p578_p4) target bundleno = 18 (0x12), region = 28 }
   0xc   : > { %s577_s12 = sshll.u32 %s1136_s11, 3 }
   0xd   : > { %s625_s15 = scalar_lea.vmem %s1132_s0, %s577_s12 }
  0x10   : > { %vm133_vm0 = vcmask 122880   ;;  %v598_v0 = vmov 0.0  }
  0x11   : > { %134 = vst.msk [vmem:[%s1133_s1] sm:$0x1] %vm133_vm0, %v598_v0  ;;  %135 = vst.msk [vmem:[%s1134_s2] sm:$0x1] %vm133_vm0, %v598_v0 }
  0x12 PF: > { %v136_v1 = vld [vmem:[%s625_s15] sm:$0xff]  ;;  %v137_v2 = vld [vmem:[%s625_s15 + $0x8] sm:$0xff]  ;;  %v138_v3 = vld [vmem:[%s625_s15 + $0x10] sm:$0xff]  ;;  %vm201_vm1 = vcmask 130048   ;;  %vm336_vm2 = vcmask 122880  }
  0x13   : > { %v202_v4 = vsel %vm201_vm1, %v136_v1, 0.0  ;;  %v203_v5 = vsel %vm201_vm1, %v137_v2, 0.0  ;;  %v205_v6 = vsel %vm201_vm1, %v138_v3, 0.0  ;;  %v139_v7 = vld [vmem:[%s625_s15 + $0x18] sm:$0xff]  ;;  %v140_v10 = vld [vmem:[%s625_s15 + $0x20] sm:$0xff]  ;;  %v141_v13 = vld [vmem:[%s625_s15 + $0x28] sm:$0xff]  ;;  %v339_v55 = vmul.f32 %v136_v1, %v136_v1 }
  0x14   : > { %v204_v8 = vadd.f32 %v203_v5, %v202_v4  ;;  %v207_v9 = vsel %vm201_vm1, %v139_v7, 0.0  ;;  %v209_v12 = vsel %vm201_vm1, %v140_v10, 0.0  ;;  %v211_v15 = vsel %vm201_vm1, %v141_v13, 0.0  ;;  %v646_v16 = vld [vmem:[%s625_s15 + $0x30] sm:$0xff]  ;;  %v651_v19 = vld [vmem:[%s625_s15 + $0x38] sm:$0xff]  ;;  %v656_v22 = vld [vmem:[%s625_s15 + $0x40] sm:$0xff] }
  0x15   : > { %v213_v18 = vsel %vm201_vm1, %v646_v16, 0.0  ;;  %v215_v21 = vsel %vm201_vm1, %v651_v19, 0.0  ;;  %v217_v24 = vsel %vm201_vm1, %v656_v22, 0.0  ;;  %v661_v25 = vld [vmem:[%s625_s15 + $0x48] sm:$0xff]  ;;  %v666_v28 = vld [vmem:[%s625_s15 + $0x50] sm:$0xff]  ;;  %v671_v31 = vld [vmem:[%s625_s15 + $0x58] sm:$0xff]  ;;  %v340_v58 = vmul.f32 %v137_v2, %v137_v2 }
  0x16   : > { %v206_v11 = vadd.f32 %v205_v6, %v204_v8  ;;  %v219_v27 = vsel %vm201_vm1, %v661_v25, 0.0  ;;  %v221_v30 = vsel %vm201_vm1, %v666_v28, 0.0  ;;  %v223_v33 = vsel %vm201_vm1, %v671_v31, 0.0  ;;  %v676_v34 = vld [vmem:[%s625_s15 + $0x60] sm:$0xff]  ;;  %v681_v37 = vld [vmem:[%s625_s15 + $0x68] sm:$0xff]  ;;  %v686_v40 = vld [vmem:[%s625_s15 + $0x70] sm:$0xff] }
  0x17   : > { %v225_v36 = vsel %vm201_vm1, %v676_v34, 0.0  ;;  %v227_v39 = vsel %vm201_vm1, %v681_v37, 0.0  ;;  %v229_v42 = vsel %vm201_vm1, %v686_v40, 0.0  ;;  %v691_v43 = vld [vmem:[%s625_s15 + $0x78] sm:$0xff]  ;;  %v696_v46 = vld [vmem:[%s625_s15 + $0x80] sm:$0xff]  ;;  %v701_v49 = vld [vmem:[%s625_s15 + $0x88] sm:$0xff]  ;;  %v341_v59 = vmul.f32 %v138_v3, %v138_v3 }
  0x18   : > { %v208_v14 = vadd.f32 %v207_v9, %v206_v11  ;;  %v231_v45 = vsel %vm201_vm1, %v691_v43, 0.0  ;;  %v233_v48 = vsel %vm201_vm1, %v696_v46, 0.0  ;;  %v235_v51 = vsel %vm201_vm1, %v701_v49, 0.0  ;;  %v706_v52 = vld [vmem:[%s625_s15 + $0x90] sm:$0xff]  ;;  %v711_v56 = vld [vmem:[%s625_s15 + $0x98] sm:$0xff]  ;;  %v716_v61 = vld [vmem:[%s625_s15 + $0xa0] sm:$0xff] }
  0x19   : > { %v237_v54 = vsel %vm201_vm1, %v706_v52, 0.0  ;;  %v239_v60 = vsel %vm201_vm1, %v711_v56, 0.0  ;;  %v342_v63 = vmul.f32 %v139_v7, %v139_v7  ;;  %v241_v0 = vsel %vm201_vm1, %v716_v61, 0.0  ;;  %v722_v1 = vld [vmem:[%s625_s15 + $0xa8] sm:$0xff]  ;;  %v729_v7 = vld [vmem:[%s625_s15 + $0xb0] sm:$0xff] }
  0x1a   : > { %v210_v17 = vadd.f32 %v209_v12, %v208_v14  ;;  %v403_v4 = vsel %vm201_vm1, %v339_v55, 0.0  ;;  %v343_v6 = vmul.f32 %v140_v10, %v140_v10  ;;  %v404_v2 = vsel %vm201_vm1, %v340_v58, 0.0 }
  0x1b   : > { %v406_v3 = vsel %vm201_vm1, %v341_v59, 0.0  ;;  %v243_v8 = vsel %vm201_vm1, %v722_v1, 0.0  ;;  %v405_v9 = vadd.f32 %v404_v2, %v403_v4  ;;  %v344_v12 = vmul.f32 %v141_v13, %v141_v13 }
  0x1c   : > { %v212_v20 = vadd.f32 %v211_v15, %v210_v17  ;;  %v408_v14 = vsel %vm201_vm1, %v342_v63, 0.0  ;;  %v245_v15 = vsel %vm201_vm1, %v729_v7, 0.0  ;;  %v735_v17 = vld [vmem:[%s625_s15 + $0xb8] sm:$0xff]  ;;  %v351_v63 = vmul.f32 %v676_v34, %v676_v34 }
  0x1d   : > { %v407_v10 = vadd.f32 %v406_v3, %v405_v9  ;;  %v352_v2 = vmul.f32 %v681_v37, %v681_v37  ;;  %v799_v9 = vld [vmem:[%s625_s15 + $0xf8] sm:$0xff] }
  0x1e   : > { %v214_v23 = vadd.f32 %v213_v18, %v212_v20  ;;  %v345_v20 = vmul.f32 %v646_v16, %v646_v16 }
  0x1f   : > { %v409_v13 = vadd.f32 %v408_v14, %v407_v10  ;;  %v426_v14 = vsel %vm201_vm1, %v351_v63, 0.0  ;;  %v807_v10 = vld [vmem:[%s625_s15 + $0x100] sm:$0xff]  ;;  %v360_v63 = vmul.f32 %v722_v1, %v722_v1 }
  0x20   : > { %v216_v26 = vadd.f32 %v215_v21, %v214_v23  ;;  %v410_v21 = vsel %vm201_vm1, %v343_v6, 0.0  ;;  %v247_v23 = vsel %vm201_vm1, %v735_v17, 0.0 }
  0x21   : > { %v411_v16 = vadd.f32 %v410_v21, %v409_v13  ;;  %v428_v21 = vsel %vm201_vm1, %v352_v2, 0.0  ;;  %v815_v13 = vld [vmem:[%s625_s15 + $0x108] sm:$0xff]  ;;  %v361_v2 = vmul.f32 %v729_v7, %v729_v7 }
  0x22   : > { %v218_v29 = vadd.f32 %v217_v24, %v216_v26  ;;  %v743_v24 = vld [vmem:[%s625_s15 + $0xc0] sm:$0xff] }
  0x24   : > { %v220_v32 = vadd.f32 %v219_v27, %v218_v29  ;;  %v346_v27 = vmul.f32 %v651_v19, %v651_v19  ;;  %v412_v29 = vsel %vm201_vm1, %v344_v12, 0.0  ;;  %v353_v12 = vmul.f32 %v686_v40, %v686_v40 }
  0x25   : > { %v413_v19 = vadd.f32 %v412_v29, %v411_v16  ;;  %v823_v16 = vld [vmem:[%s625_s15 + $0x110] sm:$0xff] }
  0x26   : > { %v222_v35 = vadd.f32 %v221_v30, %v220_v32  ;;  %v249_v30 = vsel %vm201_vm1, %v743_v24, 0.0  ;;  %v751_v32 = vld [vmem:[%s625_s15 + $0xc8] sm:$0xff]  ;;  %v430_v29 = vsel %vm201_vm1, %v353_v12, 0.0  ;;  %v362_v12 = vmul.f32 %v735_v17, %v735_v17 }
  0x28   : > { %v224_v38 = vadd.f32 %v223_v33, %v222_v35  ;;  %v347_v35 = vmul.f32 %v656_v22, %v656_v22 }
  0x2a   : > { %v226_v41 = vadd.f32 %v225_v36, %v224_v38  ;;  %v414_v36 = vsel %vm201_vm1, %v345_v20, 0.0  ;;  %v251_v38 = vsel %vm201_vm1, %v751_v32, 0.0  ;;  %v354_v20 = vmul.f32 %v691_v43, %v691_v43 }
  0x2b   : > { %v415_v22 = vadd.f32 %v414_v36, %v413_v19  ;;  %v831_v19 = vld [vmem:[%s625_s15 + $0x118] sm:$0xff] }
  0x2c   : > { %v228_v44 = vadd.f32 %v227_v39, %v226_v41  ;;  %v759_v39 = vld [vmem:[%s625_s15 + $0xd0] sm:$0xff]  ;;  %v432_v36 = vsel %vm201_vm1, %v354_v20, 0.0  ;;  %v363_v20 = vmul.f32 %v743_v24, %v743_v24 }
  0x2e   : > { %v230_v47 = vadd.f32 %v229_v42, %v228_v44  ;;  %v348_v42 = vmul.f32 %v661_v25, %v661_v25  ;;  %v416_v44 = vsel %vm201_vm1, %v346_v27, 0.0  ;;  %v355_v27 = vmul.f32 %v696_v46, %v696_v46 }
  0x2f   : > { %v417_v25 = vadd.f32 %v416_v44, %v415_v22  ;;  %v839_v22 = vld [vmem:[%s625_s15 + $0x120] sm:$0xff] }
  0x30   : > { %v232_v50 = vadd.f32 %v231_v45, %v230_v47  ;;  %v253_v45 = vsel %vm201_vm1, %v759_v39, 0.0  ;;  %v767_v47 = vld [vmem:[%s625_s15 + $0xd8] sm:$0xff]  ;;  %v420_v58 = vsel %vm201_vm1, %v348_v42, 0.0  ;;  %v357_v42 = vmul.f32 %v706_v52, %v706_v52 }
  0x31   : > { %v434_v44 = vsel %vm201_vm1, %v355_v27, 0.0  ;;  %v364_v27 = vmul.f32 %v751_v32, %v751_v32 }
  0x32   : > { %v234_v53 = vadd.f32 %v233_v48, %v232_v50  ;;  %v349_v50 = vmul.f32 %v666_v28, %v666_v28 }
  0x34   : > { %v236_v57 = vadd.f32 %v235_v51, %v234_v53  ;;  %v418_v51 = vsel %vm201_vm1, %v347_v35, 0.0  ;;  %v255_v53 = vsel %vm201_vm1, %v767_v47, 0.0  ;;  %v356_v35 = vmul.f32 %v701_v49, %v701_v49 }
  0x35   : > { %v419_v28 = vadd.f32 %v418_v51, %v417_v25  ;;  %v847_v25 = vld [vmem:[%s625_s15 + $0x128] sm:$0xff] }
  0x36   : > { %v238_v62 = vadd.f32 %v237_v54, %v236_v57  ;;  %v775_v54 = vld [vmem:[%s625_s15 + $0xe0] sm:$0xff]  ;;  %v350_v57 = vmul.f32 %v671_v31, %v671_v31  ;;  %v436_v51 = vsel %vm201_vm1, %v356_v35, 0.0  ;;  %v365_v35 = vmul.f32 %v759_v39, %v759_v39 }
  0x37   : > { %v257_v59 = vsel %vm201_vm1, %v775_v54, 0.0  ;;  %v421_v31 = vadd.f32 %v420_v58, %v419_v28  ;;  %v438_v58 = vsel %vm201_vm1, %v357_v42, 0.0  ;;  %v855_v28 = vld [vmem:[%s625_s15 + $0x130] sm:$0xff]  ;;  %v366_v42 = vmul.f32 %v767_v47, %v767_v47 }
  0x38   : > { %v240_v5 = vadd.f32 %v239_v60, %v238_v62  ;;  %v783_v60 = vld [vmem:[%s625_s15 + $0xe8] sm:$0xff]  ;;  %v424_v3 = vsel %vm201_vm1, %v350_v57, 0.0  ;;  %v359_v57 = vmul.f32 %v716_v61, %v716_v61 }
  0x39   : > { %v259_v4 = vsel %vm201_vm1, %v783_v60, 0.0 }
  0x3a   : > { %v242_v11 = vadd.f32 %v241_v0, %v240_v5  ;;  %v422_v0 = vsel %vm201_vm1, %v349_v50, 0.0  ;;  %v791_v5 = vld [vmem:[%s625_s15 + $0xf0] sm:$0xff]  ;;  %v358_v50 = vmul.f32 %v711_v56, %v711_v56 }
  0x3b   : > { %v423_v34 = vadd.f32 %v422_v0, %v421_v31  ;;  %v863_v31 = vld [vmem:[%s625_s15 + $0x138] sm:$0xff] }
  0x3c   : > { %v244_v18 = vadd.f32 %v243_v8, %v242_v11  ;;  %v261_v8 = vsel %vm201_vm1, %v791_v5, 0.0  ;;  %v440_v0 = vsel %vm201_vm1, %v358_v50, 0.0  ;;  %v367_v50 = vmul.f32 %v775_v54, %v775_v54 }
  0x3d   : > { %v425_v37 = vadd.f32 %v424_v3, %v423_v34  ;;  %v442_v3 = vsel %vm201_vm1, %v359_v57, 0.0  ;;  %v871_v34 = vld [vmem:[%s625_s15 + $0x140] sm:$0xff]  ;;  %v368_v57 = vmul.f32 %v783_v60, %v783_v60 }
  0x3e   : > { %v246_v26 = vadd.f32 %v245_v15, %v244_v18  ;;  %v263_v15 = vsel %vm201_vm1, %v799_v9, 0.0 }
  0x3f   : > { %v427_v40 = vadd.f32 %v426_v14, %v425_v37  ;;  %v444_v14 = vsel %vm201_vm1, %v360_v63, 0.0  ;;  %v879_v37 = vld [vmem:[%s625_s15 + $0x148] sm:$0xff]  ;;  %v369_v63 = vmul.f32 %v791_v5, %v791_v5 }
  0x40   : > { %v248_v33 = vadd.f32 %v247_v23, %v246_v26  ;;  %v265_v23 = vsel %vm201_vm1, %v807_v10, 0.0 }
  0x41   : > { %v429_v43 = vadd.f32 %v428_v21, %v427_v40  ;;  %v446_v21 = vsel %vm201_vm1, %v361_v2, 0.0  ;;  %v887_v40 = vld [vmem:[%s625_s15 + $0x150] sm:$0xff]  ;;  %v370_v2 = vmul.f32 %v799_v9, %v799_v9 }
  0x42   : > { %v250_v41 = vadd.f32 %v249_v30, %v248_v33  ;;  %v267_v30 = vsel %vm201_vm1, %v815_v13, 0.0 }
  0x43   : > { %v431_v46 = vadd.f32 %v430_v29, %v429_v43  ;;  %v448_v29 = vsel %vm201_vm1, %v362_v12, 0.0  ;;  %v895_v43 = vld [vmem:[%s625_s15 + $0x158] sm:$0xff]  ;;  %v371_v12 = vmul.f32 %v807_v10, %v807_v10 }
  0x44   : > { %v252_v48 = vadd.f32 %v251_v38, %v250_v41  ;;  %v269_v38 = vsel %vm201_vm1, %v823_v16, 0.0 }
  0x45   : > { %v433_v49 = vadd.f32 %v432_v36, %v431_v46  ;;  %v450_v36 = vsel %vm201_vm1, %v363_v20, 0.0  ;;  %v903_v46 = vld [vmem:[%s625_s15 + $0x160] sm:$0xff]  ;;  %v372_v20 = vmul.f32 %v815_v13, %v815_v13 }
  0x46   : > { %v254_v55 = vadd.f32 %v253_v45, %v252_v48  ;;  %v271_v45 = vsel %vm201_vm1, %v831_v19, 0.0 }
  0x47   : > { %v435_v52 = vadd.f32 %v434_v44, %v433_v49  ;;  %v452_v44 = vsel %vm201_vm1, %v364_v27, 0.0  ;;  %v911_v49 = vld [vmem:[%s625_s15 + $0x168] sm:$0xff]  ;;  %v373_v27 = vmul.f32 %v823_v16, %v823_v16 }
  0x48   : > { %v256_v62 = vadd.f32 %v255_v53, %v254_v55  ;;  %v273_v53 = vsel %vm201_vm1, %v839_v22, 0.0 }
  0x49   : > { %v437_v56 = vadd.f32 %v436_v51, %v435_v52  ;;  %v454_v51 = vsel %vm201_vm1, %v365_v35, 0.0  ;;  %v919_v52 = vld [vmem:[%s625_s15 + $0x170] sm:$0xff]  ;;  %v374_v35 = vmul.f32 %v831_v19, %v831_v19 }
  0x4a   : > { %v258_v6 = vadd.f32 %v257_v59, %v256_v62  ;;  %v275_v59 = vsel %vm201_vm1, %v847_v25, 0.0 }
  0x4b   : > { %v439_v61 = vadd.f32 %v438_v58, %v437_v56  ;;  %v456_v58 = vsel %vm201_vm1, %v366_v42, 0.0  ;;  %v927_v56 = vld [vmem:[%s625_s15 + $0x178] sm:$0xff]  ;;  %v375_v42 = vmul.f32 %v839_v22, %v839_v22 }
  0x4c   : > { %v260_v11 = vadd.f32 %v259_v4, %v258_v6  ;;  %v277_v4 = vsel %vm201_vm1, %v855_v28, 0.0 }
  0x4d   : > { %v441_v1 = vadd.f32 %v440_v0, %v439_v61  ;;  %v458_v0 = vsel %vm201_vm1, %v367_v50, 0.0  ;;  %v935_v61 = vld [vmem:[%s625_s15 + $0x180] sm:$0xff]  ;;  %v376_v50 = vmul.f32 %v847_v25, %v847_v25 }
  0x4e   : > { %v262_v18 = vadd.f32 %v261_v8, %v260_v11  ;;  %v279_v8 = vsel %vm201_vm1, %v863_v31, 0.0 }
  0x4f   : > { %v443_v7 = vadd.f32 %v442_v3, %v441_v1  ;;  %v460_v3 = vsel %vm201_vm1, %v368_v57, 0.0  ;;  %v943_v1 = vld [vmem:[%s625_s15 + $0x188] sm:$0xff]  ;;  %v377_v57 = vmul.f32 %v855_v28, %v855_v28 }
  0x50   : > { %v264_v26 = vadd.f32 %v263_v15, %v262_v18  ;;  %v281_v15 = vsel %vm201_vm1, %v871_v34, 0.0 }
  0x51   : > { %v445_v17 = vadd.f32 %v444_v14, %v443_v7  ;;  %v462_v14 = vsel %vm201_vm1, %v369_v63, 0.0  ;;  %v951_v7 = vld [vmem:[%s625_s15 + $0x190] sm:$0xff]  ;;  %v378_v63 = vmul.f32 %v863_v31, %v863_v31 }
  0x52   : > { %v266_v33 = vadd.f32 %v265_v23, %v264_v26  ;;  %v283_v23 = vsel %vm201_vm1, %v879_v37, 0.0 }
  0x53   : > { %v447_v24 = vadd.f32 %v446_v21, %v445_v17  ;;  %v464_v21 = vsel %vm201_vm1, %v370_v2, 0.0  ;;  %v959_v17 = vld [vmem:[%s625_s15 + $0x198] sm:$0xff]  ;;  %v379_v2 = vmul.f32 %v871_v34, %v871_v34 }
  0x54   : > { %v268_v41 = vadd.f32 %v267_v30, %v266_v33  ;;  %v285_v30 = vsel %vm201_vm1, %v887_v40, 0.0 }
  0x55   : > { %v449_v32 = vadd.f32 %v448_v29, %v447_v24  ;;  %v466_v29 = vsel %vm201_vm1, %v371_v12, 0.0  ;;  %v967_v24 = vld [vmem:[%s625_s15 + $0x1a0] sm:$0xff]  ;;  %v380_v12 = vmul.f32 %v879_v37, %v879_v37 }
  0x56   : > { %v270_v48 = vadd.f32 %v269_v38, %v268_v41  ;;  %v287_v38 = vsel %vm201_vm1, %v895_v43, 0.0 }
  0x57   : > { %v451_v39 = vadd.f32 %v450_v36, %v449_v32  ;;  %v468_v36 = vsel %vm201_vm1, %v372_v20, 0.0  ;;  %v975_v32 = vld [vmem:[%s625_s15 + $0x1a8] sm:$0xff]  ;;  %v381_v20 = vmul.f32 %v887_v40, %v887_v40 }
  0x58   : > { %v272_v55 = vadd.f32 %v271_v45, %v270_v48  ;;  %v289_v45 = vsel %vm201_vm1, %v903_v46, 0.0 }
  0x59   : > { %v453_v47 = vadd.f32 %v452_v44, %v451_v39  ;;  %v470_v44 = vsel %vm201_vm1, %v373_v27, 0.0  ;;  %v983_v39 = vld [vmem:[%s625_s15 + $0x1b0] sm:$0xff]  ;;  %v382_v27 = vmul.f32 %v895_v43, %v895_v43 }
  0x5a   : > { %v274_v62 = vadd.f32 %v273_v53, %v272_v55  ;;  %v291_v53 = vsel %vm201_vm1, %v911_v49, 0.0  ;;  %v1047_v43 = vld [vmem:[%s625_s15 + $0x1f0] sm:$0xff] }
  0x5b   : > { %v455_v54 = vadd.f32 %v454_v51, %v453_v47  ;;  %v472_v51 = vsel %vm201_vm1, %v374_v35, 0.0  ;;  %v991_v47 = vld [vmem:[%s625_s15 + $0x1b8] sm:$0xff]  ;;  %v383_v35 = vmul.f32 %v903_v46, %v903_v46 }
  0x5c   : > { %v276_v6 = vadd.f32 %v275_v59, %v274_v62  ;;  %v293_v59 = vsel %vm201_vm1, %v919_v52, 0.0 }
  0x5d   : > { %v457_v60 = vadd.f32 %v456_v58, %v455_v54  ;;  %v474_v58 = vsel %vm201_vm1, %v375_v42, 0.0  ;;  %v999_v54 = vld [vmem:[%s625_s15 + $0x1c0] sm:$0xff]  ;;  %v384_v42 = vmul.f32 %v911_v49, %v911_v49  ;;  %v386_v49 = vmul.f32 %v927_v56, %v927_v56 }
  0x5e   : > { %v278_v11 = vadd.f32 %v277_v4, %v276_v6  ;;  %v295_v4 = vsel %vm201_vm1, %v927_v56, 0.0  ;;  %v389_v56 = vmul.f32 %v951_v7, %v951_v7 }
  0x5f   : > { %v459_v5 = vadd.f32 %v458_v0, %v457_v60  ;;  %v476_v0 = vsel %vm201_vm1, %v376_v50, 0.0  ;;  %v1007_v60 = vld [vmem:[%s625_s15 + $0x1c8] sm:$0xff]  ;;  %v385_v50 = vmul.f32 %v919_v52, %v919_v52 }
  0x60   : > { %v280_v18 = vadd.f32 %v279_v8, %v278_v11  ;;  %v297_v8 = vsel %vm201_vm1, %v935_v61, 0.0 }
  0x61   : > { %v461_v9 = vadd.f32 %v460_v3, %v459_v5  ;;  %v478_v3 = vsel %vm201_vm1, %v377_v57, 0.0  ;;  %v1015_v5 = vld [vmem:[%s625_s15 + $0x1d0] sm:$0xff]  ;;  %v492_v57 = vsel %vm201_vm1, %v384_v42, 0.0 }
  0x62   : > { %v282_v26 = vadd.f32 %v281_v15, %v280_v18  ;;  %v299_v15 = vsel %vm201_vm1, %v943_v1, 0.0 }
  0x63   : > { %v463_v10 = vadd.f32 %v462_v14, %v461_v9  ;;  %v480_v14 = vsel %vm201_vm1, %v378_v63, 0.0  ;;  %v1023_v9 = vld [vmem:[%s625_s15 + $0x1d8] sm:$0xff] }
  0x64   : > { %v284_v33 = vadd.f32 %v283_v23, %v282_v26  ;;  %v301_v23 = vsel %vm201_vm1, %v951_v7, 0.0  ;;  %v392_v7 = vmul.f32 %v975_v32, %v975_v32 }
  0x65   : > { %v465_v13 = vadd.f32 %v464_v21, %v463_v10  ;;  %v482_v21 = vsel %vm201_vm1, %v379_v2, 0.0  ;;  %v1031_v10 = vld [vmem:[%s625_s15 + $0x1e0] sm:$0xff] }
  0x66   : > { %v286_v41 = vadd.f32 %v285_v30, %v284_v33  ;;  %v303_v30 = vsel %vm201_vm1, %v959_v17, 0.0 }
  0x67   : > { %v467_v16 = vadd.f32 %v466_v29, %v465_v13  ;;  %v484_v29 = vsel %vm201_vm1, %v380_v12, 0.0  ;;  %v1039_v13 = vld [vmem:[%s625_s15 + $0x1e8] sm:$0xff] }
  0x68   : > { %v288_v48 = vadd.f32 %v287_v38, %v286_v41  ;;  %v305_v38 = vsel %vm201_vm1, %v967_v24, 0.0 }
  0x69   : > { %v469_v19 = vadd.f32 %v468_v36, %v467_v16  ;;  %v486_v36 = vsel %vm201_vm1, %v381_v20, 0.0 }
  0x6a   : > { %v290_v55 = vadd.f32 %v289_v45, %v288_v48  ;;  %v307_v45 = vsel %vm201_vm1, %v975_v32, 0.0  ;;  %v508_v32 = vsel %vm201_vm1, %v392_v7, 0.0 }
  0x6b   : > { %v471_v22 = vadd.f32 %v470_v44, %v469_v19  ;;  %v488_v44 = vsel %vm201_vm1, %v382_v27, 0.0  ;;  %v394_v27 = vmul.f32 %v991_v47, %v991_v47 }
  0x6c   : > { %v292_v62 = vadd.f32 %v291_v53, %v290_v55  ;;  %v309_v53 = vsel %vm201_vm1, %v983_v39, 0.0 }
  0x6d   : > { %v473_v25 = vadd.f32 %v472_v51, %v471_v22  ;;  %v490_v51 = vsel %vm201_vm1, %v383_v35, 0.0  ;;  %v512_v35 = vsel %vm201_vm1, %v394_v27, 0.0 }
  0x6e   : > { %v294_v6 = vadd.f32 %v293_v59, %v292_v62  ;;  %v311_v59 = vsel %vm201_vm1, %v991_v47, 0.0 }
  0x6f   : > { %v475_v28 = vadd.f32 %v474_v58, %v473_v25  ;;  %v387_v25 = vmul.f32 %v935_v61, %v935_v61  ;;  %v390_v61 = vmul.f32 %v959_v17, %v959_v17  ;;  %v200_v17 = vld [vmem:[%s1133_s1] sm:$0x1] }
  0x70   : > { %v296_v11 = vadd.f32 %v295_v4, %v294_v6  ;;  %v313_v4 = vsel %vm201_vm1, %v999_v54, 0.0 }
  0x71   : > { %v477_v31 = vadd.f32 %v476_v0, %v475_v28  ;;  %v388_v0 = vmul.f32 %v943_v1, %v943_v1  ;;  %v498_v2 = vsel %vm201_vm1, %v387_v25, 0.0  ;;  %v391_v1 = vmul.f32 %v967_v24, %v967_v24 }
  0x72   : > { %v298_v18 = vadd.f32 %v297_v8, %v296_v11  ;;  %v315_v8 = vsel %vm201_vm1, %v1007_v60, 0.0 }
  0x73   : > { %v479_v34 = vadd.f32 %v478_v3, %v477_v31  ;;  %v500_v31 = vsel %vm201_vm1, %v388_v0, 0.0  ;;  %v506_v24 = vsel %vm201_vm1, %v391_v1, 0.0 }
  0x74   : > { %v300_v26 = vadd.f32 %v299_v15, %v298_v18  ;;  %v317_v15 = vsel %vm201_vm1, %v1015_v5, 0.0 }
  0x75   : > { %v481_v37 = vadd.f32 %v480_v14, %v479_v34  ;;  %v502_v14 = vsel %vm201_vm1, %v389_v56, 0.0 }
  0x76   : > { %v302_v33 = vadd.f32 %v301_v23, %v300_v26  ;;  %v319_v23 = vsel %vm201_vm1, %v1023_v9, 0.0 }
  0x77   : > { %v483_v40 = vadd.f32 %v482_v21, %v481_v37 }
  0x78   : > { %v304_v41 = vadd.f32 %v303_v30, %v302_v33  ;;  %v321_v30 = vsel %vm201_vm1, %v1031_v10, 0.0 }
  0x79   : > { %v485_v16 = vadd.f32 %v484_v29, %v483_v40 }
  0x7a   : > { %v306_v48 = vadd.f32 %v305_v38, %v304_v41  ;;  %v323_v38 = vsel %vm201_vm1, %v1039_v13, 0.0 }
  0x7b   : > { %v487_v19 = vadd.f32 %v486_v36, %v485_v16  ;;  %v397_v36 = vmul.f32 %v1015_v5, %v1015_v5 }
  0x7c   : > { %v308_v55 = vadd.f32 %v307_v45, %v306_v48  ;;  %v325_v45 = vsel %vm201_vm1, %v1047_v43, 0.0  ;;  %v1055_v48 = vld [vmem:[%s625_s15 + $0x1f8] sm:$0xff] }
  0x7d   : > { %v489_v22 = vadd.f32 %v488_v44, %v487_v19  ;;  %v399_v44 = vmul.f32 %v1031_v10, %v1031_v10  ;;  %v400_v19 = vmul.f32 %v1039_v13, %v1039_v13 }
  0x7e   : > { %v310_v62 = vadd.f32 %v309_v53, %v308_v55  ;;  %v327_v53 = vsel %vm201_vm1, %v1055_v48, 0.0 }
  0x7f   : > { %v491_v58 = vadd.f32 %v490_v51, %v489_v22  ;;  %v524_v10 = vsel %vm201_vm1, %v400_v19, 0.0 }
  0x80   : > { %v312_v6 = vadd.f32 %v311_v59, %v310_v62  ;;  %v494_v62 = vsel %vm201_vm1, %v385_v50, 0.0  ;;  %v401_v50 = vmul.f32 %v1047_v43, %v1047_v43 }
  0x81   : > { %v493_v52 = vadd.f32 %v492_v57, %v491_v58 }
  0x82   : > { %v314_v11 = vadd.f32 %v313_v4, %v312_v6  ;;  %v496_v4 = vsel %vm201_vm1, %v386_v49, 0.0 }
  0x83   : > { %v495_v28 = vadd.f32 %v494_v62, %v493_v52 }
  0x84   : > { %v316_v18 = vadd.f32 %v315_v8, %v314_v11 }
  0x85   : > { %v497_v3 = vadd.f32 %v496_v4, %v495_v28 }
  0x86   : > { %v318_v26 = vadd.f32 %v317_v15, %v316_v18  ;;  %v504_v18 = vsel %vm201_vm1, %v390_v61, 0.0 }
  0x87   : > { %v499_v11 = vadd.f32 %v498_v2, %v497_v3 }
  0x88   : > { %v320_v33 = vadd.f32 %v319_v23, %v318_v26  ;;  %v393_v23 = vmul.f32 %v983_v39, %v983_v39 }
  0x89   : > { %v501_v15 = vadd.f32 %v500_v31, %v499_v11 }
  0x8a   : > { %v322_v41 = vadd.f32 %v321_v30, %v320_v33  ;;  %v395_v30 = vmul.f32 %v999_v54, %v999_v54  ;;  %v510_v39 = vsel %vm201_vm1, %v393_v23, 0.0  ;;  %v396_v33 = vmul.f32 %v1007_v60, %v1007_v60 }
  0x8b   : > { %v503_v20 = vadd.f32 %v502_v14, %v501_v15  ;;  %v518_v60 = vsel %vm201_vm1, %v397_v36, 0.0 }
  0x8c   : > { %v324_v46 = vadd.f32 %v323_v38, %v322_v41  ;;  %v514_v38 = vsel %vm201_vm1, %v395_v30, 0.0  ;;  %v398_v41 = vmul.f32 %v1023_v9, %v1023_v9  ;;  %v516_v54 = vsel %vm201_vm1, %v396_v33, 0.0 }
  0x8d   : > { %v505_v37 = vadd.f32 %v504_v18, %v503_v20  ;;  %v522_v9 = vsel %vm201_vm1, %v399_v44, 0.0 }
  0x8e   : > { %v326_v55 = vadd.f32 %v325_v45, %v324_v46  ;;  %v520_v5 = vsel %vm201_vm1, %v398_v41, 0.0 }
  0x8f   : > { %v507_v29 = vadd.f32 %v506_v24, %v505_v37 }
  0x90   : > { %v328_v59 = vadd.f32 %v327_v53, %v326_v55  ;;  %v402_v53 = vmul.f32 %v1055_v48, %v1055_v48  ;;  %v526_v55 = vsel %vm201_vm1, %v401_v50, 0.0 }
  0x91   : > { %v509_v40 = vadd.f32 %v508_v32, %v507_v29 }
  0x92   : > { %v329_v63 = vrot.slane %v328_v59, 4  ;;  %v528_v13 = vsel %vm201_vm1, %v402_v53, 0.0 }
  0x93   : > { %v511_v47 = vadd.f32 %v510_v39, %v509_v40 }
  0x94   : > { %v330_v6 = vadd.f32 %v329_v63, %v328_v59  ;;  %v338_v63 = vld [vmem:[%s1134_s2] sm:$0x1] }
  0x95   : > { %v513_v16 = vadd.f32 %v512_v35, %v511_v47 }
  0x96   : > { %v331_v8 = vrot.slane %v330_v6, 2 }
  0x97   : > { %v515_v42 = vadd.f32 %v514_v38, %v513_v16 }
  0x98   : > { %v332_v12 = vadd.f32 %v331_v8, %v330_v6 }
  0x99   : > { %v517_v45 = vadd.f32 %v516_v54, %v515_v42 }
  0x9a   : > { %v333_v34 = vrot.slane %v332_v12, 1 }
  0x9b   : > { %v519_v46 = vadd.f32 %v518_v60, %v517_v45 }
  0x9c   : > { %v334_v21 = vadd.f32 %v333_v34, %v332_v12 }
  0x9d   : > { %v521_v51 = vadd.f32 %v520_v5, %v519_v46 }
  0x9e   : > { %v335_v26 = vadd.f32 %v334_v21, %v200_v17 }
  0x9f   : > { %v523_v22 = vadd.f32 %v522_v9, %v521_v51 }
  0xa0   : > { %337 = vst.msk [vmem:[%s1133_s1] sm:$0x1] %vm336_vm2, %v335_v26 }
  0xa1   : > { %v525_v49 = vadd.f32 %v524_v10, %v523_v22 }
  0xa3   : > { %v527_v57 = vadd.f32 %v526_v55, %v525_v49 }
  0xa5   : > { %v529_v58 = vadd.f32 %v528_v13, %v527_v57 }
  0xa7   : > { %v530_v59 = vrot.slane %v529_v58, 4 }
  0xa9   : > { %v531_v25 = vadd.f32 %v530_v59, %v529_v58 }
  0xab   : > { %v532_v62 = vrot.slane %v531_v25, 2 }
  0xad   : > { %v533_v43 = vadd.f32 %v532_v62, %v531_v25 }
  0xaf   : > { %v534_v52 = vrot.slane %v533_v43, 1 }
  0xb1   : > { %v535_v48 = vadd.f32 %v534_v52, %v533_v43 }
  0xb3   : > { %v536_v0 = vadd.f32 %v535_v48, %v338_v63 }
  0xb5   : > { %537 = vst.msk [vmem:[%s1134_s2] sm:$0x1] %vm336_vm2, %v536_v0 }
  0xb6 PF: > { %s13_s9 = sadd.s32 1, %s596_s9  }
  0xb7   : > { %p10_p5 = scmp.ge.s32.totalorder %s13_s9, 6  }
  0xb9   :  { %12 = sbr.rel (!%p10_p5) target bundleno = 1 (0x1), region = 62 }

// kernel: generator_forward.18
= control target key start
LH: loop header
LB: loop body
LE: loop exit
PB: predicated region body
PF: predicated region fallthrough
CT: control target
= control target key end

     0   :  { %s1208_s15 = smov 0   ;;  %s1601_s0 = inlined_call_operand.vmem [shape: f32[2048,16], index: 0, kind: input, shape index: {}]   ;;  %s1602_s1 = inlined_call_operand.vmem [shape: f32[1,16], index: 1, kind: input, shape index: {}]   ;;  %s1603_s2 = inlined_call_operand.vmem [shape: f32[1,16], index: 2, kind: input, shape index: {}]   ;;  %s1604_s3 = inlined_call_operand.vmem [shape: bf16[16,48], index: 3, kind: input, shape index: {}]   ;;  %s1605_s4 = inlined_call_operand.vmem [shape: f32[2048,48], index: 4, kind: output, shape index: {}]  }
   0x1 LB: > { %s1019_s16 = sadd.s32 4294967295, %s1181_s15   ;;  %p1023_p0 = scmp.ge.s32.totalorder %s1181_s15, 1  ;;  %s1181_s15 = sphi %s1208_s15, %s14_s15  }
   0x2   : > { %p163_p1 = scmp.lt.s32.totalorder %s1181_s15, 5 }
   0x4   : > { %p164_p2 = pnand %p1023_p0, %p163_p1 }
   0x5   : > { %s1024_s19 = sshll.u32 (!%p164_p2), %s1019_s16, 6 }
   0x6   : > { %167 = sbr.rel (%p164_p2) target bundleno = 282 (0x11a), region = 36  ;;  %p190_p3 = scmp.lt.s32.totalorder (!%p164_p2), %s1024_s19, 255 }
   0xb   : > { %v1174_v0 = vld [vmem:[%s1604_s3] sm:$0xff]   ;;  %s1607_s19 = smov (!%p190_p3, %s1024_s19), 255  ;;  %vm512_vm0 = vcmask 130048   ;;  %vm898_vm1 = vcmask 392192  }
   0xc   : > { %1098 = vmatprep.subr.bf16.mxu0 %v1174_v0  ;;  %1164 = vmatprep.subr.bf16.mxu1 %v1174_v0  ;;  %s1025_s20 = sshll.u32 %s1607_s19, 3  ;;  %v1225_v1 = vld [vmem:[%s1602_s1] ss:$0 sm:$0xff] }
   0xd   : > { %1099 = vmatpush3.bf16.msra.mxu0 %v1174_v0  ;;  %1165 = vmatpush3.bf16.msra.mxu1 %v1174_v0  ;;  %s1232_s25 = scalar_lea.vmem %s1601_s0, %s1025_s20  ;;  %v1237_v2 = vld [vmem:[%s1603_s2] ss:$0 sm:$0xff]  ;;  %s1468_s30 = scalar_lea.vmem %s1605_s4, %s1025_s20 }
   0xe   : > { %v202_v3 = vld [vmem:[%s1232_s25] sm:$0xff]  ;;  %v203_v4 = vld [vmem:[%s1232_s25 + $0x8] sm:$0xff]  ;;  %v204_v10 = vld [vmem:[%s1232_s25 + $0x10] sm:$0xff] }
   0xf   : > { %v234_v5 = vld [vmem:[%s1232_s25 + $0x100] sm:$0xff]  ;;  %v273_v6 = vmul.f32 %v1225_v1, %v202_v3  ;;  %v274_v7 = vmul.f32 %v1225_v1, %v203_v4  ;;  %v235_v8 = vld [vmem:[%s1232_s25 + $0x108] sm:$0xff]  ;;  %v205_v11 = vld [vmem:[%s1232_s25 + $0x18] sm:$0xff]  ;;  %v275_v13 = vmul.f32 %v1225_v1, %v204_v10 }
  0x10   : > { %v305_v9 = vmul.f32 %v1225_v1, %v234_v5  ;;  %v306_v12 = vmul.f32 %v1225_v1, %v235_v8  ;;  %v276_v14 = vmul.f32 %v1225_v1, %v205_v11  ;;  %v236_v15 = vld [vmem:[%s1232_s25 + $0x110] sm:$0xff]  ;;  %v237_v16 = vld [vmem:[%s1232_s25 + $0x118] sm:$0xff]  ;;  %v206_v25 = vld [vmem:[%s1232_s25 + $0x20] sm:$0xff] }
  0x11   : > { %v344_v17 = vadd.f32 %v1237_v2, %v273_v6  ;;  %v345_v18 = vadd.f32 %v1237_v2, %v274_v7  ;;  %v307_v20 = vmul.f32 %v1225_v1, %v236_v15  ;;  %v346_v22 = vadd.f32 %v1237_v2, %v275_v13  ;;  %v207_v26 = vld [vmem:[%s1232_s25 + $0x28] sm:$0xff]  ;;  %v238_v31 = vld [vmem:[%s1232_s25 + $0x120] sm:$0xff]  ;;  %v208_v37 = vld [vmem:[%s1232_s25 + $0x30] sm:$0xff] }
  0x12   : > { %v376_v19 = vadd.f32 %v1237_v2, %v305_v9  ;;  %v377_v21 = vadd.f32 %v1237_v2, %v306_v12  ;;  %v347_v23 = vadd.f32 %v1237_v2, %v276_v14  ;;  %v308_v24 = vmul.f32 %v1225_v1, %v237_v16  ;;  %v239_v36 = vld [vmem:[%s1232_s25 + $0x128] sm:$0xff]  ;;  %v209_v42 = vld [vmem:[%s1232_s25 + $0x38] sm:$0xff]  ;;  %v240_v51 = vld [vmem:[%s1232_s25 + $0x130] sm:$0xff] }
  0x13   : > { %v408_v27 = vmax.f32 %v344_v17, 0.0  ;;  %v409_v28 = vmax.f32 %v345_v18, 0.0  ;;  %v378_v30 = vadd.f32 %v1237_v2, %v307_v20  ;;  %v410_v33 = vmax.f32 %v346_v22, 0.0  ;;  %v241_v52 = vld [vmem:[%s1232_s25 + $0x138] sm:$0xff]  ;;  %v210_v56 = vld [vmem:[%s1232_s25 + $0x40] sm:$0xff]  ;;  %v211_v61 = vld [vmem:[%s1232_s25 + $0x48] sm:$0xff] }
  0x14   : > { %v440_v29 = vmax.f32 %v376_v19, 0.0  ;;  %v441_v32 = vmax.f32 %v377_v21, 0.0  ;;  %v411_v34 = vmax.f32 %v347_v23, 0.0  ;;  %v379_v35 = vadd.f32 %v1237_v2, %v308_v24  ;;  %v242_v4 = vld [vmem:[%s1232_s25 + $0x140] sm:$0xff]  ;;  %v243_v5 = vld [vmem:[%s1232_s25 + $0x148] sm:$0xff]  ;;  %v212_v14 = vld [vmem:[%s1232_s25 + $0x50] sm:$0xff] }
  0x15   : > { %v472_v38 = vpack.c.bf16 %v409_v28, %v408_v27  ;;  %v442_v39 = vmax.f32 %v378_v30, 0.0  ;;  %v277_v40 = vmul.f32 %v1225_v1, %v206_v25  ;;  %v278_v41 = vmul.f32 %v1225_v1, %v207_v26  ;;  %v213_v19 = vld [vmem:[%s1232_s25 + $0x58] sm:$0xff]  ;;  %v244_v20 = vld [vmem:[%s1232_s25 + $0x150] sm:$0xff]  ;;  %v214_v30 = vld [vmem:[%s1232_s25 + $0x60] sm:$0xff] }
  0x16   : > { %v488_v43 = vpack.c.bf16 %v441_v32, %v440_v29  ;;  %v473_v44 = vpack.c.bf16 %v411_v34, %v410_v33  ;;  %v443_v45 = vmax.f32 %v379_v35, 0.0  ;;  %v309_v46 = vmul.f32 %v1225_v1, %v238_v31  ;;  %v245_v25 = vld [vmem:[%s1232_s25 + $0x158] sm:$0xff]  ;;  %v215_v35 = vld [vmem:[%s1232_s25 + $0x68] sm:$0xff] }
  0x17   : > { %1100 = vmatprep.mubr.msk.bf16.mxu0 %vm512_vm0, %v472_v38  ;;  %v348_v47 = vadd.f32 %v1237_v2, %v277_v40  ;;  %v349_v48 = vadd.f32 %v1237_v2, %v278_v41  ;;  %v310_v49 = vmul.f32 %v1225_v1, %v239_v36  ;;  %v279_v50 = vmul.f32 %v1225_v1, %v208_v37  ;;  %v246_v40 = vld [vmem:[%s1232_s25 + $0x160] sm:$0xff] }
  0x18   : > { %1132 = vmatprep.mubr.msk.bf16.mxu1 %vm512_vm0, %v488_v43  ;;  %1101 = vmatmul.mubr.msk.bf16.vlgmr.msra.gmra.mxu0 %vm512_vm0, %v473_v44  ;;  %v489_v53 = vpack.c.bf16 %v443_v45, %v442_v39  ;;  %v380_v54 = vadd.f32 %v1237_v2, %v309_v46  ;;  %v280_v55 = vmul.f32 %v1225_v1, %v209_v42  ;;  %v247_v45 = vld [vmem:[%s1232_s25 + $0x168] sm:$0xff]  ;;  %v216_v46 = vld [vmem:[%s1232_s25 + $0x70] sm:$0xff] }
  0x19   : > { %v412_v57 = vmax.f32 %v348_v47, 0.0  ;;  %v413_v58 = vmax.f32 %v349_v48, 0.0  ;;  %v381_v59 = vadd.f32 %v1237_v2, %v310_v49  ;;  %v350_v60 = vadd.f32 %v1237_v2, %v279_v50 }
  0x1a   : > { %1133 = vmatmul.mubr.msk.bf16.vlgmr.msra.gmra.mxu1 %vm512_vm0, %v489_v53  ;;  %v444_v62 = vmax.f32 %v380_v54, 0.0  ;;  %v351_v63 = vadd.f32 %v1237_v2, %v280_v55  ;;  %v311_v0 = vmul.f32 %v1225_v1, %v240_v51  ;;  %v312_v3 = vmul.f32 %v1225_v1, %v241_v52  ;;  %v217_v51 = vld [vmem:[%s1232_s25 + $0x78] sm:$0xff] }
  0x1b   : > { %v474_v6 = vpack.c.bf16 %v413_v58, %v412_v57  ;;  %v445_v7 = vmax.f32 %v381_v59, 0.0  ;;  %v414_v8 = vmax.f32 %v350_v60, 0.0  ;;  %v281_v9 = vmul.f32 %v1225_v1, %v210_v56  ;;  %v248_v60 = vld [vmem:[%s1232_s25 + $0x170] sm:$0xff] }
  0x1c   : > { %v415_v10 = vmax.f32 %v351_v63, 0.0  ;;  %v382_v11 = vadd.f32 %v1237_v2, %v311_v0  ;;  %v383_v12 = vadd.f32 %v1237_v2, %v312_v3  ;;  %v282_v13 = vmul.f32 %v1225_v1, %v211_v61  ;;  %v249_v61 = vld [vmem:[%s1232_s25 + $0x178] sm:$0xff] }
  0x1d   : > { %1104 = vmatprep.mubr.msk.bf16.mxu0 %vm512_vm0, %v474_v6  ;;  %v490_v15 = vpack.c.bf16 %v445_v7, %v444_v62  ;;  %v352_v16 = vadd.f32 %v1237_v2, %v281_v9  ;;  %v313_v17 = vmul.f32 %v1225_v1, %v242_v4  ;;  %v314_v18 = vmul.f32 %v1225_v1, %v243_v5  ;;  %v218_v4 = vld [vmem:[%s1232_s25 + $0x80] sm:$0xff]  ;;  %v219_v9 = vld [vmem:[%s1232_s25 + $0x88] sm:$0xff] }
  0x1e   : > { %v475_v21 = vpack.c.bf16 %v415_v10, %v414_v8  ;;  %v446_v22 = vmax.f32 %v382_v11, 0.0  ;;  %v447_v23 = vmax.f32 %v383_v12, 0.0  ;;  %v353_v24 = vadd.f32 %v1237_v2, %v282_v13 }
  0x1f   : > { %1136 = vmatprep.mubr.msk.bf16.mxu1 %vm512_vm0, %v490_v15  ;;  %v416_v26 = vmax.f32 %v352_v16, 0.0  ;;  %v384_v27 = vadd.f32 %v1237_v2, %v313_v17  ;;  %v385_v28 = vadd.f32 %v1237_v2, %v314_v18  ;;  %v283_v29 = vmul.f32 %v1225_v1, %v212_v14  ;;  %v250_v14 = vld [vmem:[%s1232_s25 + $0x180] sm:$0xff]  ;;  %v251_v15 = vld [vmem:[%s1232_s25 + $0x188] sm:$0xff] }
  0x20   : > { %1105 = vmatmul.mubr.msk.bf16.gmra.mxu0 %vm512_vm0, %v475_v21  ;;  %v491_v31 = vpack.c.bf16 %v447_v23, %v446_v22  ;;  %v417_v32 = vmax.f32 %v353_v24, 0.0  ;;  %v284_v33 = vmul.f32 %v1225_v1, %v213_v19  ;;  %v315_v34 = vmul.f32 %v1225_v1, %v244_v20  ;;  %v220_v24 = vld [vmem:[%s1232_s25 + $0x90] sm:$0xff] }
  0x21   : > { %v448_v36 = vmax.f32 %v384_v27, 0.0  ;;  %v449_v37 = vmax.f32 %v385_v28, 0.0  ;;  %v354_v38 = vadd.f32 %v1237_v2, %v283_v29  ;;  %v316_v39 = vmul.f32 %v1225_v1, %v245_v25  ;;  %v221_v29 = vld [vmem:[%s1232_s25 + $0x98] sm:$0xff] }
  0x22   : > { %1137 = vmatmul.mubr.msk.bf16.gmra.mxu1 %vm512_vm0, %v491_v31  ;;  %v476_v41 = vpack.c.bf16 %v417_v32, %v416_v26  ;;  %v355_v42 = vadd.f32 %v1237_v2, %v284_v33  ;;  %v386_v43 = vadd.f32 %v1237_v2, %v315_v34  ;;  %v285_v44 = vmul.f32 %v1225_v1, %v214_v30  ;;  %v252_v30 = vld [vmem:[%s1232_s25 + $0x190] sm:$0xff] }
  0x23   : > { %v492_v47 = vpack.c.bf16 %v449_v37, %v448_v36  ;;  %v418_v48 = vmax.f32 %v354_v38, 0.0  ;;  %v387_v49 = vadd.f32 %v1237_v2, %v316_v39  ;;  %v286_v50 = vmul.f32 %v1225_v1, %v215_v35  ;;  %v253_v35 = vld [vmem:[%s1232_s25 + $0x198] sm:$0xff] }
  0x24   : > { %1108 = vmatprep.mubr.msk.bf16.mxu0 %vm512_vm0, %v476_v41  ;;  %v419_v52 = vmax.f32 %v355_v42, 0.0  ;;  %v450_v53 = vmax.f32 %v386_v43, 0.0  ;;  %v356_v54 = vadd.f32 %v1237_v2, %v285_v44  ;;  %v317_v55 = vmul.f32 %v1225_v1, %v246_v40  ;;  %v222_v40 = vld [vmem:[%s1232_s25 + $0xa0] sm:$0xff] }
  0x25   : > { %1140 = vmatprep.mubr.msk.bf16.mxu1 %vm512_vm0, %v492_v47  ;;  %v451_v56 = vmax.f32 %v387_v49, 0.0  ;;  %v357_v57 = vadd.f32 %v1237_v2, %v286_v50  ;;  %v318_v58 = vmul.f32 %v1225_v1, %v247_v45  ;;  %v287_v59 = vmul.f32 %v1225_v1, %v216_v46  ;;  %v223_v45 = vld [vmem:[%s1232_s25 + $0xa8] sm:$0xff]  ;;  %v254_v50 = vld [vmem:[%s1232_s25 + $0x1a0] sm:$0xff] }
  0x26   : > { %v477_v62 = vpack.c.bf16 %v419_v52, %v418_v48  ;;  %v420_v63 = vmax.f32 %v356_v54, 0.0  ;;  %v388_v0 = vadd.f32 %v1237_v2, %v317_v55  ;;  %v288_v3 = vmul.f32 %v1225_v1, %v217_v51  ;;  %v255_v55 = vld [vmem:[%s1232_s25 + $0x1a8] sm:$0xff] }
  0x27   : > { %v493_v5 = vpack.c.bf16 %v451_v56, %v450_v53  ;;  %v421_v6 = vmax.f32 %v357_v57, 0.0  ;;  %v389_v7 = vadd.f32 %v1237_v2, %v318_v58  ;;  %v358_v8 = vadd.f32 %v1237_v2, %v287_v59  ;;  %v224_v56 = vld [vmem:[%s1232_s25 + $0xb0] sm:$0xff] }
  0x28   : > { %1109 = vmatmul.mubr.msk.bf16.gmra.mxu0 %vm512_vm0, %v477_v62  ;;  %v452_v10 = vmax.f32 %v388_v0, 0.0  ;;  %v359_v11 = vadd.f32 %v1237_v2, %v288_v3  ;;  %v319_v12 = vmul.f32 %v1225_v1, %v248_v60  ;;  %v320_v13 = vmul.f32 %v1225_v1, %v249_v61  ;;  %v225_v61 = vld [vmem:[%s1232_s25 + $0xb8] sm:$0xff] }
  0x29   : > { %v478_v16 = vpack.c.bf16 %v421_v6, %v420_v63  ;;  %v453_v17 = vmax.f32 %v389_v7, 0.0  ;;  %v422_v18 = vmax.f32 %v358_v8, 0.0  ;;  %v289_v19 = vmul.f32 %v1225_v1, %v218_v4  ;;  %v256_v8 = vld [vmem:[%s1232_s25 + $0x1b0] sm:$0xff] }
  0x2a   : > { %1141 = vmatmul.mubr.msk.bf16.gmra.mxu1 %vm512_vm0, %v493_v5  ;;  %v423_v20 = vmax.f32 %v359_v11, 0.0  ;;  %v390_v21 = vadd.f32 %v1237_v2, %v319_v12  ;;  %v391_v22 = vadd.f32 %v1237_v2, %v320_v13  ;;  %v290_v23 = vmul.f32 %v1225_v1, %v219_v9  ;;  %v257_v9 = vld [vmem:[%s1232_s25 + $0x1b8] sm:$0xff] }
  0x2b   : > { %1112 = vmatprep.mubr.msk.bf16.mxu0 %vm512_vm0, %v478_v16  ;;  %v494_v25 = vpack.c.bf16 %v453_v17, %v452_v10  ;;  %v360_v26 = vadd.f32 %v1237_v2, %v289_v19  ;;  %v321_v27 = vmul.f32 %v1225_v1, %v250_v14  ;;  %v322_v28 = vmul.f32 %v1225_v1, %v251_v15  ;;  %v226_v14 = vld [vmem:[%s1232_s25 + $0xc0] sm:$0xff]  ;;  %v227_v19 = vld [vmem:[%s1232_s25 + $0xc8] sm:$0xff] }
  0x2c   : > { %v479_v31 = vpack.c.bf16 %v423_v20, %v422_v18  ;;  %v454_v32 = vmax.f32 %v390_v21, 0.0  ;;  %v455_v33 = vmax.f32 %v391_v22, 0.0  ;;  %v361_v34 = vadd.f32 %v1237_v2, %v290_v23 }
  0x2d   : > { %1144 = vmatprep.mubr.msk.bf16.mxu1 %vm512_vm0, %v494_v25  ;;  %v424_v36 = vmax.f32 %v360_v26, 0.0  ;;  %v392_v37 = vadd.f32 %v1237_v2, %v321_v27  ;;  %v393_v38 = vadd.f32 %v1237_v2, %v322_v28  ;;  %v291_v39 = vmul.f32 %v1225_v1, %v220_v24  ;;  %v258_v24 = vld [vmem:[%s1232_s25 + $0x1c0] sm:$0xff]  ;;  %v259_v25 = vld [vmem:[%s1232_s25 + $0x1c8] sm:$0xff] }
  0x2e   : > { %v495_v41 = vpack.c.bf16 %v455_v33, %v454_v32  ;;  %v425_v42 = vmax.f32 %v361_v34, 0.0  ;;  %v292_v43 = vmul.f32 %v1225_v1, %v221_v29  ;;  %v323_v44 = vmul.f32 %v1225_v1, %v252_v30  ;;  %v228_v34 = vld [vmem:[%s1232_s25 + $0xd0] sm:$0xff] }
  0x2f   : > { %v456_v46 = vmax.f32 %v392_v37, 0.0  ;;  %v457_v47 = vmax.f32 %v393_v38, 0.0  ;;  %v362_v48 = vadd.f32 %v1237_v2, %v291_v39  ;;  %v324_v49 = vmul.f32 %v1225_v1, %v253_v35  ;;  %v229_v39 = vld [vmem:[%s1232_s25 + $0xd8] sm:$0xff] }
  0x30   : > { %1113 = vmatmul.mubr.msk.bf16.gmra.mxu0 %vm512_vm0, %v479_v31  ;;  %v480_v51 = vpack.c.bf16 %v425_v42, %v424_v36  ;;  %v363_v52 = vadd.f32 %v1237_v2, %v292_v43  ;;  %v394_v53 = vadd.f32 %v1237_v2, %v323_v44  ;;  %v293_v54 = vmul.f32 %v1225_v1, %v222_v40  ;;  %v260_v40 = vld [vmem:[%s1232_s25 + $0x1d0] sm:$0xff] }
  0x31   : > { %v496_v57 = vpack.c.bf16 %v457_v47, %v456_v46  ;;  %v426_v58 = vmax.f32 %v362_v48, 0.0  ;;  %v395_v59 = vadd.f32 %v1237_v2, %v324_v49  ;;  %v294_v60 = vmul.f32 %v1225_v1, %v223_v45  ;;  %v261_v45 = vld [vmem:[%s1232_s25 + $0x1d8] sm:$0xff] }
  0x32   : > { %1145 = vmatmul.mubr.msk.bf16.gmra.mxu1 %vm512_vm0, %v495_v41  ;;  %1116 = vmatprep.mubr.msk.bf16.mxu0 %vm512_vm0, %v480_v51  ;;  %v427_v62 = vmax.f32 %v363_v52, 0.0  ;;  %v458_v63 = vmax.f32 %v394_v53, 0.0  ;;  %v364_v0 = vadd.f32 %v1237_v2, %v293_v54  ;;  %v325_v3 = vmul.f32 %v1225_v1, %v254_v50  ;;  %v230_v50 = vld [vmem:[%s1232_s25 + $0xe0] sm:$0xff] }
  0x33   : > { %1148 = vmatprep.mubr.msk.bf16.mxu1 %vm512_vm0, %v496_v57  ;;  %v459_v4 = vmax.f32 %v395_v59, 0.0  ;;  %v365_v5 = vadd.f32 %v1237_v2, %v294_v60  ;;  %v326_v6 = vmul.f32 %v1225_v1, %v255_v55  ;;  %v295_v7 = vmul.f32 %v1225_v1, %v224_v56  ;;  %v231_v55 = vld [vmem:[%s1232_s25 + $0xe8] sm:$0xff]  ;;  %v262_v60 = vld [vmem:[%s1232_s25 + $0x1e0] sm:$0xff] }
  0x34   : > { %v481_v10 = vpack.c.bf16 %v427_v62, %v426_v58  ;;  %v428_v11 = vmax.f32 %v364_v0, 0.0  ;;  %v396_v12 = vadd.f32 %v1237_v2, %v325_v3  ;;  %v296_v13 = vmul.f32 %v1225_v1, %v225_v61  ;;  %v263_v3 = vld [vmem:[%s1232_s25 + $0x1e8] sm:$0xff] }
  0x35   : > { %v497_v15 = vpack.c.bf16 %v459_v4, %v458_v63  ;;  %v429_v16 = vmax.f32 %v365_v5, 0.0  ;;  %v397_v17 = vadd.f32 %v1237_v2, %v326_v6  ;;  %v366_v18 = vadd.f32 %v1237_v2, %v295_v7  ;;  %v232_v4 = vld [vmem:[%s1232_s25 + $0xf0] sm:$0xff] }
  0x36   : > { %v460_v20 = vmax.f32 %v396_v12, 0.0  ;;  %v367_v21 = vadd.f32 %v1237_v2, %v296_v13  ;;  %v327_v22 = vmul.f32 %v1225_v1, %v256_v8  ;;  %v328_v23 = vmul.f32 %v1225_v1, %v257_v9  ;;  %v233_v9 = vld [vmem:[%s1232_s25 + $0xf8] sm:$0xff] }
  0x37   : > { %v482_v26 = vpack.c.bf16 %v429_v16, %v428_v11  ;;  %v461_v27 = vmax.f32 %v397_v17, 0.0  ;;  %v430_v28 = vmax.f32 %v366_v18, 0.0  ;;  %v297_v29 = vmul.f32 %v1225_v1, %v226_v14  ;;  %v264_v17 = vld [vmem:[%s1232_s25 + $0x1f0] sm:$0xff]  ;;  %v265_v18 = vld [vmem:[%s1232_s25 + $0x1f8] sm:$0xff] }
  0x38   : > { %1117 = vmatmul.mubr.msk.bf16.gmra.mxu0 %vm512_vm0, %v481_v10  ;;  %v431_v30 = vmax.f32 %v367_v21, 0.0  ;;  %v398_v31 = vadd.f32 %v1237_v2, %v327_v22  ;;  %v399_v32 = vadd.f32 %v1237_v2, %v328_v23  ;;  %v298_v33 = vmul.f32 %v1225_v1, %v227_v19 }
  0x39   : > { %1120 = vmatprep.mubr.msk.bf16.mxu0 %vm512_vm0, %v482_v26  ;;  %v498_v35 = vpack.c.bf16 %v461_v27, %v460_v20  ;;  %v368_v36 = vadd.f32 %v1237_v2, %v297_v29  ;;  %v329_v37 = vmul.f32 %v1225_v1, %v258_v24  ;;  %v330_v38 = vmul.f32 %v1225_v1, %v259_v25 }
  0x3a   : > { %1149 = vmatmul.mubr.msk.bf16.gmra.mxu1 %vm512_vm0, %v497_v15  ;;  %v483_v41 = vpack.c.bf16 %v431_v30, %v430_v28  ;;  %v462_v42 = vmax.f32 %v398_v31, 0.0  ;;  %v463_v43 = vmax.f32 %v399_v32, 0.0  ;;  %v369_v44 = vadd.f32 %v1237_v2, %v298_v33 }
  0x3b   : > { %1152 = vmatprep.mubr.msk.bf16.mxu1 %vm512_vm0, %v498_v35  ;;  %v432_v46 = vmax.f32 %v368_v36, 0.0  ;;  %v400_v47 = vadd.f32 %v1237_v2, %v329_v37  ;;  %v401_v48 = vadd.f32 %v1237_v2, %v330_v38  ;;  %v299_v49 = vmul.f32 %v1225_v1, %v228_v34 }
  0x3c   : > { %v499_v51 = vpack.c.bf16 %v463_v43, %v462_v42  ;;  %v433_v52 = vmax.f32 %v369_v44, 0.0  ;;  %v300_v53 = vmul.f32 %v1225_v1, %v229_v39  ;;  %v331_v54 = vmul.f32 %v1225_v1, %v260_v40 }
  0x3d   : > { %v464_v56 = vmax.f32 %v400_v47, 0.0  ;;  %v465_v57 = vmax.f32 %v401_v48, 0.0  ;;  %v370_v58 = vadd.f32 %v1237_v2, %v299_v49  ;;  %v332_v59 = vmul.f32 %v1225_v1, %v261_v45 }
  0x3e   : > { %v484_v61 = vpack.c.bf16 %v433_v52, %v432_v46  ;;  %v371_v62 = vadd.f32 %v1237_v2, %v300_v53  ;;  %v402_v63 = vadd.f32 %v1237_v2, %v331_v54  ;;  %v301_v0 = vmul.f32 %v1225_v1, %v230_v50 }
  0x3f   : > { %v500_v5 = vpack.c.bf16 %v465_v57, %v464_v56  ;;  %v434_v6 = vmax.f32 %v370_v58, 0.0  ;;  %v403_v7 = vadd.f32 %v1237_v2, %v332_v59  ;;  %v302_v8 = vmul.f32 %v1225_v1, %v231_v55 }
  0x40   : > { %1121 = vmatmul.mubr.msk.bf16.gmra.mxu0 %vm512_vm0, %v483_v41  ;;  %v435_v10 = vmax.f32 %v371_v62, 0.0  ;;  %v372_v11 = vadd.f32 %v1237_v2, %v301_v0  ;;  %v333_v12 = vmul.f32 %v1225_v1, %v262_v60  ;;  %v466_v13 = vmax.f32 %v402_v63, 0.0 }
  0x41   : > { %1124 = vmatprep.mubr.msk.bf16.mxu0 %vm512_vm0, %v484_v61  ;;  %v373_v14 = vadd.f32 %v1237_v2, %v302_v8  ;;  %v334_v15 = vmul.f32 %v1225_v1, %v263_v3  ;;  %v303_v16 = vmul.f32 %v1225_v1, %v232_v4  ;;  %v467_v19 = vmax.f32 %v403_v7, 0.0 }
  0x42   : > { %1153 = vmatmul.mubr.msk.bf16.gmra.mxu1 %vm512_vm0, %v499_v51  ;;  %v436_v20 = vmax.f32 %v372_v11, 0.0  ;;  %v404_v21 = vadd.f32 %v1237_v2, %v333_v12  ;;  %v304_v22 = vmul.f32 %v1225_v1, %v233_v9  ;;  %v485_v23 = vpack.c.bf16 %v435_v10, %v434_v6 }
  0x43   : > { %1156 = vmatprep.mubr.msk.bf16.mxu1 %vm512_vm0, %v500_v5  ;;  %v437_v24 = vmax.f32 %v373_v14, 0.0  ;;  %v405_v25 = vadd.f32 %v1237_v2, %v334_v15  ;;  %v374_v26 = vadd.f32 %v1237_v2, %v303_v16  ;;  %v335_v29 = vmul.f32 %v1225_v1, %v264_v17 }
  0x44   : > { %v468_v27 = vmax.f32 %v404_v21, 0.0  ;;  %v375_v28 = vadd.f32 %v1237_v2, %v304_v22  ;;  %v336_v30 = vmul.f32 %v1225_v1, %v265_v18  ;;  %v501_v33 = vpack.c.bf16 %v467_v19, %v466_v13 }
  0x45   : > { %v486_v31 = vpack.c.bf16 %v437_v24, %v436_v20  ;;  %v469_v32 = vmax.f32 %v405_v25, 0.0  ;;  %v406_v34 = vadd.f32 %v1237_v2, %v335_v29  ;;  %v438_v37 = vmax.f32 %v374_v26, 0.0 }
  0x46   : > { %v407_v35 = vadd.f32 %v1237_v2, %v336_v30  ;;  %v439_v38 = vmax.f32 %v375_v28, 0.0 }
  0x47   : > { %v502_v36 = vpack.c.bf16 %v469_v32, %v468_v27  ;;  %v470_v39 = vmax.f32 %v406_v34, 0.0 }
  0x48   : > { %1125 = vmatmul.mubr.msk.bf16.gmra.mxu0 %vm512_vm0, %v485_v23  ;;  %v471_v40 = vmax.f32 %v407_v35, 0.0  ;;  %v487_v1 = vpack.c.bf16 %v439_v38, %v438_v37 }
  0x49   : > { %1128 = vmatprep.mubr.msk.bf16.mxu0 %vm512_vm0, %v486_v31 }
  0x4a   : > { %1157 = vmatmul.mubr.msk.bf16.gmra.mxu1 %vm512_vm0, %v501_v33  ;;  %v503_v41 = vpack.c.bf16 %v471_v40, %v470_v39 }
  0x4b   : > { %1160 = vmatprep.mubr.msk.bf16.mxu1 %vm512_vm0, %v502_v36 }
  0x50   : > { %1129 = vmatmul.mubr.msk.bf16.gmra.mxu0 %vm512_vm0, %v487_v1 }
  0x52   : > { %1161 = vmatmul.mubr.msk.bf16.gmra.mxu1 %vm512_vm0, %v503_v41 }
  0xd8   : > { %v1102_v2 = vpop.f32.mrf.mxu0 }
  0xd9   : > { %901 = vst.msk [vmem:[%s1468_s30 + $0x10] sm:$0xff] %vm898_vm1, %v1102_v2 }
  0xda   : > { %v1134_v42 = vpop.f32.mrf.mxu1  ;;  %v643_v43 = vpop.f32.mrf.mxu0 }
  0xdb   : > { %933 = vst.msk [vmem:[%s1468_s30 + $0x110] sm:$0xff] %vm898_vm1, %v1134_v42  ;;  %899 = vst.msk [vmem:[%s1468_s30] sm:$0xff] %vm898_vm1, %v643_v43 }
  0xdc   : > { %v771_v44 = vpop.f32.mrf.mxu1  ;;  %v1103_v45 = vpop.f32.mrf.mxu0 }
  0xdd   : > { %931 = vst.msk [vmem:[%s1468_s30 + $0x100] sm:$0xff] %vm898_vm1, %v771_v44  ;;  %902 = vst.msk [vmem:[%s1468_s30 + $0x18] sm:$0xff] %vm898_vm1, %v1103_v45 }
  0xde   : > { %v1135_v46 = vpop.f32.mrf.mxu1  ;;  %v646_v47 = vpop.f32.mrf.mxu0 }
  0xdf   : > { %934 = vst.msk [vmem:[%s1468_s30 + $0x118] sm:$0xff] %vm898_vm1, %v1135_v46  ;;  %900 = vst.msk [vmem:[%s1468_s30 + $0x8] sm:$0xff] %vm898_vm1, %v646_v47 }
  0xe0   : > { %v774_v48 = vpop.f32.mrf.mxu1  ;;  %v1106_v49 = vpop.f32.mrf.mxu0 }
  0xe1   : > { %932 = vst.msk [vmem:[%s1468_s30 + $0x108] sm:$0xff] %vm898_vm1, %v774_v48  ;;  %905 = vst.msk [vmem:[%s1468_s30 + $0x30] sm:$0xff] %vm898_vm1, %v1106_v49 }
  0xe2   : > { %v1138_v50 = vpop.f32.mrf.mxu1  ;;  %v659_v51 = vpop.f32.mrf.mxu0 }
  0xe3   : > { %937 = vst.msk [vmem:[%s1468_s30 + $0x130] sm:$0xff] %vm898_vm1, %v1138_v50  ;;  %903 = vst.msk [vmem:[%s1468_s30 + $0x20] sm:$0xff] %vm898_vm1, %v659_v51 }
  0xe4   : > { %v787_v52 = vpop.f32.mrf.mxu1  ;;  %v1107_v53 = vpop.f32.mrf.mxu0 }
  0xe5   : > { %935 = vst.msk [vmem:[%s1468_s30 + $0x120] sm:$0xff] %vm898_vm1, %v787_v52  ;;  %906 = vst.msk [vmem:[%s1468_s30 + $0x38] sm:$0xff] %vm898_vm1, %v1107_v53 }
  0xe6   : > { %v1139_v54 = vpop.f32.mrf.mxu1  ;;  %v662_v55 = vpop.f32.mrf.mxu0 }
  0xe7   : > { %938 = vst.msk [vmem:[%s1468_s30 + $0x138] sm:$0xff] %vm898_vm1, %v1139_v54  ;;  %904 = vst.msk [vmem:[%s1468_s30 + $0x28] sm:$0xff] %vm898_vm1, %v662_v55 }
  0xe8   : > { %v790_v56 = vpop.f32.mrf.mxu1  ;;  %v1110_v57 = vpop.f32.mrf.mxu0 }
  0xe9   : > { %936 = vst.msk [vmem:[%s1468_s30 + $0x128] sm:$0xff] %vm898_vm1, %v790_v56  ;;  %909 = vst.msk [vmem:[%s1468_s30 + $0x50] sm:$0xff] %vm898_vm1, %v1110_v57 }
  0xea   : > { %v1142_v58 = vpop.f32.mrf.mxu1  ;;  %v675_v59 = vpop.f32.mrf.mxu0 }
  0xeb   : > { %941 = vst.msk [vmem:[%s1468_s30 + $0x150] sm:$0xff] %vm898_vm1, %v1142_v58  ;;  %907 = vst.msk [vmem:[%s1468_s30 + $0x40] sm:$0xff] %vm898_vm1, %v675_v59 }
  0xec   : > { %v803_v60 = vpop.f32.mrf.mxu1  ;;  %v1111_v61 = vpop.f32.mrf.mxu0 }
  0xed   : > { %939 = vst.msk [vmem:[%s1468_s30 + $0x140] sm:$0xff] %vm898_vm1, %v803_v60  ;;  %910 = vst.msk [vmem:[%s1468_s30 + $0x58] sm:$0xff] %vm898_vm1, %v1111_v61 }
  0xee   : > { %v1143_v62 = vpop.f32.mrf.mxu1  ;;  %v678_v63 = vpop.f32.mrf.mxu0 }
  0xef   : > { %942 = vst.msk [vmem:[%s1468_s30 + $0x158] sm:$0xff] %vm898_vm1, %v1143_v62  ;;  %908 = vst.msk [vmem:[%s1468_s30 + $0x48] sm:$0xff] %vm898_vm1, %v678_v63 }
  0xf0   : > { %v806_v0 = vpop.f32.mrf.mxu1  ;;  %v1114_v3 = vpop.f32.mrf.mxu0 }
  0xf1   : > { %940 = vst.msk [vmem:[%s1468_s30 + $0x148] sm:$0xff] %vm898_vm1, %v806_v0  ;;  %913 = vst.msk [vmem:[%s1468_s30 + $0x70] sm:$0xff] %vm898_vm1, %v1114_v3 }
  0xf2   : > { %v1146_v4 = vpop.f32.mrf.mxu1  ;;  %v691_v5 = vpop.f32.mrf.mxu0 }
  0xf3   : > { %945 = vst.msk [vmem:[%s1468_s30 + $0x170] sm:$0xff] %vm898_vm1, %v1146_v4  ;;  %911 = vst.msk [vmem:[%s1468_s30 + $0x60] sm:$0xff] %vm898_vm1, %v691_v5 }
  0xf4   : > { %v819_v6 = vpop.f32.mrf.mxu1  ;;  %v1115_v7 = vpop.f32.mrf.mxu0 }
  0xf5   : > { %943 = vst.msk [vmem:[%s1468_s30 + $0x160] sm:$0xff] %vm898_vm1, %v819_v6  ;;  %914 = vst.msk [vmem:[%s1468_s30 + $0x78] sm:$0xff] %vm898_vm1, %v1115_v7 }
  0xf6   : > { %v1147_v8 = vpop.f32.mrf.mxu1  ;;  %v694_v9 = vpop.f32.mrf.mxu0 }
  0xf7   : > { %946 = vst.msk [vmem:[%s1468_s30 + $0x178] sm:$0xff] %vm898_vm1, %v1147_v8  ;;  %912 = vst.msk [vmem:[%s1468_s30 + $0x68] sm:$0xff] %vm898_vm1, %v694_v9 }
  0xf8   : > { %v822_v10 = vpop.f32.mrf.mxu1  ;;  %v1118_v11 = vpop.f32.mrf.mxu0 }
  0xf9   : > { %944 = vst.msk [vmem:[%s1468_s30 + $0x168] sm:$0xff] %vm898_vm1, %v822_v10  ;;  %917 = vst.msk [vmem:[%s1468_s30 + $0x90] sm:$0xff] %vm898_vm1, %v1118_v11 }
  0xfa   : > { %v1150_v12 = vpop.f32.mrf.mxu1  ;;  %v707_v13 = vpop.f32.mrf.mxu0 }
  0xfb   : > { %949 = vst.msk [vmem:[%s1468_s30 + $0x190] sm:$0xff] %vm898_vm1, %v1150_v12  ;;  %915 = vst.msk [vmem:[%s1468_s30 + $0x80] sm:$0xff] %vm898_vm1, %v707_v13 }
  0xfc   : > { %v835_v14 = vpop.f32.mrf.mxu1  ;;  %v1119_v15 = vpop.f32.mrf.mxu0 }
  0xfd   : > { %947 = vst.msk [vmem:[%s1468_s30 + $0x180] sm:$0xff] %vm898_vm1, %v835_v14  ;;  %918 = vst.msk [vmem:[%s1468_s30 + $0x98] sm:$0xff] %vm898_vm1, %v1119_v15 }
  0xfe   : > { %v1151_v16 = vpop.f32.mrf.mxu1  ;;  %v710_v17 = vpop.f32.mrf.mxu0 }
  0xff   : > { %950 = vst.msk [vmem:[%s1468_s30 + $0x198] sm:$0xff] %vm898_vm1, %v1151_v16  ;;  %916 = vst.msk [vmem:[%s1468_s30 + $0x88] sm:$0xff] %vm898_vm1, %v710_v17 }
 0x100   : > { %v838_v18 = vpop.f32.mrf.mxu1  ;;  %v1122_v19 = vpop.f32.mrf.mxu0 }
 0x101   : > { %948 = vst.msk [vmem:[%s1468_s30 + $0x188] sm:$0xff] %vm898_vm1, %v838_v18  ;;  %921 = vst.msk [vmem:[%s1468_s30 + $0xb0] sm:$0xff] %vm898_vm1, %v1122_v19 }
 0x102   : > { %v1154_v20 = vpop.f32.mrf.mxu1  ;;  %v723_v21 = vpop.f32.mrf.mxu0 }
 0x103   : > { %953 = vst.msk [vmem:[%s1468_s30 + $0x1b0] sm:$0xff] %vm898_vm1, %v1154_v20  ;;  %919 = vst.msk [vmem:[%s1468_s30 + $0xa0] sm:$0xff] %vm898_vm1, %v723_v21 }
 0x104   : > { %v851_v22 = vpop.f32.mrf.mxu1  ;;  %v1123_v23 = vpop.f32.mrf.mxu0 }
 0x105   : > { %951 = vst.msk [vmem:[%s1468_s30 + $0x1a0] sm:$0xff] %vm898_vm1, %v851_v22  ;;  %922 = vst.msk [vmem:[%s1468_s30 + $0xb8] sm:$0xff] %vm898_vm1, %v1123_v23 }
 0x106   : > { %v1155_v24 = vpop.f32.mrf.mxu1  ;;  %v726_v25 = vpop.f32.mrf.mxu0 }
 0x107   : > { %954 = vst.msk [vmem:[%s1468_s30 + $0x1b8] sm:$0xff] %vm898_vm1, %v1155_v24  ;;  %920 = vst.msk [vmem:[%s1468_s30 + $0xa8] sm:$0xff] %vm898_vm1, %v726_v25 }
 0x108   : > { %v854_v26 = vpop.f32.mrf.mxu1  ;;  %v1126_v27 = vpop.f32.mrf.mxu0 }
 0x109   : > { %952 = vst.msk [vmem:[%s1468_s30 + $0x1a8] sm:$0xff] %vm898_vm1, %v854_v26  ;;  %925 = vst.msk [vmem:[%s1468_s30 + $0xd0] sm:$0xff] %vm898_vm1, %v1126_v27 }
 0x10a   : > { %v1158_v28 = vpop.f32.mrf.mxu1  ;;  %v739_v29 = vpop.f32.mrf.mxu0 }
 0x10b   : > { %957 = vst.msk [vmem:[%s1468_s30 + $0x1d0] sm:$0xff] %vm898_vm1, %v1158_v28  ;;  %923 = vst.msk [vmem:[%s1468_s30 + $0xc0] sm:$0xff] %vm898_vm1, %v739_v29 }
 0x10c   : > { %v867_v30 = vpop.f32.mrf.mxu1  ;;  %v1127_v31 = vpop.f32.mrf.mxu0 }
 0x10d   : > { %955 = vst.msk [vmem:[%s1468_s30 + $0x1c0] sm:$0xff] %vm898_vm1, %v867_v30  ;;  %926 = vst.msk [vmem:[%s1468_s30 + $0xd8] sm:$0xff] %vm898_vm1, %v1127_v31 }
 0x10e   : > { %v1159_v32 = vpop.f32.mrf.mxu1  ;;  %v742_v33 = vpop.f32.mrf.mxu0 }
 0x10f   : > { %958 = vst.msk [vmem:[%s1468_s30 + $0x1d8] sm:$0xff] %vm898_vm1, %v1159_v32  ;;  %924 = vst.msk [vmem:[%s1468_s30 + $0xc8] sm:$0xff] %vm898_vm1, %v742_v33 }
 0x110   : > { %v870_v34 = vpop.f32.mrf.mxu1  ;;  %v1130_v35 = vpop.f32.mrf.mxu0 }
 0x111   : > { %956 = vst.msk [vmem:[%s1468_s30 + $0x1c8] sm:$0xff] %vm898_vm1, %v870_v34  ;;  %929 = vst.msk [vmem:[%s1468_s30 + $0xf0] sm:$0xff] %vm898_vm1, %v1130_v35 }
 0x112   : > { %v1162_v36 = vpop.f32.mrf.mxu1  ;;  %v755_v37 = vpop.f32.mrf.mxu0 }
 0x113   : > { %961 = vst.msk [vmem:[%s1468_s30 + $0x1f0] sm:$0xff] %vm898_vm1, %v1162_v36  ;;  %927 = vst.msk [vmem:[%s1468_s30 + $0xe0] sm:$0xff] %vm898_vm1, %v755_v37 }
 0x114   : > { %v883_v38 = vpop.f32.mrf.mxu1  ;;  %v1131_v39 = vpop.f32.mrf.mxu0 }
 0x115   : > { %959 = vst.msk [vmem:[%s1468_s30 + $0x1e0] sm:$0xff] %vm898_vm1, %v883_v38  ;;  %930 = vst.msk [vmem:[%s1468_s30 + $0xf8] sm:$0xff] %vm898_vm1, %v1131_v39 }
 0x116   : > { %v1163_v40 = vpop.f32.mrf.mxu1  ;;  %v758_v1 = vpop.f32.mrf.mxu0 }
 0x117   : > { %962 = vst.msk [vmem:[%s1468_s30 + $0x1f8] sm:$0xff] %vm898_vm1, %v1163_v40  ;;  %928 = vst.msk [vmem:[%s1468_s30 + $0xe8] sm:$0xff] %vm898_vm1, %v758_v1 }
 0x118   : > { %v886_v41 = vpop.f32.mrf.mxu1 }
 0x119   : > { %960 = vst.msk [vmem:[%s1468_s30 + $0x1e8] sm:$0xff] %vm898_vm1, %v886_v41 }
 0x11a PF: > { %s14_s15 = sadd.s32 1, %s1181_s15  }
 0x11b   : > { %p11_p4 = scmp.ge.s32.totalorder %s14_s15, 6  }
 0x11d   :  { %13 = sbr.rel (!%p11_p4) target bundleno = 1 (0x1), region = 66 }

// kernel: generator_forward.19
= control target key start
LH: loop header
LB: loop body
LE: loop exit
PB: predicated region body
PF: predicated region fallthrough
CT: control target
= control target key end

     0   :  { %s286_s0 = inlined_call_operand.vmem [shape: f32[192,128], index: 0, kind: input, shape index: {}]   ;;  %s287_s1 = inlined_call_operand.vmem [shape: f32[192,128], index: 1, kind: output, shape index: {}]  }
   0x1   :  { %v8_v0 = vld [vmem:[%s286_s0] sm:$0xff]  ;;  %v9_v1 = vld [vmem:[%s286_s0 + $0x8] sm:$0xff]  ;;  %v10_v2 = vld [vmem:[%s286_s0 + $0x10] sm:$0xff] }
   0x2   :  { %84 = vtanh.f32 %v8_v0  ;;  %v11_v3 = vld [vmem:[%s286_s0 + $0x18] sm:$0xff]  ;;  %v12_v4 = vld [vmem:[%s286_s0 + $0x20] sm:$0xff]  ;;  %v13_v5 = vld [vmem:[%s286_s0 + $0x28] sm:$0xff] }
   0x3   :  { %86 = vtanh.f32 %v9_v1  ;;  %v14_v6 = vld [vmem:[%s286_s0 + $0x30] sm:$0xff]  ;;  %v15_v7 = vld [vmem:[%s286_s0 + $0x38] sm:$0xff]  ;;  %v16_v8 = vld [vmem:[%s286_s0 + $0x40] sm:$0xff] }
   0x4   :  { %88 = vtanh.f32 %v10_v2  ;;  %v17_v9 = vld [vmem:[%s286_s0 + $0x48] sm:$0xff]  ;;  %v18_v10 = vld [vmem:[%s286_s0 + $0x50] sm:$0xff]  ;;  %v19_v11 = vld [vmem:[%s286_s0 + $0x58] sm:$0xff] }
   0x5   :  { %90 = vtanh.f32 %v11_v3  ;;  %v20_v12 = vld [vmem:[%s286_s0 + $0x60] sm:$0xff]  ;;  %v21_v13 = vld [vmem:[%s286_s0 + $0x68] sm:$0xff]  ;;  %v22_v14 = vld [vmem:[%s286_s0 + $0x70] sm:$0xff] }
   0x6   :  { %92 = vtanh.f32 %v12_v4  ;;  %v23_v15 = vld [vmem:[%s286_s0 + $0x78] sm:$0xff]  ;;  %v24_v17 = vld [vmem:[%s286_s0 + $0x80] sm:$0xff]  ;;  %v25_v19 = vld [vmem:[%s286_s0 + $0x88] sm:$0xff] }
   0x7   :  { %94 = vtanh.f32 %v13_v5  ;;  %v26_v21 = vld [vmem:[%s286_s0 + $0x90] sm:$0xff]  ;;  %v27_v23 = vld [vmem:[%s286_s0 + $0x98] sm:$0xff]  ;;  %v28_v25 = vld [vmem:[%s286_s0 + $0xa0] sm:$0xff] }
   0x8   :  { %96 = vtanh.f32 %v14_v6  ;;  %v29_v27 = vld [vmem:[%s286_s0 + $0xa8] sm:$0xff]  ;;  %v30_v29 = vld [vmem:[%s286_s0 + $0xb0] sm:$0xff]  ;;  %v31_v31 = vld [vmem:[%s286_s0 + $0xb8] sm:$0xff] }
   0x9   :  { %98 = vtanh.f32 %v15_v7 }
   0xa   :  { %100 = vtanh.f32 %v16_v8 }
   0xb   :  { %102 = vtanh.f32 %v17_v9 }
   0xc   :  { %104 = vtanh.f32 %v18_v10 }
   0xd   :  { %106 = vtanh.f32 %v19_v11 }
   0xe   :  { %108 = vtanh.f32 %v20_v12 }
   0xf   :  { %v85_v16 = vpop.eup %84  ;;  %110 = vtanh.f32 %v21_v13 }
  0x10   :  { %v87_v18 = vpop.eup %86  ;;  %56 = vst [vmem:[%s287_s1] sm:$0xff] %v85_v16  ;;  %112 = vtanh.f32 %v22_v14 }
  0x11   :  { %v89_v20 = vpop.eup %88  ;;  %57 = vst [vmem:[%s287_s1 + $0x8] sm:$0xff] %v87_v18  ;;  %114 = vtanh.f32 %v23_v15 }
  0x12   :  { %v91_v22 = vpop.eup %90  ;;  %58 = vst [vmem:[%s287_s1 + $0x10] sm:$0xff] %v89_v20  ;;  %116 = vtanh.f32 %v24_v17 }
  0x13   :  { %v93_v24 = vpop.eup %92  ;;  %59 = vst [vmem:[%s287_s1 + $0x18] sm:$0xff] %v91_v22  ;;  %118 = vtanh.f32 %v25_v19 }
  0x14   :  { %v95_v26 = vpop.eup %94  ;;  %60 = vst [vmem:[%s287_s1 + $0x20] sm:$0xff] %v93_v24  ;;  %120 = vtanh.f32 %v26_v21 }
  0x15   :  { %v97_v28 = vpop.eup %96  ;;  %61 = vst [vmem:[%s287_s1 + $0x28] sm:$0xff] %v95_v26  ;;  %122 = vtanh.f32 %v27_v23 }
  0x16   :  { %v99_v30 = vpop.eup %98  ;;  %62 = vst [vmem:[%s287_s1 + $0x30] sm:$0xff] %v97_v28  ;;  %124 = vtanh.f32 %v28_v25 }
  0x17   :  { %v101_v32 = vpop.eup %100  ;;  %63 = vst [vmem:[%s287_s1 + $0x38] sm:$0xff] %v99_v30  ;;  %126 = vtanh.f32 %v29_v27 }
  0x18   :  { %v103_v33 = vpop.eup %102  ;;  %64 = vst [vmem:[%s287_s1 + $0x40] sm:$0xff] %v101_v32  ;;  %128 = vtanh.f32 %v30_v29 }
  0x19   :  { %v105_v34 = vpop.eup %104  ;;  %65 = vst [vmem:[%s287_s1 + $0x48] sm:$0xff] %v103_v33  ;;  %130 = vtanh.f32 %v31_v31 }
  0x1a   :  { %v107_v35 = vpop.eup %106  ;;  %66 = vst [vmem:[%s287_s1 + $0x50] sm:$0xff] %v105_v34 }
  0x1b   :  { %v109_v36 = vpop.eup %108  ;;  %67 = vst [vmem:[%s287_s1 + $0x58] sm:$0xff] %v107_v35 }
  0x1c   :  { %v111_v37 = vpop.eup %110  ;;  %68 = vst [vmem:[%s287_s1 + $0x60] sm:$0xff] %v109_v36 }
  0x1d   :  { %v113_v38 = vpop.eup %112  ;;  %69 = vst [vmem:[%s287_s1 + $0x68] sm:$0xff] %v111_v37 }
  0x1e   :  { %v115_v39 = vpop.eup %114  ;;  %70 = vst [vmem:[%s287_s1 + $0x70] sm:$0xff] %v113_v38 }
  0x1f   :  { %v117_v40 = vpop.eup %116  ;;  %71 = vst [vmem:[%s287_s1 + $0x78] sm:$0xff] %v115_v39 }
  0x20   :  { %v119_v41 = vpop.eup %118  ;;  %72 = vst [vmem:[%s287_s1 + $0x80] sm:$0xff] %v117_v40 }
  0x21   :  { %v121_v42 = vpop.eup %120  ;;  %73 = vst [vmem:[%s287_s1 + $0x88] sm:$0xff] %v119_v41 }
  0x22   :  { %v123_v43 = vpop.eup %122  ;;  %74 = vst [vmem:[%s287_s1 + $0x90] sm:$0xff] %v121_v42 }
  0x23   :  { %v125_v44 = vpop.eup %124  ;;  %75 = vst [vmem:[%s287_s1 + $0x98] sm:$0xff] %v123_v43 }
  0x24   :  { %v127_v45 = vpop.eup %126  ;;  %76 = vst [vmem:[%s287_s1 + $0xa0] sm:$0xff] %v125_v44 }
  0x25   :  { %v129_v46 = vpop.eup %128  ;;  %77 = vst [vmem:[%s287_s1 + $0xa8] sm:$0xff] %v127_v45 }
  0x26   :  { %v131_v47 = vpop.eup %130  ;;  %78 = vst [vmem:[%s287_s1 + $0xb0] sm:$0xff] %v129_v46 }
  0x27   :  { %79 = vst [vmem:[%s287_s1 + $0xb8] sm:$0xff] %v131_v47 }

</bundles_post_ra>
